<compile_context>
chip_gen: v7x
topology: tpu7x:2x2x1
jax: 0.10.0
libtpu: 0.0.40
codegen_flags: <defaults>
</compile_context>

<pallas_src>
import functools

import jax
import jax.numpy as jnp
from jax.experimental import pallas as pl
from jax.experimental.pallas import tpu as pltpu


# ----------------------------------------------------------------------------
# Tiling helpers (all trace-time Python, no tracers involved).
# ----------------------------------------------------------------------------
def _round_up(x, m):
    return -(-x // m) * m


def _tpu_generation():
    try:
        kind = jax.devices()[0].device_kind.lower()
    except Exception:
        return "unknown"
    if "v5e" in kind or "v5 lite" in kind or "v5lite" in kind:
        return "v5e"
    if "v6" in kind:
        return "v6e"
    if "v7" in kind or "7x" in kind:
        return "v7x"
    return "other"


def _vmem_need_bytes(cin_tile, cout_tile, hw, n_k):
    """Rough double-buffered VMEM footprint of one grid step (with padding)."""
    hw_pad = _round_up(hw, 128)
    cin_lane_pad = _round_up(cin_tile, 128)
    x_blk = _round_up(cin_tile, 8) * hw_pad * 4          # f32 activations
    g_blk = 8 * cin_lane_pad * 4                         # (1, cin) gate, f32
    w_blk = _round_up(cout_tile, 8) * cin_lane_pad * 2   # bf16 weight slab
    o_blk = _round_up(cout_tile, 8) * hw_pad * 4         # f32 output slab
    acc = _round_up(cout_tile, 8) * hw_pad * 4 if n_k > 1 else 0
    return 2 * (x_blk + g_blk + w_blk + o_blk) + acc


def _choose_cin_tile(cin, cout_tile, hw, cap, vmem_budget):
    """Largest divisor of Cin (multiple of 128, or full Cin) fitting VMEM."""
    cands = []
    if cin <= cap:
        cands.append(cin)                                 # full dim is legal
    cands += [c for c in range(min(cap, cin) // 128 * 128, 0, -128)
              if cin % c == 0 and c not in cands]
    if not cands:
        return cin
    for c in cands:
        if _vmem_need_bytes(c, cout_tile, hw, cin // c) <= vmem_budget:
            return c
    return cands[-1]


def _choose_tiles(cin, cout, hw, cin_tile, cout_tile):
    gen = _tpu_generation()
    if cout_tile is None:
        # Two Cout tiles only pay off on v7x (2 TensorCores/chip); on a single
        # TC they just re-read x and double the step count.
        if gen == "v7x" and cout % 16 == 0:
            cout_tile = cout // 2
        else:
            cout_tile = cout
    if cin_tile is None:
        # v5e has the smallest default scoped VMEM; keep its reduction tile
        # modest.  Other generations take the whole Cin if it fits the budget.
        cap = 2048 if gen == "v5e" else cin
        cin_tile = _choose_cin_tile(cin, cout_tile, hw, cap,
                                    vmem_budget=40 << 20)
    return cin_tile, cout_tile


# ----------------------------------------------------------------------------
# Kernels.
# ----------------------------------------------------------------------------
def _se_conv_kernel_single(x_ref, g_ref, w_ref, o_ref):
    # x_ref: (cin_tile, HW) f32   g_ref: (1, cin_tile) f32
    # w_ref: (cout_tile, cin_tile) bf16   o_ref: (cout_tile, HW) f32
    gate = jax.nn.sigmoid(g_ref[...])                      # f32 on the EUP
    w_scaled = w_ref[...] * gate.astype(w_ref.dtype)       # bf16 sublane bcast
    o_ref[...] = jnp.dot(
        w_scaled, x_ref[...].astype(w_ref.dtype),
        preferred_element_type=jnp.float32).astype(o_ref.dtype)


def _se_conv_kernel_accum(x_ref, g_ref, w_ref, o_ref, acc_ref):
    k = pl.program_id(2)

    @pl.when(k == 0)
    def _init():
        acc_ref[...] = jnp.zeros_like(acc_ref)

    gate = jax.nn.sigmoid(g_ref[...])
    w_scaled = w_ref[...] * gate.astype(w_ref.dtype)
    acc_ref[...] += jnp.dot(w_scaled, x_ref[...].astype(w_ref.dtype),
                            preferred_element_type=jnp.float32)

    @pl.when(k == pl.num_programs(2) - 1)
    def _finalize():
        o_ref[...] = acc_ref[...].astype(o_ref.dtype)


# ----------------------------------------------------------------------------
# Wrappers.
# ----------------------------------------------------------------------------
def prepare_conv_weight(weight_oi11):
    """One-time reshape + f32->bf16 cast of the (Cout, Cin, 1, 1) conv weight.

    Call this once and reuse the result across forward calls so the convert's
    HBM traffic is not paid on every invocation.
    """
    cout, cin = weight_oi11.shape[:2]
    return weight_oi11.reshape(cout, cin).astype(jnp.bfloat16)


@functools.partial(jax.jit, static_argnames=("cin_tile", "cout_tile"))
def se_gate_conv1x1(x_nchw, gate_nc11, weight_bf16, *, cin_tile=None,
                    cout_tile=None):
    """out = conv1x1(sigmoid(gate) * x), no bias, all in NCHW.

    x_nchw     : (N, Cin, H, W)  float32
    gate_nc11  : (N, Cin, 1, 1)  float32
    weight_bf16: (Cout, Cin)     bfloat16 (from prepare_conv_weight)
    returns    : (N, Cout, H, W) float32
    """
    N, Cin, H, W = x_nchw.shape
    Cout, Cin_w = weight_bf16.shape
    assert Cin_w == Cin
    HW = H * W

    cin_tile, cout_tile = _choose_tiles(Cin, Cout, HW, cin_tile, cout_tile)
    assert Cin % cin_tile == 0 and Cout % cout_tile == 0
    n_k = Cin // cin_tile
    n_j = Cout // cout_tile

    # Free reshapes only -- no NCHW <-> NHWC transposes anywhere.
    x_r = x_nchw.reshape(N, Cin, HW)
    g_r = gate_nc11.reshape(N, 1, Cin)

    # Advisory cost, consistent with the chosen tiling (x re-read per Cout
    # tile; weight re-read per sample unless it is a single resident block).
    cost = pl.CostEstimate(
        flops=2 * N * HW * Cin * Cout,
        transcendentals=N * n_j * Cin,
        bytes_accessed=(N * n_j * Cin * HW * 4
                        + N * n_j * Cin * 4
                        + (N if (n_j * n_k) > 1 else 1) * Cout * Cin * 2
                        + N * Cout * HW * 4),
    )

    if n_k == 1:
        # Whole Cin reduction in one step: no accumulator, no init/finalize.
        kernel = _se_conv_kernel_single
        grid = (N, n_j)
        in_specs = [
            pl.BlockSpec((None, cin_tile, HW), lambda n, j: (n, 0, 0)),
            pl.BlockSpec((None, 1, cin_tile), lambda n, j: (n, 0, 0)),
            pl.BlockSpec((cout_tile, cin_tile), lambda n, j: (j, 0)),
        ]
        out_spec = pl.BlockSpec((None, cout_tile, HW), lambda n, j: (n, j, 0))
        scratch = []
        dims = ("parallel", "parallel")
    else:
        kernel = _se_conv_kernel_accum
        grid = (N, n_j, n_k)
        in_specs = [
            pl.BlockSpec((None, cin_tile, HW), lambda n, j, k: (n, k, 0)),
            pl.BlockSpec((None, 1, cin_tile), lambda n, j, k: (n, 0, k)),
            pl.BlockSpec((cout_tile, cin_tile), lambda n, j, k: (j, k)),
        ]
        out_spec = pl.BlockSpec((None, cout_tile, HW),
                                lambda n, j, k: (n, j, 0))
        scratch = [pltpu.VMEM((cout_tile, HW), jnp.float32)]
        dims = ("parallel", "parallel", "arbitrary")

    vmem_need = _vmem_need_bytes(cin_tile, cout_tile, HW, n_k)
    vmem_limit = min(48 << 20, max(32 << 20, vmem_need + (8 << 20)))

    out = pl.pallas_call(
        kernel,
        out_shape=jax.ShapeDtypeStruct((N, Cout, HW), x_nchw.dtype),
        grid_spec=pltpu.PrefetchScalarGridSpec(
            num_scalar_prefetch=0,
            grid=grid,
            in_specs=in_specs,
            out_specs=out_spec,
            scratch_shapes=scratch,
        ),
        compiler_params=pltpu.CompilerParams(
            dimension_semantics=dims,
            vmem_limit_bytes=vmem_limit,
        ),
        cost_estimate=cost,
    )(x_r, g_r, weight_bf16)

    return out.reshape(N, Cout, H, W)


if __name__ == "__main__":
    # Small shapes consistent with the module's forward:
    #   x815: (N, Cin, H, W), x819: (N, Cin, 1, 1), conv2d: Cin -> Cout, 1x1,
    #   no bias.  (Real EfficientNet-B7 block: N=1, Cin=3840, Cout=640, H=W=7.)
    N, Cin, Cout, H, W = 2, 1280, 640, 7, 7

    key = jax.random.PRNGKey(0)
    kx, kg, kw = jax.random.split(key, 3)
    x815 = jax.random.normal(kx, (N, Cin, H, W), dtype=jnp.float32)
    x819 = jax.random.normal(kg, (N, Cin, 1, 1), dtype=jnp.float32)
    weight = (jax.random.normal(kw, (Cout, Cin, 1, 1), dtype=jnp.float32)
              * (1.0 / float(Cin) ** 0.5))

    # Hoisted once (would be cached alongside the model weights in practice).
    w_prep = prepare_conv_weight(weight)

    # Default, generation-aware tiling (single-step reduction on these shapes).
    out = jax.block_until_ready(se_gate_conv1x1(x815, x819, w_prep))

    # Also exercise the multi-step reduction / resident-accumulator path.
    out_acc = jax.block_until_ready(
        se_gate_conv1x1(x815, x819, w_prep, cin_tile=256, cout_tile=320))

    # Pure-JAX f32 reference.  The kernel uses bf16 MXU inputs (weight, gate
    # and activations) with f32 accumulation -> relaxed tolerance.
    gated_ref = x815 * jax.nn.sigmoid(x819)
    ref = jnp.einsum("nchw,oc->nohw", gated_ref, weight.reshape(Cout, Cin))

    assert out.shape == (N, Cout, H, W)
    assert jnp.allclose(out, ref, atol=2e-2, rtol=2e-2), float(
        jnp.max(jnp.abs(out - ref)))
    assert jnp.allclose(out_acc, ref, atol=2e-2, rtol=2e-2), float(
        jnp.max(jnp.abs(out_acc - ref)))

    print("KERNEL_OK")
</pallas_src>

<mosaic_0001>
module attributes {stable_mosaic.version = 11 : i64} {
  func.func @_se_conv_kernel_single(%arg0: i32, %arg1: i32, %arg2: memref<1x1280x49xf32, #tpu.memory_space<vmem>>, %arg3: memref<1x1x1280xf32, #tpu.memory_space<vmem>>, %arg4: memref<640x1280xbf16, #tpu.memory_space<vmem>>, %arg5: memref<1x640x49xf32, #tpu.memory_space<vmem>>) attributes {dimension_semantics = [#tpu.dimension_semantics<parallel>, #tpu.dimension_semantics<parallel>], iteration_bounds = array<i64: 2, 1>, scalar_prefetch = 0 : i64, scratch_operands = 0 : i64, tpu.core_type = #tpu.core_type<tc>, window_params = [{transform_indices = @transform_0, window_bounds = array<i64: 1, 1280, 49>}, {transform_indices = @transform_1, window_bounds = array<i64: 1, 1, 1280>}, {transform_indices = @transform_2, window_bounds = array<i64: 640, 1280>}, {transform_indices = @transform_3, window_bounds = array<i64: 1, 640, 49>}]} {
    %c0 = arith.constant 0 : index
    %c0_0 = arith.constant 0 : index
    %c0_1 = arith.constant 0 : index
    %0 = vector.load %arg3[%c0, %c0_0, %c0_1] : memref<1x1x1280xf32, #tpu.memory_space<vmem>>, vector<1x1x1280xf32>
    %1 = vector.shape_cast %0 : vector<1x1x1280xf32> to vector<1x1280xf32>
    %2 = arith.negf %1 : vector<1x1280xf32>
    %3 = math.exp %2 : vector<1x1280xf32>
    %cst = arith.constant 1.000000e+00 : f32
    %4 = vector.broadcast %cst : f32 to vector<1x1280xf32>
    %5 = arith.addf %4, %3 : vector<1x1280xf32>
    %6 = arith.divf %4, %5 : vector<1x1280xf32>
    %c0_2 = arith.constant 0 : index
    %c0_3 = arith.constant 0 : index
    %7 = vector.load %arg4[%c0_2, %c0_3] : memref<640x1280xbf16, #tpu.memory_space<vmem>>, vector<640x1280xbf16>
    %8 = arith.truncf %6 : vector<1x1280xf32> to vector<1x1280xbf16>
    %9 = vector.broadcast %8 : vector<1x1280xbf16> to vector<640x1280xbf16>
    %10 = arith.mulf %7, %9 : vector<640x1280xbf16>
    %c0_4 = arith.constant 0 : index
    %c0_5 = arith.constant 0 : index
    %c0_6 = arith.constant 0 : index
    %11 = vector.load %arg2[%c0_4, %c0_5, %c0_6] : memref<1x1280x49xf32, #tpu.memory_space<vmem>>, vector<1x1280x49xf32>
    %12 = vector.shape_cast %11 : vector<1x1280x49xf32> to vector<1280x49xf32>
    %13 = arith.truncf %12 : vector<1280x49xf32> to vector<1280x49xbf16>
    %cst_7 = arith.constant dense<0.000000e+00> : vector<640x49xf32>
    %14 = tpu.matmul %10, %13, %cst_7 {dimension_numbers = #tpu.dot_dimension_numbers<[1], [0], [0], [1], [0, 0, 1, 1], [], []>} : vector<640x1280xbf16>, vector<1280x49xbf16>, vector<640x49xf32> -> vector<640x49xf32>
    %c0_8 = arith.constant 0 : index
    %c0_9 = arith.constant 0 : index
    %c0_10 = arith.constant 0 : index
    %15 = vector.load %arg5[%c0_8, %c0_9, %c0_10] : memref<1x640x49xf32, #tpu.memory_space<vmem>>, vector<1x640x49xf32>
    %16 = vector.shape_cast %15 : vector<1x640x49xf32> to vector<640x49xf32>
    %17 = vector.shape_cast %14 : vector<640x49xf32> to vector<1x640x49xf32>
    tpu.vector_store %arg5[%c0_8, %c0_9, %c0_10], %17 {strides = array<i32>} : memref<1x640x49xf32, #tpu.memory_space<vmem>>, vector<1x640x49xf32>,
    return
  }
  func.func @transform_0(%arg0: i32, %arg1: i32) -> (i32, i32, i32) {
    %c0_i32 = arith.constant 0 : i32
    %c0_i32_0 = arith.constant 0 : i32
    %c0_i32_1 = arith.constant 0 : i32
    return %arg0, %c0_i32, %c0_i32_0 : i32, i32, i32
  }
  func.func @transform_1(%arg0: i32, %arg1: i32) -> (i32, i32, i32) {
    %c0_i32 = arith.constant 0 : i32
    %c0_i32_0 = arith.constant 0 : i32
    %c0_i32_1 = arith.constant 0 : i32
    return %arg0, %c0_i32, %c0_i32_0 : i32, i32, i32
  }
  func.func @transform_2(%arg0: i32, %arg1: i32) -> (i32, i32) {
    %c0_i32 = arith.constant 0 : i32
    %c0_i32_0 = arith.constant 0 : i32
    return %arg1, %c0_i32 : i32, i32
  }
  func.func @transform_3(%arg0: i32, %arg1: i32) -> (i32, i32, i32) {
    %c0_i32 = arith.constant 0 : i32
    %c0_i32_0 = arith.constant 0 : i32
    return %arg0, %arg1, %c0_i32 : i32, i32, i32
  }
}

</mosaic_0001>

<bundles_post_ra>
// kernel: se_gate_conv1x1.1
= control target key start
LH: loop header
LB: loop body
LE: loop exit
PB: predicated region body
PF: predicated region fallthrough
CT: control target
= control target key end

     0   :  { %s6497_s12 = smov 0   ;;  %s6499_s13 = smov 0   ;;  %s8814_s0 = inlined_call_operand.vmem [shape: f32[2,1280,49], index: 0, kind: input, shape index: {}]   ;;  %s8815_s1 = inlined_call_operand.vmem [shape: f32[2,1,1280], index: 1, kind: input, shape index: {}]   ;;  %s8816_s2 = inlined_call_operand.vmem [shape: bf16[640,1280], index: 2, kind: input, shape index: {}]   ;;  %s8817_s3 = inlined_call_operand.vmem [shape: f32[2,640,49], index: 3, kind: output, shape index: {}]  }
   0x1   :  { %s6501_s14 = smov 0  }
   0x2 LB: > { %s25_s15 = sadd.s32 1, %s6470_s13  ;;  %p5412_p0 = scmp.ge.s32.totalorder %s6474_s14, 1  ;;  %s6474_s14 = sphi %s6501_s14, %s13_s14   ;;  %s6470_s13 = sphi %s6499_s13, %s8819_s13   ;;  %s6466_s12 = sphi %s6497_s12, %s8818_s12  }
   0x3   : > { %p27_p1 = scmp.ge.s32.totalorder %s25_s15, 2  ;;  %p172_p2 = scmp.lt.s32.totalorder %s6474_s14, 3 }
   0x5   : > { %s8821_s15 = smov (%p27_p1, %s25_s15), 0  ;;  %p173_p3 = pnand %p5412_p0, %p172_p2 }
   0x6   : > { %p210_p4 = scmp.lt.s32.totalorder (!%p173_p3), %s6466_s12, 1  ;;  %v6476_v0 = vmov (!%p173_p3), 0   ;;  %vm5218_vm0 = vcmask (!%p173_p3), 400384  }
   0x7   : > { %176 = sbr.rel (%p173_p3) target bundleno = 1094 (0x446), region = 32  ;;  %3453 = vmatprep.subr.bf16.mxu1 (!%p173_p3), %v6476_v0  ;;  %4159 = vmatprep.subr.bf16.mxu0 (!%p173_p3), %v6476_v0 }
   0xe   : > { %s8823_s12 = smov (!%p210_p4, %s6466_s12), 1 }
   0xf   : > { %s6416_s16 = smul.u32 1280, %s8823_s12 }
  0x10   : > { %s6417_s20 = smul.u32 10, %s8823_s12 }
  0x11   : > { %s6523_s19 = scalar_lea.vmem %s8814_s0, %s6416_s16  ;;  %s6418_s9 = smul.u32 640, %s8823_s12 }
  0x12   : > { %v1213_v1 = vld [vmem:[%s6523_s19] sm:$0xff]  ;;  %v1214_v2 = vld [vmem:[%s6523_s19 + $0x8] sm:$0xff]  ;;  %v1215_v6 = vld [vmem:[%s6523_s19 + $0x10] sm:$0xff]  ;;  %s6575_s23 = scalar_lea.vmem %s8815_s1, %s6417_s20 }
  0x13   : > { %v1277_v3 = vld [vmem:[%s6523_s19 + $0x200] sm:$0xff]  ;;  %v1373_v4 = vpack.c.bf16 %v1214_v2, %v1213_v1  ;;  %v1278_v5 = vld [vmem:[%s6523_s19 + $0x208] sm:$0xff]  ;;  %v1216_v7 = vld [vmem:[%s6523_s19 + $0x18] sm:$0xff]  ;;  %s8427_s11 = scalar_lea.vmem %s8817_s3, %s6418_s9 }
  0x14   : > { %v6531_v8 = vpack.c.bf16 %v1278_v5, %v1277_v3  ;;  %v1279_v9 = vld [vmem:[%s6523_s19 + $0x210] sm:$0xff]  ;;  %v1280_v10 = vld [vmem:[%s6523_s19 + $0x218] sm:$0xff]  ;;  %v1374_v11 = vpack.c.bf16 %v1216_v7, %v1215_v6  ;;  %v1217_v13 = vld [vmem:[%s6523_s19 + $0x20] sm:$0xff] }
  0x15   : > { %3454 = vmatpush1.bf16.msra.mxu1 %v1373_v4  ;;  %v6537_v12 = vpack.c.bf16 %v1280_v10, %v1279_v9  ;;  %v1218_v14 = vld [vmem:[%s6523_s19 + $0x28] sm:$0xff]  ;;  %v1281_v15 = vld [vmem:[%s6523_s19 + $0x220] sm:$0xff]  ;;  %v1219_v19 = vld [vmem:[%s6523_s19 + $0x30] sm:$0xff]  ;;  %v653_v4 = vlaneseq }
  0x16   : > { %4160 = vmatpush1.bf16.msra.mxu0 %v6531_v8  ;;  %3455 = vmatprep.subr.bf16.mxu1 %v6476_v0  ;;  %v1282_v16 = vld [vmem:[%s6523_s19 + $0x228] sm:$0xff]  ;;  %v1375_v17 = vpack.c.bf16 %v1218_v14, %v1217_v13  ;;  %v1220_v20 = vld [vmem:[%s6523_s19 + $0x38] sm:$0xff]  ;;  %v1283_v21 = vld [vmem:[%s6523_s19 + $0x230] sm:$0xff] }
  0x17   : > { %4161 = vmatprep.subr.bf16.mxu0 %v6476_v0  ;;  %v6546_v18 = vpack.c.bf16 %v1282_v16, %v1281_v15  ;;  %v1284_v22 = vld [vmem:[%s6523_s19 + $0x238] sm:$0xff]  ;;  %v1376_v23 = vpack.c.bf16 %v1220_v20, %v1219_v19  ;;  %v1221_v25 = vld [vmem:[%s6523_s19 + $0x40] sm:$0xff]  ;;  %v1222_v26 = vld [vmem:[%s6523_s19 + $0x48] sm:$0xff]  ;;  %v6629_v13 = vshrl.u32 %v653_v4, 7 }
  0x18   : > { %v6555_v24 = vpack.c.bf16 %v1284_v22, %v1283_v21  ;;  %v1285_v27 = vld [vmem:[%s6523_s19 + $0x240] sm:$0xff]  ;;  %v1286_v28 = vld [vmem:[%s6523_s19 + $0x248] sm:$0xff]  ;;  %v1377_v29 = vpack.c.bf16 %v1222_v26, %v1221_v25  ;;  %v1223_v31 = vld [vmem:[%s6523_s19 + $0x50] sm:$0xff] }
  0x19   : > { %3456 = vmatpush1.bf16.msra.mxu1 %v1374_v11  ;;  %v6565_v30 = vpack.c.bf16 %v1286_v28, %v1285_v27  ;;  %v1224_v32 = vld [vmem:[%s6523_s19 + $0x58] sm:$0xff]  ;;  %v1287_v33 = vld [vmem:[%s6523_s19 + $0x250] sm:$0xff]  ;;  %v1225_v37 = vld [vmem:[%s6523_s19 + $0x60] sm:$0xff]  ;;  %v659_v25 = vsub.s32 1, %v6629_v13  ;;  %v671_v26 = vsub.s32 4, %v6629_v13  ;;  %v675_v27 = vsub.s32 5, %v6629_v13 }
  0x1a   : > { %4162 = vmatpush1.bf16.msra.mxu0 %v6537_v12  ;;  %3457 = vmatprep.subr.bf16.mxu1 %v6476_v0  ;;  %v1288_v34 = vld [vmem:[%s6523_s19 + $0x258] sm:$0xff]  ;;  %v1378_v35 = vpack.c.bf16 %v1224_v32, %v1223_v31  ;;  %v1226_v38 = vld [vmem:[%s6523_s19 + $0x68] sm:$0xff]  ;;  %v1289_v39 = vld [vmem:[%s6523_s19 + $0x260] sm:$0xff] }
  0x1b   : > { %4163 = vmatprep.subr.bf16.mxu0 %v6476_v0  ;;  %v6579_v36 = vpack.c.bf16 %v1288_v34, %v1287_v33  ;;  %v1290_v40 = vld [vmem:[%s6523_s19 + $0x268] sm:$0xff]  ;;  %v237_v41 = vld [vmem:[%s6575_s23] sm:$0xff]  ;;  %v1379_v43 = vpack.c.bf16 %v1226_v38, %v1225_v37  ;;  %v1227_v45 = vld [vmem:[%s6523_s19 + $0x70] sm:$0xff] }
  0x1c   : > { %v5415_v42 = vmul.f32 -1.442695, %v237_v41  ;;  %v6589_v44 = vpack.c.bf16 %v1290_v40, %v1289_v39  ;;  %v1228_v46 = vld [vmem:[%s6523_s19 + $0x78] sm:$0xff]  ;;  %v1291_v47 = vld [vmem:[%s6523_s19 + $0x270] sm:$0xff]  ;;  %v1229_v51 = vld [vmem:[%s6523_s19 + $0x80] sm:$0xff] }
  0x1d   : > { %3458 = vmatpush1.bf16.msra.mxu1 %v1375_v17  ;;  %v1292_v48 = vld [vmem:[%s6523_s19 + $0x278] sm:$0xff]  ;;  %v1380_v49 = vpack.c.bf16 %v1228_v46, %v1227_v45  ;;  %v1230_v52 = vld [vmem:[%s6523_s19 + $0x88] sm:$0xff]  ;;  %v1293_v53 = vld [vmem:[%s6523_s19 + $0x280] sm:$0xff] }
  0x1e   : > { %4164 = vmatpush1.bf16.msra.mxu0 %v6546_v18  ;;  %3459 = vmatprep.subr.bf16.mxu1 %v6476_v0  ;;  %6444 = vpow2.f32 %v5415_v42  ;;  %v6598_v50 = vpack.c.bf16 %v1292_v48, %v1291_v47  ;;  %v1294_v54 = vld [vmem:[%s6523_s19 + $0x288] sm:$0xff]  ;;  %v1381_v55 = vpack.c.bf16 %v1230_v52, %v1229_v51  ;;  %v1231_v57 = vld [vmem:[%s6523_s19 + $0x90] sm:$0xff]  ;;  %v1232_v58 = vld [vmem:[%s6523_s19 + $0x98] sm:$0xff] }
  0x1f   : > { %4165 = vmatprep.subr.bf16.mxu0 %v6476_v0  ;;  %v6607_v56 = vpack.c.bf16 %v1294_v54, %v1293_v53  ;;  %v1295_v59 = vld [vmem:[%s6523_s19 + $0x290] sm:$0xff]  ;;  %v1296_v60 = vld [vmem:[%s6523_s19 + $0x298] sm:$0xff]  ;;  %v1382_v62 = vpack.c.bf16 %v1232_v58, %v1231_v57  ;;  %v1233_v2 = vld [vmem:[%s6523_s19 + $0xa0] sm:$0xff] }
  0x20   : > { %v6616_v1 = vpack.c.bf16 %v1296_v60, %v1295_v59  ;;  %v1234_v3 = vld [vmem:[%s6523_s19 + $0xa8] sm:$0xff]  ;;  %v1297_v5 = vld [vmem:[%s6523_s19 + $0x2a0] sm:$0xff]  ;;  %v1235_v10 = vld [vmem:[%s6523_s19 + $0xb0] sm:$0xff] }
  0x21   : > { %3460 = vmatpush1.bf16.msra.mxu1 %v1376_v23  ;;  %v1298_v6 = vld [vmem:[%s6523_s19 + $0x2a8] sm:$0xff]  ;;  %v1383_v7 = vpack.c.bf16 %v1234_v3, %v1233_v2  ;;  %v1236_v11 = vld [vmem:[%s6523_s19 + $0xb8] sm:$0xff]  ;;  %v1299_v14 = vld [vmem:[%s6523_s19 + $0x2b0] sm:$0xff]  ;;  %v6643_v23 = vsub.s32 0, %v6629_v13 }
  0x22   : > { %4166 = vmatpush1.bf16.msra.mxu0 %v6555_v24  ;;  %3461 = vmatprep.subr.bf16.mxu1 %v6476_v0  ;;  %v6625_v9 = vpack.c.bf16 %v1298_v6, %v1297_v5  ;;  %v1300_v15 = vld [vmem:[%s6523_s19 + $0x2b8] sm:$0xff]  ;;  %v1384_v16 = vpack.c.bf16 %v1236_v11, %v1235_v10  ;;  %v1237_v17 = vld [vmem:[%s6523_s19 + $0xc0] sm:$0xff]  ;;  %v1238_v20 = vld [vmem:[%s6523_s19 + $0xc8] sm:$0xff] }
  0x23   : > { %4167 = vmatprep.subr.bf16.mxu0 %v6476_v0  ;;  %v6637_v19 = vpack.c.bf16 %v1300_v15, %v1299_v14  ;;  %v1301_v21 = vld [vmem:[%s6523_s19 + $0x2c0] sm:$0xff]  ;;  %v1302_v22 = vld [vmem:[%s6523_s19 + $0x2c8] sm:$0xff]  ;;  %v1239_v32 = vld [vmem:[%s6523_s19 + $0xd0] sm:$0xff] }
  0x24   : > { %v6651_v31 = vpack.c.bf16 %v1302_v22, %v1301_v21  ;;  %v1240_v33 = vld [vmem:[%s6523_s19 + $0xd8] sm:$0xff]  ;;  %v1303_v34 = vld [vmem:[%s6523_s19 + $0x2d0] sm:$0xff]  ;;  %v1241_v48 = vld [vmem:[%s6523_s19 + $0xe0] sm:$0xff] }
  0x25   : > { %3462 = vmatpush1.bf16.msra.mxu1 %v1377_v29  ;;  %v1385_v29 = vpack.c.bf16 %v1238_v20, %v1237_v17  ;;  %v1386_v45 = vpack.c.bf16 %v1240_v33, %v1239_v32  ;;  %v1305_v54 = vld [vmem:[%s6523_s19 + $0x2e0] sm:$0xff]  ;;  %v256_v59 = vld [vmem:[%s8816_s2 + $0x28] sm:$0xff]  ;;  %v1243_v2 = vld [vmem:[%s6523_s19 + $0xf0] sm:$0xff] }
  0x26   : > { %4168 = vmatpush1.bf16.msra.mxu0 %v6565_v30  ;;  %3463 = vmatprep.subr.bf16.mxu1 %v6476_v0  ;;  %v251_v58 = vld [vmem:[%s8816_s2] sm:$0xff]  ;;  %v253_v3 = vld [vmem:[%s8816_s2 + $0x10] sm:$0xff]  ;;  %v258_v4 = vld [vmem:[%s8816_s2 + $0x38] sm:$0xff] }
  0x27   : > { %4169 = vmatprep.subr.bf16.mxu0 %v6476_v0  ;;  %v1307_v10 = vld [vmem:[%s6523_s19 + $0x2f0] sm:$0xff]  ;;  %v1308_v11 = vld [vmem:[%s6523_s19 + $0x2f8] sm:$0xff]  ;;  %v263_v22 = vld [vmem:[%s8816_s2 + $0x60] sm:$0xff] }
  0x28   : > { %v6445_v61 = vpop.eup %6444  ;;  %v266_v17 = vld [vmem:[%s8816_s2 + $0x78] sm:$0xff] }
  0x29   : > { %3464 = vmatpush1.bf16.msra.mxu1 %v1378_v35  ;;  %v245_v63 = vadd.f32 1.0, %v6445_v61  ;;  %v1304_v35 = vld [vmem:[%s6523_s19 + $0x2d8] sm:$0xff] }
  0x2a   : > { %4170 = vmatpush1.bf16.msra.mxu0 %v6579_v36  ;;  %3465 = vmatprep.subr.bf16.mxu1 %v6476_v0  ;;  %v6667_v46 = vpack.c.bf16 %v1304_v35, %v1303_v34  ;;  %v1245_v35 = vld [vmem:[%s6523_s19 + $0x100] sm:$0xff] }
  0x2b   : > { %4171 = vmatprep.subr.bf16.mxu0 %v6476_v0  ;;  %6446 = vrcp.f32 %v245_v63 }
  0x2d   : > { %3466 = vmatpush1.bf16.msra.mxu1 %v1379_v43 }
  0x2e   : > { %4172 = vmatpush1.bf16.msra.mxu0 %v6589_v44  ;;  %3467 = vmatprep.subr.bf16.mxu1 %v6476_v0 }
  0x2f   : > { %4173 = vmatprep.subr.bf16.mxu0 %v6476_v0 }
  0x31   : > { %3468 = vmatpush1.bf16.msra.mxu1 %v1380_v49  ;;  %v1242_v49 = vld [vmem:[%s6523_s19 + $0xe8] sm:$0xff] }
  0x32   : > { %4174 = vmatpush1.bf16.msra.mxu0 %v6598_v50  ;;  %3469 = vmatprep.subr.bf16.mxu1 %v6476_v0  ;;  %v1387_v63 = vpack.c.bf16 %v1242_v49, %v1241_v48 }
  0x33   : > { %4175 = vmatprep.subr.bf16.mxu0 %v6476_v0 }
  0x35   : > { %3470 = vmatpush1.bf16.msra.mxu1 %v1381_v55  ;;  %v6649_v28 = vpop.eup %6446  ;;  %v1306_v55 = vld [vmem:[%s6523_s19 + $0x2e8] sm:$0xff] }
  0x36   : > { %4176 = vmatpush1.bf16.msra.mxu0 %v6607_v56  ;;  %3471 = vmatprep.subr.bf16.mxu1 %v6476_v0  ;;  %v656_v37 = vrot.slane %v6649_v28, %v6643_v23  ;;  %v660_v38 = vrot.slane %v6649_v28, %v659_v25  ;;  %v672_v39 = vrot.slane %v6649_v28, %v671_v26  ;;  %v268_v26 = vld [vmem:[%s8816_s2 + $0x88] sm:$0xff] }
  0x37   : > { %4177 = vmatprep.subr.bf16.mxu0 %v6476_v0  ;;  %v676_v40 = vrot.slane %v6649_v28, %v675_v27  ;;  %v6695_v6 = vpack.c.bf16 %v1306_v55, %v1305_v54  ;;  %v273_v55 = vld [vmem:[%s8816_s2 + $0xb0] sm:$0xff] }
  0x38   : > { %v703_v41 = vpack.c.bf16 %v656_v37, %v656_v37  ;;  %v704_v42 = vpack.c.bf16 %v660_v38, %v660_v38  ;;  %v707_v43 = vpack.c.bf16 %v672_v39, %v672_v39  ;;  %v1246_v37 = vld [vmem:[%s6523_s19 + $0x108] sm:$0xff] }
  0x39   : > { %3472 = vmatpush1.bf16.msra.mxu1 %v1382_v62  ;;  %v708_v47 = vpack.c.bf16 %v676_v40, %v676_v40  ;;  %v1389_v49 = vpack.c.bf16 %v1246_v37, %v1245_v35  ;;  %v288_v35 = vld [vmem:[%s8816_s2 + $0x128] sm:$0xff]  ;;  %v1315_v37 = vld [vmem:[%s6523_s19 + $0x330] sm:$0xff] }
  0x3a   : > { %4178 = vmatpush1.bf16.msra.mxu0 %v6616_v1  ;;  %3473 = vmatprep.subr.bf16.mxu1 %v6476_v0  ;;  %v714_v51 = vpack.i.b16 %v703_v41, %v703_v41  ;;  %v721_v52 = vpack.i.b16 %v704_v42, %v704_v42  ;;  %v742_v53 = vpack.i.b16 %v707_v43, %v707_v43  ;;  %v1309_v41 = vld [vmem:[%s6523_s19 + $0x300] sm:$0xff]  ;;  %v1310_v42 = vld [vmem:[%s6523_s19 + $0x308] sm:$0xff] }
  0x3b   : > { %4179 = vmatprep.subr.bf16.mxu0 %v6476_v0  ;;  %v749_v57 = vpack.i.b16 %v708_v47, %v708_v47 }
  0x3c   : > { %v719_v60 = vrot.slane %v714_v51, %v6643_v23  ;;  %v726_v61 = vrot.slane %v721_v52, %v6643_v23  ;;  %v747_v62 = vrot.slane %v742_v53, %v6643_v23  ;;  %v271_v51 = vld [vmem:[%s8816_s2 + $0xa0] sm:$0xff]  ;;  %v276_v52 = vld [vmem:[%s8816_s2 + $0xc8] sm:$0xff]  ;;  %v1421_v53 = vpack.c.bf16 %v1310_v42, %v1309_v41  ;;  %v1252_v41 = vld [vmem:[%s6523_s19 + $0x138] sm:$0xff] }
  0x3d   : > { %3474 = vmatpush1.bf16.msra.mxu1 %v1383_v7  ;;  %v754_v5 = vrot.slane %v749_v57, %v6643_v23  ;;  %v1244_v7 = vld [vmem:[%s6523_s19 + $0xf8] sm:$0xff]  ;;  %v1247_v57 = vld [vmem:[%s6523_s19 + $0x110] sm:$0xff] }
  0x3e   : > { %4180 = vmatpush1.bf16.msra.mxu0 %v6625_v9  ;;  %3475 = vmatprep.subr.bf16.mxu1 %v6476_v0  ;;  %v6700_v14 = vcombine.low %v719_v60, %v726_v61  ;;  %v1388_v27 = vpack.c.bf16 %v1244_v7, %v1243_v2  ;;  %v1311_v60 = vld [vmem:[%s6523_s19 + $0x310] sm:$0xff]  ;;  %v1312_v61 = vld [vmem:[%s6523_s19 + $0x318] sm:$0xff] }
  0x3f   : > { %4181 = vmatprep.subr.bf16.mxu0 %v6476_v0  ;;  %v6703_v15 = vcombine.low %v747_v62, %v754_v5  ;;  %v278_v62 = vld [vmem:[%s8816_s2 + $0xd8] sm:$0xff] }
  0x40   : > { %v813_v20 = vmul.bf16 %v6700_v14, %v251_v58  ;;  %v818_v21 = vmul.bf16 %v6700_v14, %v256_v59  ;;  %v828_v39 = vmul.bf16 %v6700_v14, %v266_v17  ;;  %v1248_v58 = vld [vmem:[%s6523_s19 + $0x118] sm:$0xff]  ;;  %v6757_v2 = vmul.bf16 %v6700_v14, %v276_v52  ;;  %v1249_v17 = vld [vmem:[%s6523_s19 + $0x120] sm:$0xff] }
  0x41   : > { %3476 = vmatpush1.bf16.msra.mxu1 %v1384_v16  ;;  %v261_v16 = vld [vmem:[%s8816_s2 + $0x50] sm:$0xff]  ;;  %v815_v32 = vmul.bf16 %v6703_v15, %v253_v3  ;;  %v820_v33 = vmul.bf16 %v6703_v15, %v258_v4  ;;  %v825_v43 = vmul.bf16 %v6703_v15, %v263_v22  ;;  %v1390_v3 = vpack.c.bf16 %v1248_v58, %v1247_v57 }
  0x42   : > { %4182 = vmatpush1.bf16.msra.mxu0 %v6637_v19  ;;  %3477 = vmatprep.subr.bf16.mxu1 %v6476_v0  ;;  %v5423_v34 = vcombine.high %v813_v20, %v818_v21  ;;  %v823_v38 = vmul.bf16 %v6700_v14, %v261_v16  ;;  %v5422_v47 = vcombine.low %v813_v20, %v818_v21  ;;  %v1250_v20 = vld [vmem:[%s6523_s19 + $0x128] sm:$0xff] }
  0x43   : > { %4183 = vmatprep.subr.bf16.mxu0 %v6476_v0  ;;  %v5427_v40 = vcombine.high %v815_v32, %v820_v33  ;;  %v5426_v48 = vcombine.low %v815_v32, %v820_v33  ;;  %v1422_v4 = vpack.c.bf16 %v1312_v61, %v1311_v60  ;;  %v6760_v5 = vmul.bf16 %v6703_v15, %v273_v55  ;;  %v281_v32 = vld [vmem:[%s8816_s2 + $0xf0] sm:$0xff]  ;;  %v286_v33 = vld [vmem:[%s8816_s2 + $0x118] sm:$0xff]  ;;  %v1254_v55 = vld [vmem:[%s6523_s19 + $0x148] sm:$0xff] }
  0x44   : > { %3485 = vmatprep.mubr.bf16.mxu1 %v5423_v34  ;;  %v5433_v54 = vcombine.high %v823_v38, %v828_v39  ;;  %v6763_v7 = vmul.bf16 %v6703_v15, %v278_v62  ;;  %v5432_v16 = vcombine.low %v823_v38, %v828_v39  ;;  %v283_v34 = vld [vmem:[%s8816_s2 + $0x100] sm:$0xff]  ;;  %v1316_v38 = vld [vmem:[%s6523_s19 + $0x338] sm:$0xff]  ;;  %v1391_v39 = vpack.c.bf16 %v1250_v20, %v1249_v17  ;;  %v296_v61 = vld [vmem:[%s8816_s2 + $0x168] sm:$0xff] }
  0x45   : > { %3478 = vmatpush1.bf16.msra.mxu1 %v1385_v29  ;;  %v6719_v29 = vpack.c.bf16 %v1308_v11, %v1307_v10  ;;  %4191 = vmatprep.mubr.bf16.mxu0 %v5427_v40  ;;  %v1313_v10 = vld [vmem:[%s6523_s19 + $0x320] sm:$0xff]  ;;  %v1314_v11 = vld [vmem:[%s6523_s19 + $0x328] sm:$0xff]  ;;  %v1251_v40 = vld [vmem:[%s6523_s19 + $0x130] sm:$0xff]  ;;  %v6794_v42 = vmul.bf16 %v6700_v14, %v281_v32 }
  0x46   : > { %4184 = vmatpush1.bf16.msra.mxu0 %v6651_v31  ;;  %3479 = vmatprep.subr.bf16.mxu1 %v6476_v0  ;;  %v1392_v52 = vpack.c.bf16 %v1252_v41, %v1251_v40  ;;  %v5446_v57 = vcombine.low %v6760_v5, %v6763_v7  ;;  %v291_v60 = vld [vmem:[%s8816_s2 + $0x140] sm:$0xff]  ;;  %v293_v62 = vld [vmem:[%s8816_s2 + $0x150] sm:$0xff]  ;;  %v308_v41 = vld [vmem:[%s8816_s2 + $0x1c8] sm:$0xff] }
  0x47   : > { %4185 = vmatprep.subr.bf16.mxu0 %v6476_v0  ;;  %v855_v17 = vmul.bf16 %v6703_v15, %v293_v62  ;;  %v316_v62 = vld [vmem:[%s8816_s2 + $0x208] sm:$0xff] }
  0x49   : > { %3480 = vmatpush1.bf16.msra.mxu1 %v1386_v45  ;;  %v830_v45 = vmul.bf16 %v6703_v15, %v268_v26  ;;  %v5447_v26 = vcombine.high %v6760_v5, %v6763_v7  ;;  %v1255_v7 = vld [vmem:[%s6523_s19 + $0x150] sm:$0xff] }
  0x4a   : > { %4186 = vmatpush1.bf16.msra.mxu0 %v6667_v46  ;;  %3481 = vmatprep.subr.bf16.mxu1 %v6476_v0 }
  0x4b   : > { %4187 = vmatprep.subr.bf16.mxu0 %v6476_v0  ;;  %v5437_v59 = vcombine.high %v825_v43, %v830_v45  ;;  %v5436_v21 = vcombine.low %v825_v43, %v830_v45  ;;  %v848_v43 = vmul.bf16 %v6700_v14, %v286_v33  ;;  %v845_v45 = vmul.bf16 %v6703_v15, %v283_v34 }
  0x4d   : > { %3482 = vmatpush1.bf16.msra.mxu1 %v1387_v63  ;;  %v6754_v63 = vmul.bf16 %v6700_v14, %v271_v51  ;;  %v1318_v51 = vld [vmem:[%s6523_s19 + $0x348] sm:$0xff]  ;;  %v5453_v58 = vcombine.high %v6794_v42, %v848_v43  ;;  %v5452_v32 = vcombine.low %v6794_v42, %v848_v43  ;;  %v1323_v42 = vld [vmem:[%s6523_s19 + $0x370] sm:$0xff]  ;;  %v1324_v43 = vld [vmem:[%s6523_s19 + $0x378] sm:$0xff] }
  0x4e   : > { %4188 = vmatpush1.bf16.msra.mxu0 %v6695_v6  ;;  %3483 = vmatprep.subr.bf16.mxu1 %v6476_v0 }
  0x4f   : > { %4189 = vmatprep.subr.bf16.mxu0 %v6476_v0  ;;  %v5443_v22 = vcombine.high %v6754_v63, %v6757_v2 }
  0x51   : > { %3484 = vmatpush1.bf16.msra.mxu1 %v1388_v27  ;;  %v1423_v27 = vpack.c.bf16 %v1314_v11, %v1313_v10  ;;  %v1256_v10 = vld [vmem:[%s6523_s19 + $0x158] sm:$0xff]  ;;  %v853_v11 = vmul.bf16 %v6700_v14, %v291_v60 }
  0x52   : > { %4190 = vmatpush1.bf16.msra.mxu0 %v6719_v29  ;;  %3806 = vmatprep.subr.bf16.mxu1 %v6476_v0 }
  0x53   : > { %4512 = vmatprep.subr.bf16.mxu0 %v6476_v0 }
  0x54   : > { %3486 = vmatmul.mubr.bf16.vlgmr.msra.gmra.mrb[0].mxu1 %v5422_v47  ;;  %v850_v47 = vmul.bf16 %v6703_v15, %v288_v35 }
  0x55   : > { %4192 = vmatmul.mubr.bf16.vlgmr.msra.gmra.mrb[0].mxu0 %v5426_v48  ;;  %3807 = vmatpush1.bf16.msra.mxu1 %v1389_v49  ;;  %v1424_v48 = vpack.c.bf16 %v1316_v38, %v1315_v37  ;;  %v1317_v49 = vld [vmem:[%s6523_s19 + $0x340] sm:$0xff]  ;;  %v301_v37 = vld [vmem:[%s8816_s2 + $0x190] sm:$0xff]  ;;  %v306_v38 = vld [vmem:[%s8816_s2 + $0x1b8] sm:$0xff] }
  0x56   : > { %4513 = vmatpush1.bf16.msra.mxu0 %v1421_v53  ;;  %3493 = vmatprep.mubr.bf16.mxu1 %v5433_v54  ;;  %v5442_v53 = vcombine.low %v6754_v63, %v6757_v2  ;;  %v1253_v54 = vld [vmem:[%s6523_s19 + $0x140] sm:$0xff]  ;;  %v1425_v63 = vpack.c.bf16 %v1318_v51, %v1317_v49  ;;  %v298_v2 = vld [vmem:[%s8816_s2 + $0x178] sm:$0xff]  ;;  %v5456_v33 = vcombine.low %v845_v45, %v850_v47 }
  0x57   : > { %4199 = vmatprep.mubr.bf16.mxu0 %v5437_v59  ;;  %4514 = vmatprep.subr.bf16.mxu0 %v6476_v0  ;;  %v5457_v59 = vcombine.high %v845_v45, %v850_v47  ;;  %v1393_v5 = vpack.c.bf16 %v1254_v55, %v1253_v54  ;;  %v860_v20 = vmul.bf16 %v6703_v15, %v298_v2  ;;  %v1257_v45 = vld [vmem:[%s6523_s19 + $0x160] sm:$0xff]  ;;  %v1258_v47 = vld [vmem:[%s6523_s19 + $0x168] sm:$0xff]  ;;  %v313_v2 = vld [vmem:[%s8816_s2 + $0x1f0] sm:$0xff] }
  0x58   : > { %3808 = vmatprep.subr.bf16.mxu1 %v6476_v0  ;;  %v868_v49 = vmul.bf16 %v6700_v14, %v306_v38  ;;  %v1325_v54 = vld [vmem:[%s6523_s19 + $0x380] sm:$0xff]  ;;  %v1326_v55 = vld [vmem:[%s6523_s19 + $0x388] sm:$0xff] }
  0x59   : > { %3809 = vmatpush1.bf16.msra.mxu1 %v1390_v3  ;;  %v1319_v3 = vld [vmem:[%s6523_s19 + $0x350] sm:$0xff]  ;;  %v5467_v35 = vcombine.high %v855_v17, %v860_v20  ;;  %v1262_v38 = vld [vmem:[%s6523_s19 + $0x188] sm:$0xff] }
  0x5a   : > { %4515 = vmatpush1.bf16.msra.mxu0 %v1422_v4  ;;  %3810 = vmatprep.subr.bf16.mxu1 %v6476_v0  ;;  %v1320_v4 = vld [vmem:[%s6523_s19 + $0x358] sm:$0xff] }
  0x5b   : > { %4516 = vmatprep.subr.bf16.mxu0 %v6476_v0 }
  0x5c   : > { %3494 = vmatmul.mubr.bf16.gmra.mrb[4].mxu1 %v5432_v16  ;;  %v858_v16 = vmul.bf16 %v6700_v14, %v296_v61  ;;  %v311_v61 = vld [vmem:[%s8816_s2 + $0x1e0] sm:$0xff] }
  0x5d   : > { %4200 = vmatmul.mubr.bf16.gmra.mrb[4].mxu0 %v5436_v21  ;;  %3501 = vmatprep.mubr.bf16.mxu1 %v5443_v22  ;;  %v1426_v21 = vpack.c.bf16 %v1320_v4, %v1319_v3  ;;  %v1321_v22 = vld [vmem:[%s6523_s19 + $0x360] sm:$0xff]  ;;  %v1429_v3 = vpack.c.bf16 %v1326_v55, %v1325_v54  ;;  %v1259_v4 = vld [vmem:[%s6523_s19 + $0x170] sm:$0xff] }
  0x5e   : > { %4207 = vmatprep.mubr.bf16.mxu0 %v5447_v26  ;;  %4517 = vmatpush1.bf16.msra.mxu0 %v1423_v27  ;;  %v1322_v26 = vld [vmem:[%s6523_s19 + $0x368] sm:$0xff]  ;;  %v1394_v27 = vpack.c.bf16 %v1256_v10, %v1255_v7  ;;  %v5463_v34 = vcombine.high %v853_v11, %v858_v16  ;;  %v318_v7 = vld [vmem:[%s8816_s2 + $0x218] sm:$0xff]  ;;  %v1327_v10 = vld [vmem:[%s6523_s19 + $0x390] sm:$0xff] }
  0x5f   : > { %4518 = vmatprep.subr.bf16.mxu0 %v6476_v0  ;;  %3811 = vmatpush1.bf16.msra.mxu1 %v1391_v39  ;;  %v303_v39 = vld [vmem:[%s8816_s2 + $0x1a0] sm:$0xff]  ;;  %v1427_v40 = vpack.c.bf16 %v1322_v26, %v1321_v22  ;;  %v880_v22 = vmul.bf16 %v6703_v15, %v318_v7  ;;  %v1335_v7 = vld [vmem:[%s6523_s19 + $0x3d0] sm:$0xff] }
  0x60   : > { %3812 = vmatprep.subr.bf16.mxu1 %v6476_v0  ;;  %v865_v51 = vmul.bf16 %v6703_v15, %v303_v39 }
  0x62   : > { %4519 = vmatpush1.bf16.msra.mxu0 %v1424_v48  ;;  %v863_v48 = vmul.bf16 %v6700_v14, %v301_v37  ;;  %v1261_v37 = vld [vmem:[%s6523_s19 + $0x180] sm:$0xff] }
  0x63   : > { %4520 = vmatprep.subr.bf16.mxu0 %v6476_v0  ;;  %3813 = vmatpush1.bf16.msra.mxu1 %v1392_v52  ;;  %v870_v52 = vmul.bf16 %v6703_v15, %v308_v41  ;;  %v326_v41 = vld [vmem:[%s8816_s2 + $0x258] sm:$0xff] }
  0x64   : > { %3502 = vmatmul.mubr.bf16.gmra.mrb[8].mxu1 %v5442_v53  ;;  %3814 = vmatprep.subr.bf16.mxu1 %v6476_v0  ;;  %v1428_v53 = vpack.c.bf16 %v1324_v43, %v1323_v42  ;;  %v5473_v60 = vcombine.high %v863_v48, %v868_v49  ;;  %v323_v42 = vld [vmem:[%s8816_s2 + $0x240] sm:$0xff] }
  0x65   : > { %4208 = vmatmul.mubr.bf16.gmra.mrb[8].mxu0 %v5446_v57  ;;  %3509 = vmatprep.mubr.bf16.mxu1 %v5453_v58  ;;  %v1395_v57 = vpack.c.bf16 %v1258_v47, %v1257_v45  ;;  %v5462_v58 = vcombine.low %v853_v11, %v858_v16  ;;  %v1328_v11 = vld [vmem:[%s6523_s19 + $0x398] sm:$0xff]  ;;  %v873_v16 = vmul.bf16 %v6700_v14, %v311_v61  ;;  %v328_v45 = vld [vmem:[%s8816_s2 + $0x268] sm:$0xff]  ;;  %v1331_v47 = vld [vmem:[%s6523_s19 + $0x3b0] sm:$0xff] }
  0x66   : > { %4215 = vmatprep.mubr.bf16.mxu0 %v5457_v59  ;;  %4521 = vmatpush1.bf16.msra.mxu0 %v1425_v63  ;;  %v5466_v59 = vcombine.low %v855_v17, %v860_v20  ;;  %v5477_v63 = vcombine.high %v865_v51, %v870_v52  ;;  %v878_v17 = vmul.bf16 %v6700_v14, %v316_v62 }
  0x67   : > { %4522 = vmatprep.subr.bf16.mxu0 %v6476_v0  ;;  %3815 = vmatpush1.bf16.msra.mxu1 %v1393_v5  ;;  %v1260_v5 = vld [vmem:[%s6523_s19 + $0x178] sm:$0xff]  ;;  %v1430_v26 = vpack.c.bf16 %v1328_v11, %v1327_v10  ;;  %v890_v54 = vmul.bf16 %v6703_v15, %v328_v45  ;;  %v1339_v45 = vld [vmem:[%s6523_s19 + $0x3f0] sm:$0xff] }
  0x68   : > { %3816 = vmatprep.subr.bf16.mxu1 %v6476_v0  ;;  %v1396_v20 = vpack.c.bf16 %v1260_v5, %v1259_v4  ;;  %v338_v5 = vld [vmem:[%s8816_s2 + $0x2b8] sm:$0xff] }
  0x69   : > { %v1336_v10 = vld [vmem:[%s6523_s19 + $0x3d8] sm:$0xff] }
  0x6a   : > { %4523 = vmatpush1.bf16.msra.mxu0 %v1426_v21  ;;  %v875_v21 = vmul.bf16 %v6703_v15, %v313_v2  ;;  %v336_v2 = vld [vmem:[%s8816_s2 + $0x2a8] sm:$0xff] }
  0x6b   : > { %4524 = vmatprep.subr.bf16.mxu0 %v6476_v0  ;;  %3817 = vmatpush1.bf16.msra.mxu1 %v1394_v27  ;;  %v1329_v27 = vld [vmem:[%s6523_s19 + $0x3a0] sm:$0xff] }
  0x6c   : > { %3510 = vmatmul.mubr.bf16.gmra.mrb[12].mxu1 %v5452_v32  ;;  %3818 = vmatprep.subr.bf16.mxu1 %v6476_v0  ;;  %v1330_v32 = vld [vmem:[%s6523_s19 + $0x3a8] sm:$0xff]  ;;  %v5487_v39 = vcombine.high %v875_v21, %v880_v22 }
  0x6d   : > { %4216 = vmatmul.mubr.bf16.gmra.mrb[12].mxu0 %v5456_v33  ;;  %3517 = vmatprep.mubr.bf16.mxu1 %v5463_v34  ;;  %v5472_v33 = vcombine.low %v863_v48, %v868_v49  ;;  %v5476_v34 = vcombine.low %v865_v51, %v870_v52  ;;  %v1431_v43 = vpack.c.bf16 %v1330_v32, %v1329_v27  ;;  %v1332_v48 = vld [vmem:[%s6523_s19 + $0x3b8] sm:$0xff]  ;;  %v1337_v27 = vld [vmem:[%s6523_s19 + $0x3e0] sm:$0xff]  ;;  %v1338_v32 = vld [vmem:[%s6523_s19 + $0x3e8] sm:$0xff] }
  0x6e   : > { %4223 = vmatprep.mubr.bf16.mxu0 %v5467_v35  ;;  %4525 = vmatpush1.bf16.msra.mxu0 %v1427_v40  ;;  %v5483_v35 = vcombine.high %v873_v16, %v878_v17  ;;  %v321_v40 = vld [vmem:[%s8816_s2 + $0x230] sm:$0xff]  ;;  %v1397_v49 = vpack.c.bf16 %v1262_v38, %v1261_v37  ;;  %v888_v52 = vmul.bf16 %v6700_v14, %v326_v41  ;;  %v343_v41 = vld [vmem:[%s8816_s2 + $0x2e0] sm:$0xff] }
  0x6f   : > { %4526 = vmatprep.subr.bf16.mxu0 %v6476_v0  ;;  %3819 = vmatpush1.bf16.msra.mxu1 %v1395_v57  ;;  %v883_v51 = vmul.bf16 %v6700_v14, %v321_v40  ;;  %v1432_v55 = vpack.c.bf16 %v1332_v48, %v1331_v47  ;;  %v1333_v57 = vld [vmem:[%s6523_s19 + $0x3c0] sm:$0xff]  ;;  %v346_v40 = vld [vmem:[%s8816_s2 + $0x2f8] sm:$0xff] }
  0x70   : > { %3820 = vmatprep.subr.bf16.mxu1 %v6476_v0  ;;  %v1340_v47 = vld [vmem:[%s6523_s19 + $0x3f8] sm:$0xff] }
  0x71   : > { %v5493_v61 = vcombine.high %v883_v51, %v888_v52 }
  0x72   : > { %4527 = vmatpush1.bf16.msra.mxu0 %v1428_v53  ;;  %v885_v53 = vmul.bf16 %v6703_v15, %v323_v42  ;;  %v1435_v42 = vpack.c.bf16 %v1338_v32, %v1337_v27  ;;  %v1265_v27 = vld [vmem:[%s6523_s19 + $0x1a0] sm:$0xff]  ;;  %v1266_v32 = vld [vmem:[%s6523_s19 + $0x1a8] sm:$0xff] }
  0x73   : > { %4528 = vmatprep.subr.bf16.mxu0 %v6476_v0  ;;  %3821 = vmatpush1.bf16.msra.mxu1 %v1396_v20  ;;  %v1264_v20 = vld [vmem:[%s6523_s19 + $0x198] sm:$0xff] }
  0x74   : > { %3518 = vmatmul.mubr.bf16.gmra.mrb[16].mxu1 %v5462_v58  ;;  %3822 = vmatprep.subr.bf16.mxu1 %v6476_v0  ;;  %v1334_v58 = vld [vmem:[%s6523_s19 + $0x3c8] sm:$0xff]  ;;  %v5497_v62 = vcombine.high %v885_v53, %v890_v54 }
  0x75   : > { %4224 = vmatmul.mubr.bf16.gmra.mrb[16].mxu0 %v5466_v59  ;;  %3525 = vmatprep.mubr.bf16.mxu1 %v5473_v60  ;;  %v5482_v59 = vcombine.low %v873_v16, %v878_v17  ;;  %v5486_v60 = vcombine.low %v875_v21, %v880_v22  ;;  %v1433_v4 = vpack.c.bf16 %v1334_v58, %v1333_v57  ;;  %v1263_v17 = vld [vmem:[%s6523_s19 + $0x190] sm:$0xff] }
  0x76   : > { %4231 = vmatprep.mubr.bf16.mxu0 %v5477_v63  ;;  %4529 = vmatpush1.bf16.msra.mxu0 %v1429_v3  ;;  %v331_v63 = vld [vmem:[%s8816_s2 + $0x280] sm:$0xff]  ;;  %v333_v3 = vld [vmem:[%s8816_s2 + $0x290] sm:$0xff]  ;;  %v898_v16 = vmul.bf16 %v6700_v14, %v336_v2  ;;  %v900_v22 = vmul.bf16 %v6703_v15, %v338_v5 }
  0x77   : > { %4530 = vmatprep.subr.bf16.mxu0 %v6476_v0  ;;  %3823 = vmatpush1.bf16.msra.mxu1 %v1397_v49  ;;  %v893_v11 = vmul.bf16 %v6700_v14, %v331_v63  ;;  %v895_v21 = vmul.bf16 %v6703_v15, %v333_v3  ;;  %v908_v49 = vmul.bf16 %v6700_v14, %v346_v40 }
  0x78   : > { %3824 = vmatprep.subr.bf16.mxu1 %v6476_v0 }
  0x79   : > { %v5503_v37 = vcombine.high %v893_v11, %v898_v16  ;;  %v5507_v38 = vcombine.high %v895_v21, %v900_v22 }
  0x7a   : > { %4531 = vmatpush1.bf16.msra.mxu0 %v1430_v26  ;;  %v1434_v26 = vpack.c.bf16 %v1336_v10, %v1335_v7 }
  0x7b   : > { %4532 = vmatprep.subr.bf16.mxu0 %v6476_v0 }
  0x7c   : > { %3526 = vmatmul.mubr.bf16.gmra.mrb[20].mxu1 %v5472_v33  ;;  %v1398_v33 = vpack.c.bf16 %v1264_v20, %v1263_v17  ;;  %v366_v17 = vld [vmem:[%s8816_s2 + $0x398] sm:$0xff]  ;;  %v363_v20 = vld [vmem:[%s8816_s2 + $0x380] sm:$0xff] }
  0x7d   : > { %4232 = vmatmul.mubr.bf16.gmra.mrb[20].mxu0 %v5476_v34  ;;  %3533 = vmatprep.mubr.bf16.mxu1 %v5483_v35  ;;  %v5492_v34 = vcombine.low %v883_v51, %v888_v52  ;;  %v5496_v35 = vcombine.low %v885_v53, %v890_v54  ;;  %v905_v51 = vmul.bf16 %v6703_v15, %v343_v41  ;;  %v371_v41 = vld [vmem:[%s8816_s2 + $0x3c0] sm:$0xff] }
  0x7e   : > { %4239 = vmatprep.mubr.bf16.mxu0 %v5487_v39  ;;  %4533 = vmatpush1.bf16.msra.mxu0 %v1431_v43  ;;  %v341_v39 = vld [vmem:[%s8816_s2 + $0x2d0] sm:$0xff]  ;;  %v348_v43 = vld [vmem:[%s8816_s2 + $0x308] sm:$0xff]  ;;  %v1436_v53 = vpack.c.bf16 %v1340_v47, %v1339_v45  ;;  %v5502_v54 = vcombine.low %v893_v11, %v898_v16  ;;  %v378_v45 = vld [vmem:[%s8816_s2 + $0x3f8] sm:$0xff]  ;;  %v933_v47 = vmul.bf16 %v6700_v14, %v371_v41 }
  0x7f   : > { %4534 = vmatprep.subr.bf16.mxu0 %v6476_v0  ;;  %3825 = vmatpush1.bf16.msra.mxu1 %v1398_v33  ;;  %v903_v48 = vmul.bf16 %v6700_v14, %v341_v39  ;;  %v910_v52 = vmul.bf16 %v6703_v15, %v348_v43  ;;  %v361_v16 = vld [vmem:[%s8816_s2 + $0x370] sm:$0xff]  ;;  %v925_v33 = vmul.bf16 %v6703_v15, %v363_v20  ;;  %v396_v20 = vld [vmem:[%s8816_s2 + $0x488] sm:$0xff]  ;;  %v403_v41 = vld [vmem:[%s8816_s2 + $0x4c0] sm:$0xff] }
  0x80   : > { %3826 = vmatprep.subr.bf16.mxu1 %v6476_v0  ;;  %v373_v43 = vld [vmem:[%s8816_s2 + $0x3d0] sm:$0xff] }
  0x81   : > { %v5513_v57 = vcombine.high %v903_v48, %v908_v49  ;;  %v5517_v58 = vcombine.high %v905_v51, %v910_v52  ;;  %v5512_v5 = vcombine.low %v903_v48, %v908_v49  ;;  %v5516_v7 = vcombine.low %v905_v51, %v910_v52 }
  0x82   : > { %4535 = vmatpush1.bf16.msra.mxu0 %v1432_v55  ;;  %v5506_v55 = vcombine.low %v895_v21, %v900_v22  ;;  %v368_v21 = vld [vmem:[%s8816_s2 + $0x3a8] sm:$0xff]  ;;  %v923_v22 = vmul.bf16 %v6700_v14, %v361_v16  ;;  %v935_v49 = vmul.bf16 %v6703_v15, %v373_v43  ;;  %v940_v51 = vmul.bf16 %v6703_v15, %v378_v45 }
  0x83   : > { %4536 = vmatprep.subr.bf16.mxu0 %v6476_v0 }
  0x84   : > { %3534 = vmatmul.mubr.bf16.gmra.mrb[24].mxu1 %v5482_v59  ;;  %v351_v59 = vld [vmem:[%s8816_s2 + $0x320] sm:$0xff] }
  0x85   : > { %4240 = vmatmul.mubr.bf16.gmra.mrb[24].mxu0 %v5486_v60  ;;  %3541 = vmatprep.mubr.bf16.mxu1 %v5493_v61  ;;  %v356_v60 = vld [vmem:[%s8816_s2 + $0x348] sm:$0xff]  ;;  %v353_v61 = vld [vmem:[%s8816_s2 + $0x330] sm:$0xff]  ;;  %v913_v63 = vmul.bf16 %v6700_v14, %v351_v59  ;;  %v383_v59 = vld [vmem:[%s8816_s2 + $0x420] sm:$0xff] }
  0x86   : > { %4247 = vmatprep.mubr.bf16.mxu0 %v5497_v62  ;;  %4537 = vmatpush1.bf16.msra.mxu0 %v1433_v4  ;;  %v358_v62 = vld [vmem:[%s8816_s2 + $0x358] sm:$0xff]  ;;  %v918_v2 = vmul.bf16 %v6700_v14, %v356_v60  ;;  %v915_v3 = vmul.bf16 %v6703_v15, %v353_v61  ;;  %v388_v60 = vld [vmem:[%s8816_s2 + $0x448] sm:$0xff] }
  0x87   : > { %4538 = vmatprep.subr.bf16.mxu0 %v6476_v0  ;;  %v920_v4 = vmul.bf16 %v6703_v15, %v358_v62 }
  0x88   : > { %v5523_v10 = vcombine.high %v913_v63, %v918_v2 }
  0x89   : > { %v5527_v11 = vcombine.high %v915_v3, %v920_v4 }
  0x8a   : > { %4539 = vmatpush1.bf16.msra.mxu0 %v1434_v26  ;;  %v928_v26 = vmul.bf16 %v6700_v14, %v366_v17  ;;  %v391_v17 = vld [vmem:[%s8816_s2 + $0x460] sm:$0xff] }
  0x8b   : > { %4540 = vmatprep.subr.bf16.mxu0 %v6476_v0 }
  0x8c   : > { %3542 = vmatmul.mubr.bf16.gmra.mrb[28].mxu1 %v5492_v34  ;;  %v930_v34 = vmul.bf16 %v6703_v15, %v368_v21  ;;  %v5533_v39 = vcombine.high %v923_v22, %v928_v26  ;;  %v5532_v52 = vcombine.low %v923_v22, %v928_v26  ;;  %v393_v21 = vld [vmem:[%s8816_s2 + $0x470] sm:$0xff]  ;;  %v398_v22 = vld [vmem:[%s8816_s2 + $0x498] sm:$0xff]  ;;  %v953_v26 = vmul.bf16 %v6700_v14, %v391_v17  ;;  %v423_v17 = vld [vmem:[%s8816_s2 + $0x560] sm:$0xff] }
  0x8d   : > { %4248 = vmatmul.mubr.bf16.gmra.mrb[28].mxu0 %v5496_v35  ;;  %3549 = vmatprep.mubr.bf16.mxu1 %v5503_v37  ;;  %v1399_v35 = vpack.c.bf16 %v1266_v32, %v1265_v27  ;;  %v5522_v37 = vcombine.low %v913_v63, %v918_v2  ;;  %v1267_v63 = vld [vmem:[%s6523_s19 + $0x1b0] sm:$0xff]  ;;  %v1268_v2 = vld [vmem:[%s6523_s19 + $0x1b8] sm:$0xff]  ;;  %v958_v27 = vmul.bf16 %v6700_v14, %v396_v20  ;;  %v428_v20 = vld [vmem:[%s8816_s2 + $0x588] sm:$0xff] }
  0x8e   : > { %4255 = vmatprep.mubr.bf16.mxu0 %v5507_v38  ;;  %4541 = vmatpush1.bf16.msra.mxu0 %v1435_v42  ;;  %v5526_v38 = vcombine.low %v915_v3, %v920_v4  ;;  %v5537_v40 = vcombine.high %v925_v33, %v930_v34  ;;  %v376_v42 = vld [vmem:[%s8816_s2 + $0x3e8] sm:$0xff]  ;;  %v945_v3 = vmul.bf16 %v6703_v15, %v383_v59 }
  0x8f   : > { %4542 = vmatprep.subr.bf16.mxu0 %v6476_v0  ;;  %3827 = vmatpush1.bf16.msra.mxu1 %v1399_v35  ;;  %v938_v48 = vmul.bf16 %v6700_v14, %v376_v42  ;;  %v950_v4 = vmul.bf16 %v6703_v15, %v388_v60  ;;  %v955_v32 = vmul.bf16 %v6703_v15, %v393_v21  ;;  %v408_v42 = vld [vmem:[%s8816_s2 + $0x4e8] sm:$0xff] }
  0x90   : > { %3828 = vmatprep.subr.bf16.mxu1 %v6476_v0 }
  0x91   : > { %v5557_v16 = vcombine.high %v945_v3, %v950_v4  ;;  %v5556_v35 = vcombine.low %v945_v3, %v950_v4 }
  0x92   : > { %4543 = vmatpush1.bf16.msra.mxu0 %v1436_v53  ;;  %v5536_v53 = vcombine.low %v925_v33, %v930_v34  ;;  %v960_v33 = vmul.bf16 %v6703_v15, %v398_v22 }
  0x93   : > { %4865 = vmatprep.subr.bf16.mxu0 %v6476_v0 }
  0x94   : > { %3550 = vmatmul.mubr.bf16.gmra.mrb[32].mxu1 %v5502_v54  ;;  %v5543_v54 = vcombine.high %v933_v47, %v938_v48 }
  0x95   : > { %4256 = vmatmul.mubr.bf16.gmra.mrb[32].mxu0 %v5506_v55  ;;  %3557 = vmatprep.mubr.bf16.mxu1 %v5513_v57  ;;  %v5547_v55 = vcombine.high %v935_v49, %v940_v51  ;;  %v381_v57 = vld [vmem:[%s8816_s2 + $0x410] sm:$0xff] }
  0x96   : > { %4263 = vmatprep.mubr.bf16.mxu0 %v5517_v58  ;;  %v386_v58 = vld [vmem:[%s8816_s2 + $0x438] sm:$0xff]  ;;  %v943_v61 = vmul.bf16 %v6700_v14, %v381_v57  ;;  %v413_v57 = vld [vmem:[%s8816_s2 + $0x510] sm:$0xff] }
  0x97   : > { %v948_v62 = vmul.bf16 %v6700_v14, %v386_v58  ;;  %v418_v58 = vld [vmem:[%s8816_s2 + $0x538] sm:$0xff] }
  0x99   : > { %v5552_v34 = vcombine.low %v943_v61, %v948_v62 }
  0x9c   : > { %3558 = vmatmul.mubr.bf16.gmra.mrb[36].mxu1 %v5512_v5  ;;  %v1400_v5 = vpack.c.bf16 %v1268_v2, %v1267_v63  ;;  %v975_v63 = vmul.bf16 %v6703_v15, %v413_v57  ;;  %v980_v2 = vmul.bf16 %v6703_v15, %v418_v58 }
  0x9d   : > { %4264 = vmatmul.mubr.bf16.gmra.mrb[36].mxu0 %v5516_v7  ;;  %3565 = vmatprep.mubr.bf16.mxu1 %v5523_v10  ;;  %v5542_v7 = vcombine.low %v933_v47, %v938_v48  ;;  %v5546_v10 = vcombine.low %v935_v49, %v940_v51  ;;  %v965_v47 = vmul.bf16 %v6703_v15, %v403_v41  ;;  %v433_v41 = vld [vmem:[%s8816_s2 + $0x5b0] sm:$0xff] }
  0x9e   : > { %4271 = vmatprep.mubr.bf16.mxu0 %v5527_v11  ;;  %3829 = vmatpush1.bf16.msra.mxu1 %v1400_v5  ;;  %v5553_v11 = vcombine.high %v943_v61, %v948_v62  ;;  %v970_v48 = vmul.bf16 %v6703_v15, %v408_v42  ;;  %v5562_v49 = vcombine.low %v953_v26, %v958_v27  ;;  %v1269_v61 = vld [vmem:[%s6523_s19 + $0x1c0] sm:$0xff]  ;;  %v1270_v62 = vld [vmem:[%s6523_s19 + $0x1c8] sm:$0xff] }
  0x9f   : > { %3830 = vmatprep.subr.bf16.mxu1 %v6476_v0  ;;  %v5566_v51 = vcombine.low %v955_v32, %v960_v33  ;;  %v1401_v3 = vpack.c.bf16 %v1270_v62, %v1269_v61  ;;  %v441_v62 = vld [vmem:[%s8816_s2 + $0x5f0] sm:$0xff] }
  0xa0   : > { %v5576_v5 = vcombine.low %v965_v47, %v970_v48 }
  0xa2   : > { %3831 = vmatpush1.bf16.msra.mxu1 %v1401_v3 }
  0xa3   : > { %3832 = vmatprep.subr.bf16.mxu1 %v6476_v0 }
  0xa4   : > { %3566 = vmatmul.mubr.bf16.gmra.mrb[40].mxu1 %v5522_v37  ;;  %v5563_v37 = vcombine.high %v953_v26, %v958_v27  ;;  %v985_v26 = vmul.bf16 %v6703_v15, %v423_v17  ;;  %v990_v27 = vmul.bf16 %v6703_v15, %v428_v20 }
  0xa5   : > { %4272 = vmatmul.mubr.bf16.gmra.mrb[40].mxu0 %v5526_v38  ;;  %3573 = vmatprep.mubr.bf16.mxu1 %v5533_v39  ;;  %v5567_v38 = vcombine.high %v955_v32, %v960_v33  ;;  %v401_v39 = vld [vmem:[%s8816_s2 + $0x4b0] sm:$0xff]  ;;  %v679_v32 = vsub.s32 6, %v6629_v13  ;;  %v683_v33 = vsub.s32 7, %v6629_v13 }
  0xa6   : > { %4279 = vmatprep.mubr.bf16.mxu0 %v5537_v40  ;;  %v406_v40 = vld [vmem:[%s8816_s2 + $0x4d8] sm:$0xff]  ;;  %v963_v43 = vmul.bf16 %v6700_v14, %v401_v39  ;;  %v431_v39 = vld [vmem:[%s8816_s2 + $0x5a0] sm:$0xff] }
  0xa7   : > { %v968_v45 = vmul.bf16 %v6700_v14, %v406_v40  ;;  %v436_v40 = vld [vmem:[%s8816_s2 + $0x5c8] sm:$0xff]  ;;  %v680_v42 = vrot.slane %v6649_v28, %v679_v32  ;;  %v451_v32 = vld [vmem:[%s8816_s2 + $0x640] sm:$0xff] }
  0xa9   : > { %v5572_v4 = vcombine.low %v963_v43, %v968_v45 }
  0xac   : > { %3574 = vmatmul.mubr.bf16.gmra.mrb[44].mxu1 %v5532_v52  ;;  %v5573_v52 = vcombine.high %v963_v43, %v968_v45  ;;  %v684_v43 = vrot.slane %v6649_v28, %v683_v33  ;;  %v438_v45 = vld [vmem:[%s8816_s2 + $0x5d8] sm:$0xff]  ;;  %v456_v33 = vld [vmem:[%s8816_s2 + $0x668] sm:$0xff] }
  0xad   : > { %4280 = vmatmul.mubr.bf16.gmra.mrb[44].mxu0 %v5536_v53  ;;  %3581 = vmatprep.mubr.bf16.mxu1 %v5543_v54  ;;  %v5577_v53 = vcombine.high %v965_v47, %v970_v48  ;;  %v411_v54 = vld [vmem:[%s8816_s2 + $0x500] sm:$0xff]  ;;  %v993_v47 = vmul.bf16 %v6700_v14, %v431_v39  ;;  %v998_v48 = vmul.bf16 %v6700_v14, %v436_v40 }
  0xae   : > { %4287 = vmatprep.mubr.bf16.mxu0 %v5547_v55  ;;  %v416_v55 = vld [vmem:[%s8816_s2 + $0x528] sm:$0xff]  ;;  %v973_v59 = vmul.bf16 %v6700_v14, %v411_v54  ;;  %v709_v54 = vpack.c.bf16 %v680_v42, %v680_v42  ;;  %v1018_v39 = vmul.bf16 %v6700_v14, %v456_v33  ;;  %v1345_v33 = vld [vmem:[%s6523_s19 + $0x420] sm:$0xff] }
  0xaf   : > { %v978_v60 = vmul.bf16 %v6700_v14, %v416_v55  ;;  %v710_v55 = vpack.c.bf16 %v684_v43, %v684_v43 }
  0xb1   : > { %v763_v3 = vpack.i.b16 %v710_v55, %v710_v55  ;;  %v1273_v55 = vld [vmem:[%s6523_s19 + $0x1e0] sm:$0xff] }
  0xb3   : > { %v768_v20 = vrot.slane %v763_v3, %v6643_v23 }
  0xb4   : > { %3582 = vmatmul.mubr.bf16.gmra.mrb[48].mxu1 %v5542_v7  ;;  %v5583_v7 = vcombine.high %v973_v59, %v978_v60 }
  0xb5   : > { %4288 = vmatmul.mubr.bf16.gmra.mrb[48].mxu0 %v5546_v10  ;;  %3589 = vmatprep.mubr.bf16.mxu1 %v5553_v11  ;;  %v5587_v10 = vcombine.high %v975_v63, %v980_v2  ;;  %v421_v11 = vld [vmem:[%s8816_s2 + $0x550] sm:$0xff] }
  0xb6   : > { %4295 = vmatprep.mubr.bf16.mxu0 %v5557_v16  ;;  %v426_v16 = vld [vmem:[%s8816_s2 + $0x578] sm:$0xff]  ;;  %v983_v21 = vmul.bf16 %v6700_v14, %v421_v11 }
  0xb7   : > { %v988_v22 = vmul.bf16 %v6700_v14, %v426_v16 }
  0xb9   : > { %v5592_v58 = vcombine.low %v983_v21, %v988_v22 }
  0xbc   : > { %3590 = vmatmul.mubr.bf16.gmra.mrb[52].mxu1 %v5552_v34  ;;  %v5582_v34 = vcombine.low %v973_v59, %v978_v60  ;;  %v5596_v59 = vcombine.low %v985_v26, %v990_v27  ;;  %v5603_v60 = vcombine.high %v993_v47, %v998_v48 }
  0xbd   : > { %4296 = vmatmul.mubr.bf16.gmra.mrb[52].mxu0 %v5556_v35  ;;  %3597 = vmatprep.mubr.bf16.mxu1 %v5563_v37  ;;  %v5586_v35 = vcombine.low %v975_v63, %v980_v2  ;;  %v5593_v37 = vcombine.high %v983_v21, %v988_v22  ;;  %v446_v63 = vld [vmem:[%s8816_s2 + $0x618] sm:$0xff]  ;;  %v756_v2 = vpack.i.b16 %v709_v54, %v709_v54 }
  0xbe   : > { %4303 = vmatprep.mubr.bf16.mxu0 %v5567_v38  ;;  %v5597_v38 = vcombine.high %v985_v26, %v990_v27  ;;  %v5602_v21 = vcombine.low %v993_v47, %v998_v48  ;;  %v461_v48 = vld [vmem:[%s8816_s2 + $0x690] sm:$0xff] }
  0xbf   : > { %v761_v17 = vrot.slane %v756_v2, %v6643_v23 }
  0xc4   : > { %3598 = vmatmul.mubr.bf16.gmra.mrb[56].mxu1 %v5562_v49  ;;  %v995_v49 = vmul.bf16 %v6703_v15, %v433_v41 }
  0xc5   : > { %4304 = vmatmul.mubr.bf16.gmra.mrb[56].mxu0 %v5566_v51  ;;  %3605 = vmatprep.mubr.bf16.mxu1 %v5573_v52  ;;  %v1271_v51 = vld [vmem:[%s6523_s19 + $0x1d0] sm:$0xff]  ;;  %v1272_v52 = vld [vmem:[%s6523_s19 + $0x1d8] sm:$0xff] }
  0xc6   : > { %4311 = vmatprep.mubr.bf16.mxu0 %v5577_v53  ;;  %v1000_v53 = vmul.bf16 %v6703_v15, %v438_v45  ;;  %v1402_v57 = vpack.c.bf16 %v1272_v52, %v1271_v51  ;;  %v264_v51 = vld [vmem:[%s8816_s2 + $0x68] sm:$0xff]  ;;  %v269_v52 = vld [vmem:[%s8816_s2 + $0x90] sm:$0xff] }
  0xc8   : > { %3833 = vmatpush1.bf16.msra.mxu1 %v1402_v57  ;;  %v5607_v61 = vcombine.high %v995_v49, %v1000_v53  ;;  %v5606_v22 = vcombine.low %v995_v49, %v1000_v53  ;;  %v466_v49 = vld [vmem:[%s8816_s2 + $0x6b8] sm:$0xff]  ;;  %v1023_v53 = vmul.bf16 %v6700_v14, %v461_v48  ;;  %v1274_v57 = vld [vmem:[%s6523_s19 + $0x1e8] sm:$0xff]  ;;  %v1347_v48 = vld [vmem:[%s6523_s19 + $0x430] sm:$0xff] }
  0xc9   : > { %3834 = vmatprep.subr.bf16.mxu1 %v6476_v0  ;;  %v1028_v54 = vmul.bf16 %v6700_v14, %v466_v49  ;;  %v1348_v49 = vld [vmem:[%s6523_s19 + $0x438] sm:$0xff] }
  0xcb   : > { %v5633_v3 = vcombine.high %v1023_v53, %v1028_v54 }
  0xcc   : > { %3606 = vmatmul.mubr.bf16.gmra.mrb[60].mxu1 %v5572_v4  ;;  %v443_v4 = vld [vmem:[%s8816_s2 + $0x600] sm:$0xff] }
  0xcd   : > { %4312 = vmatmul.mubr.bf16.gmra.mrb[60].mxu0 %v5576_v5  ;;  %3613 = vmatprep.mubr.bf16.mxu1 %v5583_v7  ;;  %v448_v5 = vld [vmem:[%s8816_s2 + $0x628] sm:$0xff]  ;;  %v1003_v7 = vmul.bf16 %v6700_v14, %v441_v62  ;;  %v1005_v11 = vmul.bf16 %v6703_v15, %v443_v4 }
  0xce   : > { %4319 = vmatprep.mubr.bf16.mxu0 %v5587_v10  ;;  %v1008_v10 = vmul.bf16 %v6700_v14, %v446_v63  ;;  %v1010_v16 = vmul.bf16 %v6703_v15, %v448_v5  ;;  %v1342_v62 = vld [vmem:[%s6523_s19 + $0x408] sm:$0xff] }
  0xd0   : > { %v5613_v26 = vcombine.high %v1003_v7, %v1008_v10  ;;  %v5617_v27 = vcombine.high %v1005_v11, %v1010_v16  ;;  %v5612_v42 = vcombine.low %v1003_v7, %v1008_v10  ;;  %v5616_v43 = vcombine.low %v1005_v11, %v1010_v16  ;;  %v471_v7 = vld [vmem:[%s8816_s2 + $0x6e0] sm:$0xff]  ;;  %v476_v10 = vld [vmem:[%s8816_s2 + $0x708] sm:$0xff]  ;;  %v274_v11 = vld [vmem:[%s8816_s2 + $0xb8] sm:$0xff] }
  0xd1   : > { %v279_v16 = vld [vmem:[%s8816_s2 + $0xe0] sm:$0xff] }
  0xd4   : > { %3614 = vmatmul.mubr.bf16.gmra.mrb[64].mxu1 %v5582_v34  ;;  %v7143_v34 = vcombine.low %v761_v17, %v768_v20  ;;  %v1343_v17 = vld [vmem:[%s6523_s19 + $0x410] sm:$0xff]  ;;  %v1344_v20 = vld [vmem:[%s6523_s19 + $0x418] sm:$0xff] }
  0xd5   : > { %4320 = vmatmul.mubr.bf16.gmra.mrb[64].mxu0 %v5586_v35  ;;  %3621 = vmatprep.mubr.bf16.mxu1 %v5593_v37  ;;  %v254_v35 = vld [vmem:[%s8816_s2 + $0x18] sm:$0xff]  ;;  %v259_v37 = vld [vmem:[%s8816_s2 + $0x40] sm:$0xff] }
  0xd6   : > { %4327 = vmatprep.mubr.bf16.mxu0 %v5597_v38  ;;  %v1013_v38 = vmul.bf16 %v6700_v14, %v451_v32  ;;  %v816_v40 = vmul.bf16 %v7143_v34, %v254_v35  ;;  %v821_v41 = vmul.bf16 %v7143_v34, %v259_v37  ;;  %v1438_v32 = vpack.c.bf16 %v1344_v20, %v1343_v17  ;;  %v1346_v35 = vld [vmem:[%s6523_s19 + $0x428] sm:$0xff]  ;;  %v1352_v17 = vld [vmem:[%s6523_s19 + $0x458] sm:$0xff] }
  0xd7   : > { %v5632_v37 = vcombine.low %v1023_v53, %v1028_v54  ;;  %v1275_v54 = vld [vmem:[%s6523_s19 + $0x1f0] sm:$0xff] }
  0xd8   : > { %v5623_v45 = vcombine.high %v1013_v38, %v1018_v39  ;;  %v5429_v47 = vcombine.high %v816_v40, %v821_v41  ;;  %v5622_v63 = vcombine.low %v1013_v38, %v1018_v39  ;;  %v5428_v2 = vcombine.low %v816_v40, %v821_v41  ;;  %v481_v41 = vld [vmem:[%s8816_s2 + $0x730] sm:$0xff] }
  0xdc   : > { %3622 = vmatmul.mubr.bf16.gmra.mrb[68].mxu1 %v5592_v58  ;;  %v826_v58 = vmul.bf16 %v7143_v34, %v264_v51  ;;  %v1043_v51 = vmul.bf16 %v6700_v14, %v481_v41  ;;  %v506_v41 = vld [vmem:[%s8816_s2 + $0x7f8] sm:$0xff] }
  0xdd   : > { %4328 = vmatmul.mubr.bf16.gmra.mrb[68].mxu0 %v5596_v59  ;;  %3629 = vmatprep.mubr.bf16.mxu1 %v5603_v60  ;;  %v831_v59 = vmul.bf16 %v7143_v34, %v269_v52  ;;  %v1403_v60 = vpack.c.bf16 %v1274_v57, %v1273_v55  ;;  %v1276_v55 = vld [vmem:[%s6523_s19 + $0x1f8] sm:$0xff] }
  0xde   : > { %4335 = vmatprep.mubr.bf16.mxu0 %v5607_v61  ;;  %v1341_v61 = vld [vmem:[%s6523_s19 + $0x400] sm:$0xff] }
  0xdf   : > { %3835 = vmatpush1.bf16.msra.mxu1 %v1403_v60  ;;  %v1437_v4 = vpack.c.bf16 %v1342_v62, %v1341_v61  ;;  %v5439_v5 = vcombine.high %v826_v58, %v831_v59  ;;  %v5438_v38 = vcombine.low %v826_v58, %v831_v59  ;;  %v1440_v58 = vpack.c.bf16 %v1348_v49, %v1347_v48  ;;  %v1349_v60 = vld [vmem:[%s6523_s19 + $0x440] sm:$0xff]  ;;  %v1350_v61 = vld [vmem:[%s6523_s19 + $0x448] sm:$0xff]  ;;  %v1356_v48 = vld [vmem:[%s6523_s19 + $0x478] sm:$0xff] }
  0xe0   : > { %3836 = vmatprep.subr.bf16.mxu1 %v6476_v0  ;;  %v1404_v59 = vpack.c.bf16 %v1276_v55, %v1275_v54 }
  0xe3   : > { %3837 = vmatpush1.bf16.msra.mxu1 %v1404_v59 }
  0xe4   : > { %3630 = vmatmul.mubr.bf16.gmra.mrb[72].mxu1 %v5602_v21  ;;  %v1033_v21 = vmul.bf16 %v6700_v14, %v471_v7  ;;  %5824 = vmatprep.subr.bf16.mxu1 %v6476_v0  ;;  %v294_v7 = vld [vmem:[%s8816_s2 + $0x158] sm:$0xff] }
  0xe5   : > { %4336 = vmatmul.mubr.bf16.gmra.mrb[72].mxu0 %v5606_v22  ;;  %3637 = vmatprep.mubr.bf16.mxu1 %v5613_v26  ;;  %v1038_v22 = vmul.bf16 %v6700_v14, %v476_v10  ;;  %v836_v26 = vmul.bf16 %v7143_v34, %v274_v11  ;;  %v1441_v10 = vpack.c.bf16 %v1350_v61, %v1349_v60  ;;  %v299_v11 = vld [vmem:[%s8816_s2 + $0x180] sm:$0xff]  ;;  %v516_v61 = vld [vmem:[%s8816_s2 + $0x848] sm:$0xff] }
  0xe6   : > { %4343 = vmatprep.mubr.bf16.mxu0 %v5617_v27  ;;  %v841_v27 = vmul.bf16 %v7143_v34, %v279_v16  ;;  %v1351_v16 = vld [vmem:[%s6523_s19 + $0x450] sm:$0xff]  ;;  %v511_v60 = vld [vmem:[%s8816_s2 + $0x820] sm:$0xff] }
  0xe7   : > { %v5643_v39 = vcombine.high %v1033_v21, %v1038_v22  ;;  %v5642_v62 = vcombine.low %v1033_v21, %v1038_v22  ;;  %v856_v22 = vmul.bf16 %v7143_v34, %v294_v7 }
  0xe8   : > { %v5449_v40 = vcombine.high %v836_v26, %v841_v27 }
  0xec   : > { %3638 = vmatmul.mubr.bf16.gmra.mrb[76].mxu1 %v5612_v42  ;;  %v486_v42 = vld [vmem:[%s8816_s2 + $0x758] sm:$0xff] }
  0xed   : > { %4344 = vmatmul.mubr.bf16.gmra.mrb[76].mxu0 %v5616_v43  ;;  %3645 = vmatprep.mubr.bf16.mxu1 %v5623_v45  ;;  %v284_v43 = vld [vmem:[%s8816_s2 + $0x108] sm:$0xff]  ;;  %v1439_v45 = vpack.c.bf16 %v1346_v35, %v1345_v33  ;;  %v1048_v52 = vmul.bf16 %v6700_v14, %v486_v42 }
  0xee   : > { %4544 = vmatprep.mubr.bf16.mxu0 %v5429_v47  ;;  %v289_v47 = vld [vmem:[%s8816_s2 + $0x130] sm:$0xff]  ;;  %v846_v53 = vmul.bf16 %v7143_v34, %v284_v43  ;;  %v1354_v33 = vld [vmem:[%s6523_s19 + $0x468] sm:$0xff] }
  0xef   : > { %v851_v57 = vmul.bf16 %v7143_v34, %v289_v47  ;;  %v5652_v35 = vcombine.low %v1043_v51, %v1048_v52  ;;  %v304_v42 = vld [vmem:[%s8816_s2 + $0x1a8] sm:$0xff]  ;;  %v1355_v47 = vld [vmem:[%s6523_s19 + $0x470] sm:$0xff] }
  0xf0   : > { %v1444_v54 = vpack.c.bf16 %v1356_v48, %v1355_v47  ;;  %v334_v47 = vld [vmem:[%s8816_s2 + $0x298] sm:$0xff]  ;;  %v339_v48 = vld [vmem:[%s8816_s2 + $0x2c0] sm:$0xff] }
  0xf4   : > { %3646 = vmatmul.mubr.bf16.gmra.mrb[80].mxu1 %v5622_v63  ;;  %v5448_v63 = vcombine.low %v836_v26, %v841_v27  ;;  %v861_v26 = vmul.bf16 %v7143_v34, %v299_v11  ;;  %v1442_v27 = vpack.c.bf16 %v1352_v17, %v1351_v16 }
  0xf5   : > { %4545 = vmatmul.mubr.bf16.vlgmr.msra.gmra.mrb[0].mxu0 %v5428_v2  ;;  %3653 = vmatprep.mubr.bf16.mxu1 %v5633_v3  ;;  %v5653_v2 = vcombine.high %v1043_v51, %v1048_v52  ;;  %v5459_v3 = vcombine.high %v846_v53, %v851_v57  ;;  %v1068_v51 = vmul.bf16 %v6700_v14, %v506_v41 }
  0xf6   : > { %4866 = vmatpush1.bf16.msra.mxu0 %v1437_v4  ;;  %4552 = vmatprep.mubr.bf16.mxu0 %v5439_v5  ;;  %v491_v4 = vld [vmem:[%s8816_s2 + $0x780] sm:$0xff]  ;;  %v496_v5 = vld [vmem:[%s8816_s2 + $0x7a8] sm:$0xff]  ;;  %v866_v52 = vmul.bf16 %v7143_v34, %v304_v42 }
  0xf7   : > { %4867 = vmatprep.subr.bf16.mxu0 %v6476_v0  ;;  %v1053_v20 = vmul.bf16 %v6700_v14, %v491_v4  ;;  %v1058_v21 = vmul.bf16 %v6700_v14, %v496_v5  ;;  %v1357_v4 = vld [vmem:[%s6523_s19 + $0x480] sm:$0xff]  ;;  %v1358_v5 = vld [vmem:[%s6523_s19 + $0x488] sm:$0xff] }
  0xf8   : > { %v1445_v11 = vpack.c.bf16 %v1358_v5, %v1357_v4 }
  0xf9   : > { %v5662_v55 = vcombine.low %v1053_v20, %v1058_v21 }
  0xfa   : > { %4868 = vmatpush1.bf16.msra.mxu0 %v1438_v32  ;;  %v1353_v32 = vld [vmem:[%s6523_s19 + $0x460] sm:$0xff] }
  0xfb   : > { %4869 = vmatprep.subr.bf16.mxu0 %v6476_v0  ;;  %v1443_v43 = vpack.c.bf16 %v1354_v33, %v1353_v32  ;;  %v329_v32 = vld [vmem:[%s8816_s2 + $0x270] sm:$0xff] }
  0xfc   : > { %3654 = vmatmul.mubr.bf16.gmra.mrb[84].mxu1 %v5632_v37  ;;  %v5458_v37 = vcombine.low %v846_v53, %v851_v57  ;;  %v5468_v57 = vcombine.low %v856_v22, %v861_v26 }
  0xfd   : > { %4553 = vmatmul.mubr.bf16.gmra.mrb[4].mxu0 %v5438_v38  ;;  %3661 = vmatprep.mubr.bf16.mxu1 %v5643_v39  ;;  %v5663_v38 = vcombine.high %v1053_v20, %v1058_v21  ;;  %v5469_v39 = vcombine.high %v856_v22, %v861_v26  ;;  %v521_v22 = vld [vmem:[%s8816_s2 + $0x870] sm:$0xff]  ;;  %v526_v26 = vld [vmem:[%s8816_s2 + $0x898] sm:$0xff] }
  0xfe   : > { %4560 = vmatprep.mubr.bf16.mxu0 %v5449_v40  ;;  %4870 = vmatpush1.bf16.msra.mxu0 %v1439_v45  ;;  %v501_v40 = vld [vmem:[%s8816_s2 + $0x7d0] sm:$0xff]  ;;  %v1083_v33 = vmul.bf16 %v6700_v14, %v521_v22  ;;  %v556_v22 = vld [vmem:[%s8816_s2 + $0x988] sm:$0xff] }
  0xff   : > { %4871 = vmatprep.subr.bf16.mxu0 %v6476_v0  ;;  %v309_v45 = vld [vmem:[%s8816_s2 + $0x1d0] sm:$0xff]  ;;  %v1063_v49 = vmul.bf16 %v6700_v14, %v501_v40 }
 0x100   : > { %v871_v53 = vmul.bf16 %v7143_v34, %v309_v45  ;;  %v536_v45 = vld [vmem:[%s8816_s2 + $0x8e8] sm:$0xff] }
 0x101   : > { %v5672_v16 = vcombine.low %v1063_v49, %v1068_v51 }
 0x102   : > { %4872 = vmatpush1.bf16.msra.mxu0 %v1440_v58  ;;  %v5673_v58 = vcombine.high %v1063_v49, %v1068_v51  ;;  %v5479_v59 = vcombine.high %v866_v52, %v871_v53  ;;  %v5478_v17 = vcombine.low %v866_v52, %v871_v53  ;;  %v1098_v51 = vmul.bf16 %v6700_v14, %v536_v45  ;;  %v1359_v52 = vld [vmem:[%s6523_s19 + $0x490] sm:$0xff]  ;;  %v1360_v53 = vld [vmem:[%s6523_s19 + $0x498] sm:$0xff]  ;;  %v364_v45 = vld [vmem:[%s8816_s2 + $0x388] sm:$0xff] }
 0x103   : > { %4873 = vmatprep.subr.bf16.mxu0 %v6476_v0 }
 0x104   : > { %3662 = vmatmul.mubr.bf16.gmra.mrb[88].mxu1 %v5642_v62  ;;  %v314_v62 = vld [vmem:[%s8816_s2 + $0x1f8] sm:$0xff] }
 0x105   : > { %4561 = vmatmul.mubr.bf16.gmra.mrb[8].mxu0 %v5448_v63  ;;  %3669 = vmatprep.mubr.bf16.mxu1 %v5653_v2  ;;  %v319_v63 = vld [vmem:[%s8816_s2 + $0x220] sm:$0xff]  ;;  %v1073_v2 = vmul.bf16 %v6700_v14, %v511_v60  ;;  %v876_v7 = vmul.bf16 %v7143_v34, %v314_v62  ;;  %v541_v62 = vld [vmem:[%s8816_s2 + $0x910] sm:$0xff] }
 0x106   : > { %4568 = vmatprep.mubr.bf16.mxu0 %v5459_v3  ;;  %4874 = vmatpush1.bf16.msra.mxu0 %v1441_v10  ;;  %v1078_v3 = vmul.bf16 %v6700_v14, %v516_v61  ;;  %v881_v10 = vmul.bf16 %v7143_v34, %v319_v63  ;;  %v546_v63 = vld [vmem:[%s8816_s2 + $0x938] sm:$0xff]  ;;  %v1103_v4 = vmul.bf16 %v6700_v14, %v541_v62  ;;  %v576_v62 = vld [vmem:[%s8816_s2 + $0xa28] sm:$0xff] }
 0x107   : > { %4875 = vmatprep.subr.bf16.mxu0 %v6476_v0  ;;  %v1108_v5 = vmul.bf16 %v6700_v14, %v546_v63  ;;  %v374_v63 = vld [vmem:[%s8816_s2 + $0x3d8] sm:$0xff] }
 0x108   : > { %v5683_v20 = vcombine.high %v1073_v2, %v1078_v3  ;;  %v5489_v21 = vcombine.high %v876_v7, %v881_v10  ;;  %v5488_v40 = vcombine.low %v876_v7, %v881_v10 }
 0x10a   : > { %4876 = vmatpush1.bf16.msra.mxu0 %v1442_v27  ;;  %v324_v27 = vld [vmem:[%s8816_s2 + $0x248] sm:$0xff] }
 0x10b   : > { %4877 = vmatprep.subr.bf16.mxu0 %v6476_v0 }
 0x10c   : > { %3670 = vmatmul.mubr.bf16.gmra.mrb[92].mxu1 %v5652_v35  ;;  %v1088_v35 = vmul.bf16 %v6700_v14, %v526_v26  ;;  %v354_v26 = vld [vmem:[%s8816_s2 + $0x338] sm:$0xff] }
 0x10d   : > { %4569 = vmatmul.mubr.bf16.gmra.mrb[12].mxu0 %v5458_v37  ;;  %3677 = vmatprep.mubr.bf16.mxu1 %v5663_v38  ;;  %v886_v37 = vmul.bf16 %v7143_v34, %v324_v27  ;;  %v891_v38 = vmul.bf16 %v7143_v34, %v329_v32  ;;  %v359_v27 = vld [vmem:[%s8816_s2 + $0x360] sm:$0xff] }
 0x10e   : > { %4576 = vmatprep.mubr.bf16.mxu0 %v5469_v39  ;;  %4878 = vmatpush1.bf16.msra.mxu0 %v1443_v43  ;;  %v5682_v39 = vcombine.low %v1073_v2, %v1078_v3  ;;  %v5693_v41 = vcombine.high %v1083_v33, %v1088_v35  ;;  %v531_v43 = vld [vmem:[%s8816_s2 + $0x8c0] sm:$0xff]  ;;  %v344_v2 = vld [vmem:[%s8816_s2 + $0x2e8] sm:$0xff]  ;;  %v349_v3 = vld [vmem:[%s8816_s2 + $0x310] sm:$0xff] }
 0x10f   : > { %4879 = vmatprep.subr.bf16.mxu0 %v6476_v0  ;;  %v5499_v42 = vcombine.high %v886_v37, %v891_v38  ;;  %v1093_v49 = vmul.bf16 %v6700_v14, %v531_v43  ;;  %v906_v7 = vmul.bf16 %v7143_v34, %v344_v2  ;;  %v911_v10 = vmul.bf16 %v7143_v34, %v349_v3  ;;  %v566_v43 = vld [vmem:[%s8816_s2 + $0x9d8] sm:$0xff]  ;;  %v379_v2 = vld [vmem:[%s8816_s2 + $0x400] sm:$0xff] }
 0x111   : > { %v5703_v60 = vcombine.high %v1093_v49, %v1098_v51 }
 0x112   : > { %4880 = vmatpush1.bf16.msra.mxu0 %v1444_v54  ;;  %v896_v54 = vmul.bf16 %v7143_v34, %v334_v47  ;;  %v369_v47 = vld [vmem:[%s8816_s2 + $0x3b0] sm:$0xff] }
 0x113   : > { %4881 = vmatprep.subr.bf16.mxu0 %v6476_v0 }
 0x114   : > { %3678 = vmatmul.mubr.bf16.gmra.mrb[96].mxu1 %v5662_v55  ;;  %v901_v55 = vmul.bf16 %v7143_v34, %v339_v48 }
 0x115   : > { %4577 = vmatmul.mubr.bf16.gmra.mrb[16].mxu0 %v5468_v57  ;;  %3685 = vmatprep.mubr.bf16.mxu1 %v5673_v58  ;;  %v1446_v57 = vpack.c.bf16 %v1360_v53, %v1359_v52  ;;  %v5692_v58 = vcombine.low %v1083_v33, %v1088_v35  ;;  %v1118_v33 = vmul.bf16 %v6700_v14, %v556_v22  ;;  %v1362_v52 = vld [vmem:[%s6523_s19 + $0x4a8] sm:$0xff] }
 0x116   : > { %4584 = vmatprep.mubr.bf16.mxu0 %v5479_v59  ;;  %4882 = vmatpush1.bf16.msra.mxu0 %v1445_v11  ;;  %v5498_v59 = vcombine.low %v886_v37, %v891_v38  ;;  %v5509_v61 = vcombine.high %v896_v54, %v901_v55  ;;  %v5702_v11 = vcombine.low %v1093_v49, %v1098_v51  ;;  %v1361_v51 = vld [vmem:[%s6523_s19 + $0x4a0] sm:$0xff]  ;;  %v384_v22 = vld [vmem:[%s8816_s2 + $0x428] sm:$0xff] }
 0x117   : > { %4883 = vmatprep.subr.bf16.mxu0 %v6476_v0  ;;  %v916_v35 = vmul.bf16 %v7143_v34, %v354_v26  ;;  %v921_v37 = vmul.bf16 %v7143_v34, %v359_v27  ;;  %v5712_v38 = vcombine.low %v1103_v4, %v1108_v5  ;;  %v1128_v49 = vmul.bf16 %v6700_v14, %v566_v43  ;;  %v389_v26 = vld [vmem:[%s8816_s2 + $0x450] sm:$0xff] }
 0x118   : > { %v926_v53 = vmul.bf16 %v7143_v34, %v364_v45  ;;  %v591_v45 = vld [vmem:[%s8816_s2 + $0xaa0] sm:$0xff] }
 0x11a   : > { %4884 = vmatpush1.bf16.msra.mxu0 %v1446_v57 }
 0x11b   : > { %4885 = vmatprep.subr.bf16.mxu0 %v6476_v0 }
 0x11c   : > { %3686 = vmatmul.mubr.bf16.gmra.mrb[100].mxu1 %v5672_v16  ;;  %v5508_v16 = vcombine.low %v896_v54, %v901_v55  ;;  %v931_v54 = vmul.bf16 %v7143_v34, %v369_v47  ;;  %v1447_v55 = vpack.c.bf16 %v1362_v52, %v1361_v51  ;;  %v596_v47 = vld [vmem:[%s8816_s2 + $0xac8] sm:$0xff]  ;;  %v1153_v51 = vmul.bf16 %v6700_v14, %v591_v45  ;;  %v626_v45 = vld [vmem:[%s8816_s2 + $0xbb8] sm:$0xff] }
 0x11d   : > { %4585 = vmatmul.mubr.bf16.gmra.mrb[20].mxu0 %v5478_v17  ;;  %3693 = vmatprep.mubr.bf16.mxu1 %v5683_v20  ;;  %v5713_v17 = vcombine.high %v1103_v4, %v1108_v5  ;;  %v5519_v20 = vcombine.high %v906_v7, %v911_v10  ;;  %v1138_v4 = vmul.bf16 %v6700_v14, %v576_v62  ;;  %v404_v62 = vld [vmem:[%s8816_s2 + $0x4c8] sm:$0xff] }
 0x11e   : > { %4592 = vmatprep.mubr.bf16.mxu0 %v5489_v21  ;;  %v551_v21 = vld [vmem:[%s8816_s2 + $0x960] sm:$0xff]  ;;  %4886 = vmatpush1.bf16.msra.mxu0 %v1447_v55  ;;  %v936_v5 = vmul.bf16 %v7143_v34, %v374_v63  ;;  %v1158_v52 = vmul.bf16 %v6700_v14, %v596_v47  ;;  %v409_v63 = vld [vmem:[%s8816_s2 + $0x4f0] sm:$0xff]  ;;  %v424_v47 = vld [vmem:[%s8816_s2 + $0x568] sm:$0xff] }
 0x11f   : > { %v1113_v32 = vmul.bf16 %v6700_v14, %v551_v21  ;;  %4887 = vmatprep.subr.bf16.mxu0 %v6476_v0  ;;  %v586_v21 = vld [vmem:[%s8816_s2 + $0xa78] sm:$0xff] }
 0x121   : > { %v5722_v57 = vcombine.low %v1113_v32, %v1118_v33 }
 0x124   : > { %3694 = vmatmul.mubr.bf16.gmra.mrb[104].mxu1 %v5682_v39  ;;  %v5518_v39 = vcombine.low %v906_v7, %v911_v10  ;;  %v941_v7 = vmul.bf16 %v7143_v34, %v379_v2 }
 0x125   : > { %4593 = vmatmul.mubr.bf16.gmra.mrb[24].mxu0 %v5488_v40  ;;  %3701 = vmatprep.mubr.bf16.mxu1 %v5693_v41  ;;  %v5723_v40 = vcombine.high %v1113_v32, %v1118_v33  ;;  %v5529_v41 = vcombine.high %v916_v35, %v921_v37  ;;  %v1148_v32 = vmul.bf16 %v6700_v14, %v586_v21  ;;  %v1363_v33 = vld [vmem:[%s6523_s19 + $0x4b0] sm:$0xff]  ;;  %v414_v21 = vld [vmem:[%s8816_s2 + $0x518] sm:$0xff] }
 0x126   : > { %4600 = vmatprep.mubr.bf16.mxu0 %v5499_v42  ;;  %v561_v42 = vld [vmem:[%s8816_s2 + $0x9b0] sm:$0xff] }
 0x127   : > { %v1123_v48 = vmul.bf16 %v6700_v14, %v561_v42 }
 0x129   : > { %v5732_v10 = vcombine.low %v1123_v48, %v1128_v49 }
 0x12c   : > { %3702 = vmatmul.mubr.bf16.gmra.mrb[108].mxu1 %v5692_v58  ;;  %v5528_v58 = vcombine.low %v916_v35, %v921_v37  ;;  %v1364_v35 = vld [vmem:[%s6523_s19 + $0x4b8] sm:$0xff]  ;;  %v946_v37 = vmul.bf16 %v7143_v34, %v384_v22  ;;  %v419_v22 = vld [vmem:[%s8816_s2 + $0x540] sm:$0xff] }
 0x12d   : > { %4601 = vmatmul.mubr.bf16.gmra.mrb[28].mxu0 %v5498_v59  ;;  %3709 = vmatprep.mubr.bf16.mxu1 %v5703_v60  ;;  %v5733_v59 = vcombine.high %v1123_v48, %v1128_v49  ;;  %v5539_v60 = vcombine.high %v926_v53, %v931_v54  ;;  %v394_v48 = vld [vmem:[%s8816_s2 + $0x478] sm:$0xff]  ;;  %v399_v49 = vld [vmem:[%s8816_s2 + $0x4a0] sm:$0xff] }
 0x12e   : > { %4608 = vmatprep.mubr.bf16.mxu0 %v5509_v61  ;;  %v571_v61 = vld [vmem:[%s8816_s2 + $0xa00] sm:$0xff] }
 0x12f   : > { %v1133_v3 = vmul.bf16 %v6700_v14, %v571_v61  ;;  %v606_v61 = vld [vmem:[%s8816_s2 + $0xb18] sm:$0xff] }
 0x134   : > { %3710 = vmatmul.mubr.bf16.gmra.mrb[112].mxu1 %v5702_v11  ;;  %v5538_v11 = vcombine.low %v926_v53, %v931_v54  ;;  %v956_v53 = vmul.bf16 %v7143_v34, %v394_v48  ;;  %v961_v54 = vmul.bf16 %v7143_v34, %v399_v49  ;;  %v429_v48 = vld [vmem:[%s8816_s2 + $0x590] sm:$0xff] }
 0x135   : > { %4609 = vmatmul.mubr.bf16.gmra.mrb[32].mxu0 %v5508_v16  ;;  %3717 = vmatprep.mubr.bf16.mxu1 %v5713_v17  ;;  %v5743_v16 = vcombine.high %v1133_v3, %v1138_v4  ;;  %v5549_v17 = vcombine.high %v936_v5, %v941_v7 }
 0x136   : > { %4616 = vmatprep.mubr.bf16.mxu0 %v5519_v20  ;;  %v581_v20 = vld [vmem:[%s8816_s2 + $0xa50] sm:$0xff] }
 0x137   : > { %v1143_v27 = vmul.bf16 %v6700_v14, %v581_v20  ;;  %v616_v20 = vld [vmem:[%s8816_s2 + $0xb68] sm:$0xff] }
 0x139   : > { %v5753_v42 = vcombine.high %v1143_v27, %v1148_v32  ;;  %v5752_v55 = vcombine.low %v1143_v27, %v1148_v32  ;;  %v1178_v27 = vmul.bf16 %v6700_v14, %v616_v20  ;;  %v1365_v32 = vld [vmem:[%s6523_s19 + $0x4c0] sm:$0xff] }
 0x13c   : > { %3718 = vmatmul.mubr.bf16.gmra.mrb[116].mxu1 %v5712_v38  ;;  %v951_v38 = vmul.bf16 %v7143_v34, %v389_v26 }
 0x13d   : > { %4617 = vmatmul.mubr.bf16.gmra.mrb[36].mxu0 %v5518_v39  ;;  %3725 = vmatprep.mubr.bf16.mxu1 %v5723_v40  ;;  %v1448_v39 = vpack.c.bf16 %v1364_v35, %v1363_v33  ;;  %v5742_v40 = vcombine.low %v1133_v3, %v1138_v4  ;;  %v1168_v3 = vmul.bf16 %v6700_v14, %v606_v61  ;;  %v1366_v33 = vld [vmem:[%s6523_s19 + $0x4c8] sm:$0xff] }
 0x13e   : > { %4624 = vmatprep.mubr.bf16.mxu0 %v5529_v41  ;;  %v5548_v41 = vcombine.low %v936_v5, %v941_v7  ;;  %v5559_v43 = vcombine.high %v946_v37, %v951_v38  ;;  %v966_v4 = vmul.bf16 %v7143_v34, %v404_v62  ;;  %v971_v5 = vmul.bf16 %v7143_v34, %v409_v63 }
 0x13f   : > { %4888 = vmatpush1.bf16.msra.mxu0 %v1448_v39  ;;  %v5762_v7 = vcombine.low %v1153_v51, %v1158_v52  ;;  %v976_v35 = vmul.bf16 %v7143_v34, %v414_v21 }
 0x140   : > { %4889 = vmatprep.subr.bf16.mxu0 %v6476_v0 }
 0x144   : > { %3726 = vmatmul.mubr.bf16.gmra.mrb[120].mxu1 %v5722_v57  ;;  %v5558_v57 = vcombine.low %v946_v37, %v951_v38  ;;  %v981_v37 = vmul.bf16 %v7143_v34, %v419_v22  ;;  %v1449_v38 = vpack.c.bf16 %v1366_v33, %v1365_v32  ;;  %v641_v32 = vld [vmem:[%s8816_s2 + $0xc30] sm:$0xff] }
 0x145   : > { %4625 = vmatmul.mubr.bf16.gmra.mrb[40].mxu0 %v5528_v58  ;;  %3733 = vmatprep.mubr.bf16.mxu1 %v5733_v59  ;;  %v5763_v58 = vcombine.high %v1153_v51, %v1158_v52  ;;  %v5569_v59 = vcombine.high %v956_v53, %v961_v54  ;;  %v1188_v51 = vmul.bf16 %v6700_v14, %v626_v45  ;;  %v663_v52 = vsub.s32 2, %v6629_v13 }
 0x146   : > { %4632 = vmatprep.mubr.bf16.mxu0 %v5539_v60  ;;  %v601_v60 = vld [vmem:[%s8816_s2 + $0xaf0] sm:$0xff]  ;;  %4890 = vmatpush1.bf16.msra.mxu0 %v1449_v38  ;;  %v646_v38 = vld [vmem:[%s8816_s2 + $0xc58] sm:$0xff] }
 0x147   : > { %v1163_v2 = vmul.bf16 %v6700_v14, %v601_v60  ;;  %4891 = vmatprep.subr.bf16.mxu0 %v6476_v0  ;;  %v631_v60 = vld [vmem:[%s8816_s2 + $0xbe0] sm:$0xff]  ;;  %v664_v61 = vrot.slane %v6649_v28, %v663_v52 }
 0x149   : > { %v5772_v39 = vcombine.low %v1163_v2, %v1168_v3 }
 0x14c   : > { %3734 = vmatmul.mubr.bf16.gmra.mrb[124].mxu1 %v5732_v10  ;;  %v5568_v10 = vcombine.low %v956_v53, %v961_v54  ;;  %v667_v53 = vsub.s32 3, %v6629_v13  ;;  %v986_v54 = vmul.bf16 %v7143_v34, %v424_v47 }
 0x14d   : > { %4633 = vmatmul.mubr.bf16.gmra.mrb[44].mxu0 %v5538_v11  ;;  %3741 = vmatprep.mubr.bf16.mxu1 %v5743_v16  ;;  %v5773_v11 = vcombine.high %v1163_v2, %v1168_v3  ;;  %v5579_v16 = vcombine.high %v966_v4, %v971_v5  ;;  %v636_v2 = vld [vmem:[%s8816_s2 + $0xc08] sm:$0xff]  ;;  %v434_v3 = vld [vmem:[%s8816_s2 + $0x5b8] sm:$0xff] }
 0x14e   : > { %4640 = vmatprep.mubr.bf16.mxu0 %v5549_v17  ;;  %v611_v17 = vld [vmem:[%s8816_s2 + $0xb40] sm:$0xff]  ;;  %v668_v62 = vrot.slane %v6649_v28, %v667_v53  ;;  %v1198_v28 = vmul.bf16 %v6700_v14, %v636_v2 }
 0x14f   : > { %v1173_v26 = vmul.bf16 %v6700_v14, %v611_v17  ;;  %v996_v17 = vmul.bf16 %v7143_v34, %v434_v3 }
 0x154   : > { %3742 = vmatmul.mubr.bf16.gmra.mrb[128].mxu1 %v5742_v40  ;;  %v5578_v40 = vcombine.low %v966_v4, %v971_v5  ;;  %v439_v4 = vld [vmem:[%s8816_s2 + $0x5e0] sm:$0xff]  ;;  %v1193_v5 = vmul.bf16 %v6700_v14, %v631_v60 }
 0x155   : > { %4641 = vmatmul.mubr.bf16.gmra.mrb[48].mxu0 %v5548_v41  ;;  %3749 = vmatprep.mubr.bf16.mxu1 %v5753_v42  ;;  %v5783_v41 = vcombine.high %v1173_v26, %v1178_v27  ;;  %v5589_v42 = vcombine.high %v976_v35, %v981_v37  ;;  %v1001_v20 = vmul.bf16 %v7143_v34, %v439_v4 }
 0x156   : > { %4648 = vmatprep.mubr.bf16.mxu0 %v5559_v43  ;;  %v621_v43 = vld [vmem:[%s8816_s2 + $0xb90] sm:$0xff] }
 0x157   : > { %v1183_v49 = vmul.bf16 %v6700_v14, %v621_v43 }
 0x159   : > { %v5792_v22 = vcombine.low %v1183_v49, %v1188_v51 }
 0x15c   : > { %3750 = vmatmul.mubr.bf16.gmra.mrb[132].mxu1 %v5752_v55  ;;  %v991_v55 = vmul.bf16 %v7143_v34, %v429_v48 }
 0x15d   : > { %4649 = vmatmul.mubr.bf16.gmra.mrb[52].mxu0 %v5558_v57  ;;  %3757 = vmatprep.mubr.bf16.mxu1 %v5763_v58  ;;  %v5782_v57 = vcombine.low %v1173_v26, %v1178_v27  ;;  %v5588_v58 = vcombine.low %v976_v35, %v981_v37  ;;  %v5803_v27 = vcombine.high %v1193_v5, %v1198_v28 }
 0x15e   : > { %4656 = vmatprep.mubr.bf16.mxu0 %v5569_v59  ;;  %v5793_v59 = vcombine.high %v1183_v49, %v1188_v51  ;;  %v5599_v63 = vcombine.high %v986_v54, %v991_v55  ;;  %v5598_v26 = vcombine.low %v986_v54, %v991_v55  ;;  %v5609_v37 = vcombine.high %v996_v17, %v1001_v20  ;;  %v252_v55 = vld [vmem:[%s8816_s2 + $0x8] sm:$0xff] }
 0x15f   : > { %v5802_v49 = vcombine.low %v1193_v5, %v1198_v28  ;;  %v5608_v51 = vcombine.low %v996_v17, %v1001_v20  ;;  %v262_v5 = vld [vmem:[%s8816_s2 + $0x58] sm:$0xff]  ;;  %v267_v28 = vld [vmem:[%s8816_s2 + $0x80] sm:$0xff]  ;;  %v1370_v17 = vld [vmem:[%s6523_s19 + $0x4e8] sm:$0xff] }
 0x164   : > { %3758 = vmatmul.mubr.bf16.gmra.mrb[136].mxu1 %v5762_v7  ;;  %v705_v7 = vpack.c.bf16 %v664_v61, %v664_v61 }
 0x165   : > { %4657 = vmatmul.mubr.bf16.gmra.mrb[56].mxu0 %v5568_v10  ;;  %3765 = vmatprep.mubr.bf16.mxu1 %v5773_v11  ;;  %v706_v10 = vpack.c.bf16 %v668_v62, %v668_v62  ;;  %v1367_v11 = vld [vmem:[%s6523_s19 + $0x4d0] sm:$0xff] }
 0x166   : > { %4664 = vmatprep.mubr.bf16.mxu0 %v5579_v16  ;;  %v1368_v16 = vld [vmem:[%s6523_s19 + $0x4d8] sm:$0xff]  ;;  %v728_v33 = vpack.i.b16 %v705_v7, %v705_v7  ;;  %v464_v7 = vld [vmem:[%s8816_s2 + $0x6a8] sm:$0xff] }
 0x167   : > { %v1450_v21 = vpack.c.bf16 %v1368_v16, %v1367_v11  ;;  %v735_v35 = vpack.i.b16 %v706_v10, %v706_v10  ;;  %v469_v10 = vld [vmem:[%s8816_s2 + $0x6d0] sm:$0xff]  ;;  %v1369_v16 = vld [vmem:[%s6523_s19 + $0x4e0] sm:$0xff] }
 0x168   : > { %v733_v43 = vrot.slane %v728_v33, %v6643_v23 }
 0x169   : > { %4892 = vmatpush1.bf16.msra.mxu0 %v1450_v21  ;;  %v740_v45 = vrot.slane %v735_v35, %v6643_v23  ;;  %v1026_v21 = vmul.bf16 %v7143_v34, %v464_v7 }
 0x16a   : > { %4893 = vmatprep.subr.bf16.mxu0 %v6476_v0 }
 0x16b   : > { %v7513_v53 = vcombine.low %v733_v43, %v740_v45 }
 0x16c   : > { %3766 = vmatmul.mubr.bf16.gmra.mrb[140].mxu1 %v5772_v39  ;;  %v444_v39 = vld [vmem:[%s8816_s2 + $0x608] sm:$0xff] }
 0x16d   : > { %4665 = vmatmul.mubr.bf16.gmra.mrb[60].mxu0 %v5578_v40  ;;  %3773 = vmatprep.mubr.bf16.mxu1 %v5783_v41  ;;  %v449_v40 = vld [vmem:[%s8816_s2 + $0x630] sm:$0xff]  ;;  %v1203_v41 = vmul.bf16 %v6700_v14, %v641_v32  ;;  %v1006_v47 = vmul.bf16 %v7143_v34, %v444_v39  ;;  %v824_v11 = vmul.bf16 %v7513_v53, %v262_v5  ;;  %v474_v39 = vld [vmem:[%s8816_s2 + $0x6f8] sm:$0xff] }
 0x16e   : > { %4672 = vmatprep.mubr.bf16.mxu0 %v5589_v42  ;;  %v1208_v42 = vmul.bf16 %v6700_v14, %v646_v38  ;;  %v1011_v48 = vmul.bf16 %v7143_v34, %v449_v40  ;;  %v257_v14 = vld [vmem:[%s8816_s2 + $0x30] sm:$0xff]  ;;  %v829_v20 = vmul.bf16 %v7513_v53, %v267_v28  ;;  %v479_v40 = vld [vmem:[%s8816_s2 + $0x720] sm:$0xff]  ;;  %v1036_v43 = vmul.bf16 %v7143_v34, %v474_v39 }
 0x16f   : > { %v819_v60 = vmul.bf16 %v7513_v53, %v257_v14  ;;  %v277_v38 = vld [vmem:[%s8816_s2 + $0xd0] sm:$0xff]  ;;  %v1041_v45 = vmul.bf16 %v7143_v34, %v479_v40  ;;  %v499_v28 = vld [vmem:[%s8816_s2 + $0x7c0] sm:$0xff] }
 0x170   : > { %v5813_v52 = vcombine.high %v1203_v41, %v1208_v42  ;;  %v5619_v54 = vcombine.high %v1006_v47, %v1011_v48  ;;  %v5618_v2 = vcombine.low %v1006_v47, %v1011_v48  ;;  %v5435_v33 = vcombine.high %v824_v11, %v829_v20  ;;  %v297_v5 = vld [vmem:[%s8816_s2 + $0x170] sm:$0xff] }
 0x171   : > { %v5434_v47 = vcombine.low %v824_v11, %v829_v20  ;;  %v1061_v11 = vmul.bf16 %v7143_v34, %v499_v28 }
 0x174   : > { %3774 = vmatmul.mubr.bf16.gmra.mrb[144].mxu1 %v5782_v57  ;;  %v454_v57 = vld [vmem:[%s8816_s2 + $0x658] sm:$0xff] }
 0x175   : > { %4673 = vmatmul.mubr.bf16.gmra.mrb[64].mxu0 %v5588_v58  ;;  %3781 = vmatprep.mubr.bf16.mxu1 %v5793_v59  ;;  %v459_v58 = vld [vmem:[%s8816_s2 + $0x680] sm:$0xff]  ;;  %v814_v59 = vmul.bf16 %v7513_v53, %v252_v55  ;;  %v1016_v61 = vmul.bf16 %v7143_v34, %v454_v57  ;;  %v489_v55 = vld [vmem:[%s8816_s2 + $0x770] sm:$0xff] }
 0x176   : > { %4680 = vmatprep.mubr.bf16.mxu0 %v5599_v63  ;;  %v1021_v62 = vmul.bf16 %v7143_v34, %v459_v58  ;;  %v5812_v63 = vcombine.low %v1203_v41, %v1208_v42  ;;  %v839_v42 = vmul.bf16 %v7513_v53, %v277_v38  ;;  %v1371_v57 = vld [vmem:[%s6523_s19 + $0x4f0] sm:$0xff]  ;;  %v1372_v58 = vld [vmem:[%s6523_s19 + $0x4f8] sm:$0xff] }
 0x177   : > { %v5425_v3 = vcombine.high %v814_v59, %v819_v60 }
 0x178   : > { %v5629_v4 = vcombine.high %v1016_v61, %v1021_v62  ;;  %v5628_v32 = vcombine.low %v1016_v61, %v1021_v62  ;;  %v1452_v61 = vpack.c.bf16 %v1372_v58, %v1371_v57 }
 0x17c   : > { %3782 = vmatmul.mubr.bf16.gmra.mrb[148].mxu1 %v5792_v22  ;;  %v1031_v22 = vmul.bf16 %v7143_v34, %v469_v10  ;;  %v859_v10 = vmul.bf16 %v7513_v53, %v297_v5 }
 0x17d   : > { %4681 = vmatmul.mubr.bf16.gmra.mrb[68].mxu0 %v5598_v26  ;;  %3789 = vmatprep.mubr.bf16.mxu1 %v5803_v27  ;;  %v1451_v26 = vpack.c.bf16 %v1370_v17, %v1369_v16  ;;  %v5424_v27 = vcombine.low %v814_v59, %v819_v60  ;;  %v1051_v60 = vmul.bf16 %v7143_v34, %v489_v55  ;;  %v327_v55 = vld [vmem:[%s8816_s2 + $0x260] sm:$0xff] }
 0x17e   : > { %4688 = vmatprep.mubr.bf16.mxu0 %v5609_v37  ;;  %v5639_v35 = vcombine.high %v1026_v21, %v1031_v22  ;;  %v272_v37 = vld [vmem:[%s8816_s2 + $0xa8] sm:$0xff]  ;;  %v5638_v48 = vcombine.low %v1026_v21, %v1031_v22  ;;  %v302_v22 = vld [vmem:[%s8816_s2 + $0x198] sm:$0xff]  ;;  %v889_v57 = vmul.bf16 %v7513_v53, %v327_v55 }
 0x17f   : > { %4894 = vmatpush1.bf16.msra.mxu0 %v1451_v26  ;;  %v834_v41 = vmul.bf16 %v7513_v53, %v272_v37  ;;  %v307_v26 = vld [vmem:[%s8816_s2 + $0x1c0] sm:$0xff] }
 0x180   : > { %4895 = vmatprep.subr.bf16.mxu0 %v6476_v0 }
 0x181   : > { %v5444_v62 = vcombine.low %v834_v41, %v839_v42 }
 0x183   : > { %4896 = vmatpush1.bf16.msra.mxu0 %v1452_v61 }
 0x184   : > { %3790 = vmatmul.mubr.bf16.gmra.mrb[152].mxu1 %v5802_v49  ;;  %v5445_v49 = vcombine.high %v834_v41, %v839_v42  ;;  %v312_v41 = vld [vmem:[%s8816_s2 + $0x1e8] sm:$0xff]  ;;  %v317_v42 = vld [vmem:[%s8816_s2 + $0x210] sm:$0xff] }
 0x185   : > { %4689 = vmatmul.mubr.bf16.gmra.mrb[72].mxu0 %v5608_v51  ;;  %3797 = vmatprep.mubr.bf16.mxu1 %v5813_v52  ;;  %v282_v51 = vld [vmem:[%s8816_s2 + $0xf8] sm:$0xff]  ;;  %v287_v52 = vld [vmem:[%s8816_s2 + $0x120] sm:$0xff] }
 0x186   : > { %4696 = vmatprep.mubr.bf16.mxu0 %v5619_v54  ;;  %v484_v54 = vld [vmem:[%s8816_s2 + $0x748] sm:$0xff]  ;;  %v849_v14 = vmul.bf16 %v7513_v53, %v287_v52 }
 0x187   : > { %v1046_v59 = vmul.bf16 %v7143_v34, %v484_v54  ;;  %v322_v54 = vld [vmem:[%s8816_s2 + $0x238] sm:$0xff] }
 0x189   : > { %v5658_v17 = vcombine.low %v1046_v59, %v1051_v60 }
 0x18c   : > { %3798 = vmatmul.mubr.bf16.gmra.mrb[156].mxu1 %v5812_v63  ;;  %v5648_v63 = vcombine.low %v1036_v43, %v1041_v45 }
 0x18d   : > { %4697 = vmatmul.mubr.bf16.gmra.mrb[76].mxu0 %v5618_v2  ;;  %3838 = vmatprep.mubr.bf16.mxu1 %v5425_v3  ;;  %v5659_v3 = vcombine.high %v1046_v59, %v1051_v60 }
 0x18e   : > { %4704 = vmatprep.mubr.bf16.mxu0 %v5629_v4  ;;  %v292_v4 = vld [vmem:[%s8816_s2 + $0x148] sm:$0xff] }
 0x18f   : > { %v854_v7 = vmul.bf16 %v7513_v53, %v292_v4 }
 0x191   : > { %v5465_v20 = vcombine.high %v854_v7, %v859_v10  ;;  %v5464_v37 = vcombine.low %v854_v7, %v859_v10 }
 0x194   : > { %3839 = vmatmul.mubr.bf16.vlgmr.msra.gmra.mrb[0].mxu1 %v5424_v27  ;;  %v509_v27 = vld [vmem:[%s8816_s2 + $0x810] sm:$0xff] }
 0x195   : > { %4705 = vmatmul.mubr.bf16.gmra.mrb[80].mxu0 %v5628_v32  ;;  %5840 = vmatpush1.bf16.msra.mxu1 %v6531_v8  ;;  %v5649_v8 = vcombine.high %v1036_v43, %v1041_v45  ;;  %v864_v32 = vmul.bf16 %v7513_v53, %v302_v22  ;;  %v519_v43 = vld [vmem:[%s8816_s2 + $0x860] sm:$0xff]  ;;  %v874_v45 = vmul.bf16 %v7513_v53, %v312_v41 }
 0x196   : > { %3846 = vmatprep.mubr.bf16.mxu1 %v5435_v33  ;;  %4712 = vmatprep.mubr.bf16.mxu0 %v5639_v35  ;;  %v869_v33 = vmul.bf16 %v7513_v53, %v307_v26  ;;  %v1071_v35 = vmul.bf16 %v7143_v34, %v509_v27 }
 0x197   : > { %5825 = vmatprep.subr.bf16.mxu1 %v6476_v0 }
 0x198   : > { %v5475_v39 = vcombine.high %v864_v32, %v869_v33 }
 0x199   : > { %5841 = vmatpush1.bf16.msra.mxu1 %v6537_v12  ;;  %v844_v12 = vmul.bf16 %v7513_v53, %v282_v51 }
 0x19a   : > { %5826 = vmatprep.subr.bf16.mxu1 %v6476_v0 }
 0x19b   : > { %v5455_v2 = vcombine.high %v844_v12, %v849_v14  ;;  %v5454_v16 = vcombine.low %v844_v12, %v849_v14  ;;  %v529_v12 = vld [vmem:[%s8816_s2 + $0x8b0] sm:$0xff]  ;;  %v884_v14 = vmul.bf16 %v7513_v53, %v322_v54 }
 0x19c   : > { %3847 = vmatmul.mubr.bf16.gmra.mrb[4].mxu1 %v5434_v47  ;;  %v879_v47 = vmul.bf16 %v7513_v53, %v317_v42  ;;  %v1091_v58 = vmul.bf16 %v7143_v34, %v529_v12  ;;  %v377_v12 = vld [vmem:[%s8816_s2 + $0x3f0] sm:$0xff] }
 0x19d   : > { %4713 = vmatmul.mubr.bf16.gmra.mrb[84].mxu0 %v5638_v48  ;;  %3854 = vmatprep.mubr.bf16.mxu1 %v5445_v49  ;;  %v1081_v48 = vmul.bf16 %v7143_v34, %v519_v43  ;;  %v5474_v49 = vcombine.low %v864_v32, %v869_v33  ;;  %v5495_v61 = vcombine.high %v884_v14, %v889_v57  ;;  %v352_v33 = vld [vmem:[%s8816_s2 + $0x328] sm:$0xff]  ;;  %v367_v43 = vld [vmem:[%s8816_s2 + $0x3a0] sm:$0xff] }
 0x19e   : > { %4720 = vmatprep.mubr.bf16.mxu0 %v5649_v8  ;;  %5842 = vmatpush1.bf16.msra.mxu1 %v6546_v18  ;;  %v494_v18 = vld [vmem:[%s8816_s2 + $0x798] sm:$0xff]  ;;  %v5485_v51 = vcombine.high %v874_v45, %v879_v47  ;;  %v5484_v59 = vcombine.low %v874_v45, %v879_v47  ;;  %v5494_v28 = vcombine.low %v884_v14, %v889_v57  ;;  %v564_v45 = vld [vmem:[%s8816_s2 + $0x9c8] sm:$0xff]  ;;  %v569_v47 = vld [vmem:[%s8816_s2 + $0x9f0] sm:$0xff] }
 0x19f   : > { %5827 = vmatprep.subr.bf16.mxu1 %v6476_v0  ;;  %v574_v14 = vld [vmem:[%s8816_s2 + $0xa18] sm:$0xff]  ;;  %v579_v57 = vld [vmem:[%s8816_s2 + $0xa40] sm:$0xff] }
 0x1a2   : > { %5843 = vmatpush1.bf16.msra.mxu1 %v6555_v24  ;;  %v1056_v24 = vmul.bf16 %v7143_v34, %v494_v18 }
 0x1a3   : > { %5828 = vmatprep.subr.bf16.mxu1 %v6476_v0 }
 0x1a4   : > { %3855 = vmatmul.mubr.bf16.gmra.mrb[8].mxu1 %v5444_v62  ;;  %v5669_v21 = vcombine.high %v1056_v24, %v1061_v11  ;;  %v5668_v38 = vcombine.low %v1056_v24, %v1061_v11  ;;  %v342_v11 = vld [vmem:[%s8816_s2 + $0x2d8] sm:$0xff] }
 0x1a5   : > { %4721 = vmatmul.mubr.bf16.gmra.mrb[88].mxu0 %v5648_v63  ;;  %3862 = vmatprep.mubr.bf16.mxu1 %v5455_v2  ;;  %v332_v63 = vld [vmem:[%s8816_s2 + $0x288] sm:$0xff]  ;;  %v337_v2 = vld [vmem:[%s8816_s2 + $0x2b0] sm:$0xff] }
 0x1a6   : > { %4728 = vmatprep.mubr.bf16.mxu0 %v5659_v3  ;;  %5844 = vmatpush1.bf16.msra.mxu1 %v6565_v30  ;;  %v504_v30 = vld [vmem:[%s8816_s2 + $0x7e8] sm:$0xff]  ;;  %v539_v3 = vld [vmem:[%s8816_s2 + $0x900] sm:$0xff]  ;;  %v894_v4 = vmul.bf16 %v7513_v53, %v332_v63  ;;  %v899_v5 = vmul.bf16 %v7513_v53, %v337_v2 }
 0x1a7   : > { %5829 = vmatprep.subr.bf16.mxu1 %v6476_v0  ;;  %v1101_v18 = vmul.bf16 %v7143_v34, %v539_v3  ;;  %v387_v3 = vld [vmem:[%s8816_s2 + $0x440] sm:$0xff] }
 0x1a8   : > { %v5505_v10 = vcombine.high %v894_v4, %v899_v5  ;;  %v5504_v26 = vcombine.low %v894_v4, %v899_v5  ;;  %v584_v4 = vld [vmem:[%s8816_s2 + $0xa68] sm:$0xff]  ;;  %v589_v5 = vld [vmem:[%s8816_s2 + $0xa90] sm:$0xff] }
 0x1aa   : > { %5845 = vmatpush1.bf16.msra.mxu1 %v6579_v36  ;;  %v1066_v36 = vmul.bf16 %v7143_v34, %v504_v30 }
 0x1ab   : > { %5830 = vmatprep.subr.bf16.mxu1 %v6476_v0 }
 0x1ac   : > { %3863 = vmatmul.mubr.bf16.gmra.mrb[12].mxu1 %v5454_v16  ;;  %v5679_v40 = vcombine.high %v1066_v36, %v1071_v35  ;;  %v5678_v8 = vcombine.low %v1066_v36, %v1071_v35  ;;  %v347_v16 = vld [vmem:[%s8816_s2 + $0x300] sm:$0xff]  ;;  %v357_v36 = vld [vmem:[%s8816_s2 + $0x350] sm:$0xff]  ;;  %v914_v35 = vmul.bf16 %v7513_v53, %v352_v33 }
 0x1ad   : > { %4729 = vmatmul.mubr.bf16.gmra.mrb[92].mxu0 %v5658_v17  ;;  %3870 = vmatprep.mubr.bf16.mxu1 %v5465_v20  ;;  %v549_v17 = vld [vmem:[%s8816_s2 + $0x950] sm:$0xff]  ;;  %v904_v20 = vmul.bf16 %v7513_v53, %v342_v11 }
 0x1ae   : > { %4736 = vmatprep.mubr.bf16.mxu0 %v5669_v21  ;;  %5846 = vmatpush1.bf16.msra.mxu1 %v6589_v44  ;;  %v514_v44 = vld [vmem:[%s8816_s2 + $0x838] sm:$0xff]  ;;  %v909_v21 = vmul.bf16 %v7513_v53, %v347_v16  ;;  %v1111_v22 = vmul.bf16 %v7143_v34, %v549_v17 }
 0x1af   : > { %5831 = vmatprep.subr.bf16.mxu1 %v6476_v0 }
 0x1b0   : > { %v5515_v27 = vcombine.high %v904_v20, %v909_v21 }
 0x1b2   : > { %5847 = vmatpush1.bf16.msra.mxu1 %v6598_v50  ;;  %v1076_v50 = vmul.bf16 %v7143_v34, %v514_v44  ;;  %v362_v44 = vld [vmem:[%s8816_s2 + $0x378] sm:$0xff] }
 0x1b3   : > { %5832 = vmatprep.subr.bf16.mxu1 %v6476_v0 }
 0x1b4   : > { %3871 = vmatmul.mubr.bf16.gmra.mrb[16].mxu1 %v5464_v37  ;;  %v5689_v52 = vcombine.high %v1076_v50, %v1081_v48  ;;  %v5688_v60 = vcombine.low %v1076_v50, %v1081_v48  ;;  %v919_v37 = vmul.bf16 %v7513_v53, %v357_v36  ;;  %v924_v50 = vmul.bf16 %v7513_v53, %v362_v44 }
 0x1b5   : > { %4737 = vmatmul.mubr.bf16.gmra.mrb[96].mxu0 %v5668_v38  ;;  %3878 = vmatprep.mubr.bf16.mxu1 %v5475_v39  ;;  %v5514_v39 = vcombine.low %v904_v20, %v909_v21  ;;  %v929_v48 = vmul.bf16 %v7513_v53, %v367_v43  ;;  %v392_v20 = vld [vmem:[%s8816_s2 + $0x468] sm:$0xff]  ;;  %v397_v21 = vld [vmem:[%s8816_s2 + $0x490] sm:$0xff] }
 0x1b6   : > { %4744 = vmatprep.mubr.bf16.mxu0 %v5679_v40  ;;  %5848 = vmatpush1.bf16.msra.mxu1 %v6607_v56  ;;  %v524_v56 = vld [vmem:[%s8816_s2 + $0x888] sm:$0xff]  ;;  %v5525_v41 = vcombine.high %v914_v35, %v919_v37 }
 0x1b7   : > { %5833 = vmatprep.subr.bf16.mxu1 %v6476_v0  ;;  %v5535_v54 = vcombine.high %v924_v50, %v929_v48 }
 0x1ba   : > { %5849 = vmatpush1.bf16.msra.mxu1 %v6616_v1  ;;  %v1086_v1 = vmul.bf16 %v7143_v34, %v524_v56  ;;  %v372_v56 = vld [vmem:[%s8816_s2 + $0x3c8] sm:$0xff] }
 0x1bb   : > { %5834 = vmatprep.subr.bf16.mxu1 %v6476_v0 }
 0x1bc   : > { %3879 = vmatmul.mubr.bf16.gmra.mrb[20].mxu1 %v5474_v49  ;;  %v5699_v62 = vcombine.high %v1086_v1, %v1091_v58  ;;  %v5698_v7 = vcombine.low %v1086_v1, %v1091_v58  ;;  %v1126_v49 = vmul.bf16 %v7143_v34, %v564_v45  ;;  %v934_v1 = vmul.bf16 %v7513_v53, %v372_v56 }
 0x1bd   : > { %4745 = vmatmul.mubr.bf16.gmra.mrb[100].mxu0 %v5678_v8  ;;  %3886 = vmatprep.mubr.bf16.mxu1 %v5485_v51  ;;  %v1131_v8 = vmul.bf16 %v7143_v34, %v569_v47  ;;  %v5524_v51 = vcombine.low %v914_v35, %v919_v37  ;;  %v939_v58 = vmul.bf16 %v7513_v53, %v377_v12  ;;  %v402_v35 = vld [vmem:[%s8816_s2 + $0x4b8] sm:$0xff]  ;;  %v407_v37 = vld [vmem:[%s8816_s2 + $0x4e0] sm:$0xff] }
 0x1be   : > { %4752 = vmatprep.mubr.bf16.mxu0 %v5689_v52  ;;  %5850 = vmatpush1.bf16.msra.mxu1 %v6625_v9  ;;  %v534_v9 = vld [vmem:[%s8816_s2 + $0x8d8] sm:$0xff] }
 0x1bf   : > { %5835 = vmatprep.subr.bf16.mxu1 %v6476_v0  ;;  %v5739_v55 = vcombine.high %v1126_v49, %v1131_v8  ;;  %v5545_v63 = vcombine.high %v934_v1, %v939_v58 }
 0x1c2   : > { %5851 = vmatpush1.bf16.msra.mxu1 %v6637_v19  ;;  %v1096_v19 = vmul.bf16 %v7143_v34, %v534_v9  ;;  %v382_v9 = vld [vmem:[%s8816_s2 + $0x418] sm:$0xff] }
 0x1c3   : > { %5836 = vmatprep.subr.bf16.mxu1 %v6476_v0 }
 0x1c4   : > { %3887 = vmatmul.mubr.bf16.gmra.mrb[24].mxu1 %v5484_v59  ;;  %v5709_v24 = vcombine.high %v1096_v19, %v1101_v18  ;;  %v5708_v30 = vcombine.low %v1096_v19, %v1101_v18  ;;  %v1136_v59 = vmul.bf16 %v7143_v34, %v574_v14  ;;  %v944_v19 = vmul.bf16 %v7513_v53, %v382_v9 }
 0x1c5   : > { %4753 = vmatmul.mubr.bf16.gmra.mrb[104].mxu0 %v5688_v60  ;;  %3894 = vmatprep.mubr.bf16.mxu1 %v5495_v61  ;;  %v1141_v60 = vmul.bf16 %v7143_v34, %v579_v57  ;;  %v5534_v61 = vcombine.low %v924_v50, %v929_v48  ;;  %v949_v18 = vmul.bf16 %v7513_v53, %v387_v3 }
 0x1c6   : > { %4760 = vmatprep.mubr.bf16.mxu0 %v5699_v62  ;;  %5852 = vmatpush1.bf16.msra.mxu1 %v6651_v31  ;;  %v544_v31 = vld [vmem:[%s8816_s2 + $0x928] sm:$0xff]  ;;  %v5738_v62 = vcombine.low %v1126_v49, %v1131_v8  ;;  %v417_v8 = vld [vmem:[%s8816_s2 + $0x530] sm:$0xff] }
 0x1c7   : > { %5837 = vmatprep.subr.bf16.mxu1 %v6476_v0  ;;  %v5749_v2 = vcombine.high %v1136_v59, %v1141_v60  ;;  %v5748_v16 = vcombine.low %v1136_v59, %v1141_v60  ;;  %v5554_v33 = vcombine.low %v944_v19, %v949_v18  ;;  %v412_v49 = vld [vmem:[%s8816_s2 + $0x508] sm:$0xff]  ;;  %v422_v59 = vld [vmem:[%s8816_s2 + $0x558] sm:$0xff]  ;;  %v427_v60 = vld [vmem:[%s8816_s2 + $0x580] sm:$0xff] }
 0x1ca   : > { %5853 = vmatpush1.bf16.msra.mxu1 %v6667_v46  ;;  %v1106_v46 = vmul.bf16 %v7143_v34, %v544_v31  ;;  %v5555_v31 = vcombine.high %v944_v19, %v949_v18 }
 0x1cb   : > { %5838 = vmatprep.subr.bf16.mxu1 %v6476_v0 }
 0x1cc   : > { %3895 = vmatmul.mubr.bf16.gmra.mrb[28].mxu1 %v5494_v28  ;;  %v5719_v32 = vcombine.high %v1106_v46, %v1111_v22  ;;  %v5718_v40 = vcombine.low %v1106_v46, %v1111_v22  ;;  %v238_v28 = vld [vmem:[%s6575_s23 + $0x8] sm:$0x3]  ;;  %v594_v46 = vld [vmem:[%s8816_s2 + $0xab8] sm:$0xff]  ;;  %v599_v22 = vld [vmem:[%s8816_s2 + $0xae0] sm:$0xff] }
 0x1cd   : > { %4761 = vmatmul.mubr.bf16.gmra.mrb[108].mxu0 %v5698_v7  ;;  %3902 = vmatprep.mubr.bf16.mxu1 %v5505_v10  ;;  %v1146_v7 = vmul.bf16 %v7143_v34, %v584_v4  ;;  %v1151_v10 = vmul.bf16 %v7143_v34, %v589_v5  ;;  %v5416_v11 = vmul.f32 -1.442695, %v238_v28 }
 0x1ce   : > { %4768 = vmatprep.mubr.bf16.mxu0 %v5709_v24  ;;  %5854 = vmatpush1.bf16.msra.mxu1 %v6695_v6  ;;  %v554_v6 = vld [vmem:[%s8816_s2 + $0x978] sm:$0xff]  ;;  %v5544_v24 = vcombine.low %v934_v1, %v939_v58 }
 0x1cf   : > { %5839 = vmatprep.subr.bf16.mxu1 %v6476_v0  ;;  %v559_v0 = vld [vmem:[%s8816_s2 + $0x9a0] sm:$0xff]  ;;  %v1116_v38 = vmul.bf16 %v7143_v34, %v554_v6  ;;  %v5759_v17 = vcombine.high %v1146_v7, %v1151_v10  ;;  %6448 = vpow2.f32 %v5416_v11  ;;  %v5758_v36 = vcombine.low %v1146_v7, %v1151_v10  ;;  %v432_v7 = vld [vmem:[%s8816_s2 + $0x5a8] sm:$0xff]  ;;  %v437_v10 = vld [vmem:[%s8816_s2 + $0x5d0] sm:$0xff] }
 0x1d2   : > { %5855 = vmatpush1.bf16.msra.mxu1 %v6719_v29  ;;  %v1121_v29 = vmul.bf16 %v7143_v34, %v559_v0 }
 0x1d4   : > { %3903 = vmatmul.mubr.bf16.gmra.mrb[32].mxu1 %v5504_v26  ;;  %v5729_v42 = vcombine.high %v1116_v38, %v1121_v29  ;;  %v5728_v52 = vcombine.low %v1116_v38, %v1121_v29  ;;  %v954_v26 = vmul.bf16 %v7513_v53, %v392_v20  ;;  %v604_v38 = vld [vmem:[%s8816_s2 + $0xb08] sm:$0xff]  ;;  %v609_v29 = vld [vmem:[%s8816_s2 + $0xb30] sm:$0xff]  ;;  %v999_v20 = vmul.bf16 %v7513_v53, %v437_v10 }
 0x1d5   : > { %4769 = vmatmul.mubr.bf16.gmra.mrb[112].mxu0 %v5708_v30  ;;  %3910 = vmatprep.mubr.bf16.mxu1 %v5515_v27  ;;  %v959_v30 = vmul.bf16 %v7513_v53, %v397_v21  ;;  %v1156_v27 = vmul.bf16 %v7143_v34, %v594_v46  ;;  %v1171_v44 = vmul.bf16 %v7143_v34, %v609_v29 }
 0x1d6   : > { %4776 = vmatprep.mubr.bf16.mxu0 %v5719_v32  ;;  %v1161_v32 = vmul.bf16 %v7143_v34, %v599_v22 }
 0x1d7   : > { %v5565_v6 = vcombine.high %v954_v26, %v959_v30  ;;  %v5564_v43 = vcombine.low %v954_v26, %v959_v30 }
 0x1d8   : > { %v5769_v0 = vcombine.high %v1156_v27, %v1161_v32  ;;  %v5768_v45 = vcombine.low %v1156_v27, %v1161_v32  ;;  %v442_v32 = vld [vmem:[%s8816_s2 + $0x5f8] sm:$0xff] }
 0x1dc   : > { %3911 = vmatmul.mubr.bf16.gmra.mrb[36].mxu1 %v5514_v39  ;;  %v964_v39 = vmul.bf16 %v7513_v53, %v402_v35  ;;  %v649_v35 = vld [vmem:[%s8816_s2 + $0xc70] sm:$0xff] }
 0x1dd   : > { %4777 = vmatmul.mubr.bf16.gmra.mrb[116].mxu0 %v5718_v40  ;;  %3918 = vmatprep.mubr.bf16.mxu1 %v5525_v41  ;;  %v969_v40 = vmul.bf16 %v7513_v53, %v407_v37  ;;  %v6449_v41 = vpop.eup %6448  ;;  %v1004_v37 = vmul.bf16 %v7513_v53, %v442_v32 }
 0x1de   : > { %4784 = vmatprep.mubr.bf16.mxu0 %v5729_v42  ;;  %v1166_v42 = vmul.bf16 %v7143_v34, %v604_v38  ;;  %v246_v50 = vadd.f32 1.0, %v6449_v41 }
 0x1df   : > { %v5575_v47 = vcombine.high %v964_v39, %v969_v40  ;;  %v5574_v14 = vcombine.low %v964_v39, %v969_v40  ;;  %v1211_v39 = vmul.bf16 %v7143_v34, %v649_v35  ;;  %v295_v35 = vld [vmem:[%s8816_s2 + $0x160] sm:$0xff] }
 0x1e0   : > { %v5779_v48 = vcombine.high %v1166_v42, %v1171_v44  ;;  %6450 = vrcp.f32 %v246_v50  ;;  %v5778_v57 = vcombine.low %v1166_v42, %v1171_v44  ;;  %v457_v50 = vld [vmem:[%s8816_s2 + $0x670] sm:$0xff] }
 0x1e4   : > { %3919 = vmatmul.mubr.bf16.gmra.mrb[40].mxu1 %v5524_v51  ;;  %v614_v51 = vld [vmem:[%s8816_s2 + $0xb58] sm:$0xff] }
 0x1e5   : > { %4785 = vmatmul.mubr.bf16.gmra.mrb[120].mxu0 %v5728_v52  ;;  %3926 = vmatprep.mubr.bf16.mxu1 %v5535_v54  ;;  %v619_v52 = vld [vmem:[%s8816_s2 + $0xb80] sm:$0xff]  ;;  %v974_v54 = vmul.bf16 %v7513_v53, %v412_v49  ;;  %v1176_v56 = vmul.bf16 %v7143_v34, %v614_v51 }
 0x1e6   : > { %4792 = vmatprep.mubr.bf16.mxu0 %v5739_v55  ;;  %v979_v55 = vmul.bf16 %v7513_v53, %v417_v8  ;;  %v1181_v12 = vmul.bf16 %v7143_v34, %v619_v52  ;;  %v1019_v8 = vmul.bf16 %v7513_v53, %v457_v50  ;;  %v305_v50 = vld [vmem:[%s8816_s2 + $0x1b0] sm:$0xff] }
 0x1e8   : > { %v5585_v1 = vcombine.high %v974_v54, %v979_v55  ;;  %v5789_v58 = vcombine.high %v1176_v56, %v1181_v12  ;;  %v5584_v5 = vcombine.low %v974_v54, %v979_v55  ;;  %v5788_v19 = vcombine.low %v1176_v56, %v1181_v12 }
 0x1ea   : > { %v6451_v4 = vpop.eup %6450 }
 0x1eb   : > { %v692_v11 = vrot.slane %v6451_v4, %v659_v25 }
 0x1ec   : > { %3927 = vmatmul.mubr.bf16.gmra.mrb[44].mxu1 %v5534_v61  ;;  %v624_v61 = vld [vmem:[%s8816_s2 + $0xba8] sm:$0xff] }
 0x1ed   : > { %4793 = vmatmul.mubr.bf16.gmra.mrb[124].mxu0 %v5738_v62  ;;  %3934 = vmatprep.mubr.bf16.mxu1 %v5545_v63  ;;  %v629_v62 = vld [vmem:[%s8816_s2 + $0xbd0] sm:$0xff]  ;;  %v984_v63 = vmul.bf16 %v7513_v53, %v422_v59  ;;  %v1186_v9 = vmul.bf16 %v7143_v34, %v624_v61  ;;  %v712_v46 = vpack.c.bf16 %v692_v11, %v692_v11 }
 0x1ee   : > { %4800 = vmatprep.mubr.bf16.mxu0 %v5749_v2  ;;  %v989_v2 = vmul.bf16 %v7513_v53, %v427_v60  ;;  %v1191_v3 = vmul.bf16 %v7143_v34, %v629_v62 }
 0x1f0   : > { %v5595_v18 = vcombine.high %v984_v63, %v989_v2  ;;  %v5799_v28 = vcombine.high %v1186_v9, %v1191_v3  ;;  %v5594_v22 = vcombine.low %v984_v63, %v989_v2  ;;  %v5798_v26 = vcombine.low %v1186_v9, %v1191_v3 }
 0x1f4   : > { %3935 = vmatmul.mubr.bf16.gmra.mrb[48].mxu1 %v5544_v24  ;;  %v688_v24 = vrot.slane %v6451_v4, %v6643_v23  ;;  %v472_v4 = vld [vmem:[%s8816_s2 + $0x6e8] sm:$0xff] }
 0x1f5   : > { %4801 = vmatmul.mubr.bf16.gmra.mrb[128].mxu0 %v5748_v16  ;;  %3942 = vmatprep.mubr.bf16.mxu1 %v5555_v31  ;;  %v634_v16 = vld [vmem:[%s8816_s2 + $0xbf8] sm:$0xff]  ;;  %v639_v31 = vld [vmem:[%s8816_s2 + $0xc20] sm:$0xff] }
 0x1f6   : > { %4808 = vmatprep.mubr.bf16.mxu0 %v5759_v17  ;;  %v994_v17 = vmul.bf16 %v7513_v53, %v432_v7  ;;  %v1196_v21 = vmul.bf16 %v7143_v34, %v634_v16  ;;  %v1201_v13 = vmul.bf16 %v7143_v34, %v639_v31  ;;  %v711_v25 = vpack.c.bf16 %v688_v24, %v688_v24 }
 0x1f8   : > { %v5605_v30 = vcombine.high %v994_v17, %v999_v20  ;;  %v5809_v27 = vcombine.high %v1196_v21, %v1201_v13  ;;  %v5604_v42 = vcombine.low %v994_v17, %v999_v20  ;;  %v5808_v44 = vcombine.low %v1196_v21, %v1201_v13  ;;  %v482_v20 = vld [vmem:[%s8816_s2 + $0x738] sm:$0xff]  ;;  %v487_v21 = vld [vmem:[%s8816_s2 + $0x760] sm:$0xff]  ;;  %v285_v13 = vld [vmem:[%s8816_s2 + $0x110] sm:$0xff] }
 0x1fc   : > { %3943 = vmatmul.mubr.bf16.gmra.mrb[52].mxu1 %v5554_v33  ;;  %v447_v33 = vld [vmem:[%s8816_s2 + $0x620] sm:$0xff] }
 0x1fd   : > { %4809 = vmatmul.mubr.bf16.gmra.mrb[132].mxu0 %v5758_v36  ;;  %3950 = vmatprep.mubr.bf16.mxu1 %v5565_v6  ;;  %v770_v36 = vpack.i.b16 %v711_v25, %v711_v25  ;;  %v777_v6 = vpack.i.b16 %v712_v46, %v712_v46  ;;  %v1009_v38 = vmul.bf16 %v7513_v53, %v447_v33  ;;  %v290_v25 = vld [vmem:[%s8816_s2 + $0x138] sm:$0xff] }
 0x1fe   : > { %4816 = vmatprep.mubr.bf16.mxu0 %v5769_v0  ;;  %v644_v0 = vld [vmem:[%s8816_s2 + $0xc48] sm:$0xff]  ;;  %v1044_v46 = vmul.bf16 %v7513_v53, %v482_v20  ;;  %v537_v20 = vld [vmem:[%s8816_s2 + $0x8f0] sm:$0xff] }
 0x1ff   : > { %v1206_v29 = vmul.bf16 %v7143_v34, %v644_v0  ;;  %v775_v40 = vrot.slane %v770_v36, %v6643_v23  ;;  %v782_v41 = vrot.slane %v777_v6, %v6643_v23  ;;  %v255_v34 = vld [vmem:[%s8816_s2 + $0x20] sm:$0xff]  ;;  %v260_v23 = vld [vmem:[%s8816_s2 + $0x48] sm:$0xff]  ;;  %v5614_v54 = vcombine.low %v1004_v37, %v1009_v38  ;;  %v497_v0 = vld [vmem:[%s8816_s2 + $0x7b0] sm:$0xff] }
 0x200   : > { %v492_v6 = vld [vmem:[%s8816_s2 + $0x788] sm:$0xff] }
 0x201   : > { %v5818_v55 = vcombine.low %v1206_v29, %v1211_v39 }
 0x204   : > { %3951 = vmatmul.mubr.bf16.gmra.mrb[56].mxu1 %v5564_v43  ;;  %v5615_v43 = vcombine.high %v1004_v37, %v1009_v38  ;;  %v300_v37 = vld [vmem:[%s8816_s2 + $0x188] sm:$0xff]  ;;  %v1054_v38 = vmul.bf16 %v7513_v53, %v492_v6 }
 0x205   : > { %4817 = vmatmul.mubr.bf16.gmra.mrb[136].mxu0 %v5768_v45  ;;  %3958 = vmatprep.mubr.bf16.mxu1 %v5575_v47  ;;  %v5819_v45 = vcombine.high %v1206_v29, %v1211_v39  ;;  %v452_v47 = vld [vmem:[%s8816_s2 + $0x648] sm:$0xff]  ;;  %v1059_v29 = vmul.bf16 %v7513_v53, %v497_v0 }
 0x206   : > { %4824 = vmatprep.mubr.bf16.mxu0 %v5779_v48  ;;  %v7883_v48 = vcombine.low %v775_v40, %v782_v41  ;;  %v1014_v49 = vmul.bf16 %v7513_v53, %v452_v47  ;;  %v507_v47 = vld [vmem:[%s8816_s2 + $0x800] sm:$0xff] }
 0x208   : > { %v817_v51 = vmul.bf16 %v7883_v48, %v255_v34  ;;  %v822_v52 = vmul.bf16 %v7883_v48, %v260_v23  ;;  %v5625_v56 = vcombine.high %v1014_v49, %v1019_v8  ;;  %v5624_v63 = vcombine.low %v1014_v49, %v1019_v8  ;;  %v310_v34 = vld [vmem:[%s8816_s2 + $0x1d8] sm:$0xff] }
 0x209   : > { %v857_v39 = vmul.bf16 %v7883_v48, %v295_v35  ;;  %v862_v40 = vmul.bf16 %v7883_v48, %v300_v37  ;;  %v1069_v49 = vmul.bf16 %v7513_v53, %v507_v47  ;;  %v867_v8 = vmul.bf16 %v7883_v48, %v305_v50  ;;  %v542_v37 = vld [vmem:[%s8816_s2 + $0x918] sm:$0xff] }
 0x20a   : > { %v5431_v12 = vcombine.high %v817_v51, %v822_v52  ;;  %v5430_v2 = vcombine.low %v817_v51, %v822_v52  ;;  %v872_v51 = vmul.bf16 %v7883_v48, %v310_v34  ;;  %v5664_v52 = vcombine.low %v1054_v38, %v1059_v29 }
 0x20c   : > { %3959 = vmatmul.mubr.bf16.gmra.mrb[60].mxu1 %v5574_v14  ;;  %v462_v14 = vld [vmem:[%s8816_s2 + $0x698] sm:$0xff] }
 0x20d   : > { %4825 = vmatmul.mubr.bf16.gmra.mrb[140].mxu0 %v5778_v57  ;;  %3966 = vmatprep.mubr.bf16.mxu1 %v5585_v1  ;;  %v467_v57 = vld [vmem:[%s8816_s2 + $0x6c0] sm:$0xff]  ;;  %v265_v1 = vld [vmem:[%s8816_s2 + $0x70] sm:$0xff]  ;;  %v1024_v59 = vmul.bf16 %v7513_v53, %v462_v14 }
 0x20e   : > { %4832 = vmatprep.mubr.bf16.mxu0 %v5789_v58  ;;  %v270_v58 = vld [vmem:[%s8816_s2 + $0x98] sm:$0xff]  ;;  %v1029_v60 = vmul.bf16 %v7513_v53, %v467_v57  ;;  %v827_v61 = vmul.bf16 %v7883_v48, %v265_v1  ;;  %v517_v14 = vld [vmem:[%s8816_s2 + $0x850] sm:$0xff]  ;;  %v315_v57 = vld [vmem:[%s8816_s2 + $0x200] sm:$0xff] }
 0x20f   : > { %v832_v62 = vmul.bf16 %v7883_v48, %v270_v58  ;;  %v320_v1 = vld [vmem:[%s8816_s2 + $0x228] sm:$0xff] }
 0x210   : > { %v5635_v9 = vcombine.high %v1024_v59, %v1029_v60  ;;  %v5634_v11 = vcombine.low %v1024_v59, %v1029_v60  ;;  %v1079_v59 = vmul.bf16 %v7513_v53, %v517_v14  ;;  %v877_v60 = vmul.bf16 %v7883_v48, %v315_v57 }
 0x211   : > { %v5441_v3 = vcombine.high %v827_v61, %v832_v62  ;;  %v5440_v16 = vcombine.low %v827_v61, %v832_v62  ;;  %v882_v61 = vmul.bf16 %v7883_v48, %v320_v1 }
 0x214   : > { %3967 = vmatmul.mubr.bf16.gmra.mrb[64].mxu1 %v5584_v5  ;;  %v477_v5 = vld [vmem:[%s8816_s2 + $0x710] sm:$0xff] }
 0x215   : > { %4833 = vmatmul.mubr.bf16.gmra.mrb[144].mxu0 %v5788_v19  ;;  %3974 = vmatprep.mubr.bf16.mxu1 %v5595_v18  ;;  %v275_v19 = vld [vmem:[%s8816_s2 + $0xc0] sm:$0xff]  ;;  %v280_v18 = vld [vmem:[%s8816_s2 + $0xe8] sm:$0xff]  ;;  %v1039_v7 = vmul.bf16 %v7513_v53, %v477_v5  ;;  %v325_v5 = vld [vmem:[%s8816_s2 + $0x250] sm:$0xff] }
 0x216   : > { %4840 = vmatprep.mubr.bf16.mxu0 %v5799_v28  ;;  %v1034_v28 = vmul.bf16 %v7513_v53, %v472_v4  ;;  %v837_v10 = vmul.bf16 %v7883_v48, %v275_v19  ;;  %v842_v24 = vmul.bf16 %v7883_v48, %v280_v18  ;;  %v527_v4 = vld [vmem:[%s8816_s2 + $0x8a0] sm:$0xff]  ;;  %v330_v19 = vld [vmem:[%s8816_s2 + $0x278] sm:$0xff] }
 0x218   : > { %v5645_v31 = vcombine.high %v1034_v28, %v1039_v7  ;;  %v5451_v17 = vcombine.high %v837_v10, %v842_v24  ;;  %v5450_v32 = vcombine.low %v837_v10, %v842_v24  ;;  %v892_v10 = vmul.bf16 %v7883_v48, %v330_v19 }
 0x21c   : > { %3975 = vmatmul.mubr.bf16.gmra.mrb[68].mxu1 %v5594_v22  ;;  %v1049_v22 = vmul.bf16 %v7513_v53, %v487_v21  ;;  %v335_v21 = vld [vmem:[%s8816_s2 + $0x2a0] sm:$0xff] }
 0x21d   : > { %4841 = vmatmul.mubr.bf16.gmra.mrb[148].mxu0 %v5798_v26  ;;  %3982 = vmatprep.mubr.bf16.mxu1 %v5605_v30  ;;  %v847_v26 = vmul.bf16 %v7883_v48, %v285_v13  ;;  %v852_v30 = vmul.bf16 %v7883_v48, %v290_v25  ;;  %v340_v13 = vld [vmem:[%s8816_s2 + $0x2c8] sm:$0xff] }
 0x21e   : > { %4848 = vmatprep.mubr.bf16.mxu0 %v5809_v27  ;;  %v5644_v27 = vcombine.low %v1034_v28, %v1039_v7  ;;  %v5655_v33 = vcombine.high %v1044_v46, %v1049_v22  ;;  %v5654_v41 = vcombine.low %v1044_v46, %v1049_v22  ;;  %v1089_v28 = vmul.bf16 %v7513_v53, %v527_v4  ;;  %v365_v4 = vld [vmem:[%s8816_s2 + $0x390] sm:$0xff] }
 0x21f   : > { %v5461_v36 = vcombine.high %v847_v26, %v852_v30  ;;  %v887_v7 = vmul.bf16 %v7883_v48, %v325_v5  ;;  %v1099_v46 = vmul.bf16 %v7513_v53, %v537_v20  ;;  %v897_v22 = vmul.bf16 %v7883_v48, %v335_v21  ;;  %v370_v5 = vld [vmem:[%s8816_s2 + $0x3b8] sm:$0xff] }
 0x224   : > { %3983 = vmatmul.mubr.bf16.gmra.mrb[72].mxu1 %v5604_v42  ;;  %v5460_v42 = vcombine.low %v847_v26, %v852_v30  ;;  %v902_v26 = vmul.bf16 %v7883_v48, %v340_v13  ;;  %v572_v13 = vld [vmem:[%s8816_s2 + $0xa08] sm:$0xff] }
 0x225   : > { %4849 = vmatmul.mubr.bf16.gmra.mrb[152].mxu0 %v5808_v44  ;;  %3990 = vmatprep.mubr.bf16.mxu1 %v5615_v43  ;;  %v5665_v44 = vcombine.high %v1054_v38, %v1059_v29  ;;  %v5471_v43 = vcombine.high %v857_v39, %v862_v40  ;;  %v547_v38 = vld [vmem:[%s8816_s2 + $0x940] sm:$0xff]  ;;  %v345_v29 = vld [vmem:[%s8816_s2 + $0x2f0] sm:$0xff] }
 0x226   : > { %4856 = vmatprep.mubr.bf16.mxu0 %v5819_v45  ;;  %v502_v45 = vld [vmem:[%s8816_s2 + $0x7d8] sm:$0xff]  ;;  %v5511_v35 = vcombine.high %v897_v22, %v902_v26  ;;  %v5510_v34 = vcombine.low %v897_v22, %v902_v26  ;;  %v380_v22 = vld [vmem:[%s8816_s2 + $0x408] sm:$0xff]  ;;  %v1134_v26 = vmul.bf16 %v7513_v53, %v572_v13 }
 0x227   : > { %v1064_v23 = vmul.bf16 %v7513_v53, %v502_v45 }
 0x229   : > { %v5674_v62 = vcombine.low %v1064_v23, %v1069_v49 }
 0x22c   : > { %3991 = vmatmul.mubr.bf16.gmra.mrb[76].mxu1 %v5614_v54  ;;  %v5470_v54 = vcombine.low %v857_v39, %v862_v40  ;;  %v350_v39 = vld [vmem:[%s8816_s2 + $0x318] sm:$0xff]  ;;  %v1104_v40 = vmul.bf16 %v7513_v53, %v542_v37 }
 0x22d   : > { %4857 = vmatmul.mubr.bf16.gmra.mrb[156].mxu0 %v5818_v55  ;;  %3998 = vmatprep.mubr.bf16.mxu1 %v5625_v56  ;;  %v5675_v55 = vcombine.high %v1064_v23, %v1069_v49  ;;  %v5481_v56 = vcombine.high %v867_v8, %v872_v51 }
 0x22e   : > { %4897 = vmatprep.mubr.bf16.mxu0 %v5431_v12  ;;  %v512_v12 = vld [vmem:[%s8816_s2 + $0x828] sm:$0xff] }
 0x22f   : > { %v1074_v58 = vmul.bf16 %v7513_v53, %v512_v12 }
 0x231   : > { %v5684_v24 = vcombine.low %v1074_v58, %v1079_v59 }
 0x234   : > { %3999 = vmatmul.mubr.bf16.gmra.mrb[80].mxu1 %v5624_v63  ;;  %v5480_v63 = vcombine.low %v867_v8, %v872_v51  ;;  %v552_v51 = vld [vmem:[%s8816_s2 + $0x968] sm:$0xff] }
 0x235   : > { %4898 = vmatmul.mubr.bf16.vlgmr.msra.gmra.mrb[0].mxu0 %v5430_v2  ;;  %4006 = vmatprep.mubr.bf16.mxu1 %v5635_v9  ;;  %v5685_v2 = vcombine.high %v1074_v58, %v1079_v59  ;;  %v5491_v9 = vcombine.high %v877_v60, %v882_v61 }
 0x236   : > { %4905 = vmatprep.mubr.bf16.mxu0 %v5441_v3  ;;  %v522_v3 = vld [vmem:[%s8816_s2 + $0x878] sm:$0xff] }
 0x237   : > { %v1084_v18 = vmul.bf16 %v7513_v53, %v522_v3  ;;  %v567_v3 = vld [vmem:[%s8816_s2 + $0x9e0] sm:$0xff] }
 0x23c   : > { %4007 = vmatmul.mubr.bf16.gmra.mrb[84].mxu1 %v5634_v11  ;;  %v5490_v11 = vcombine.low %v877_v60, %v882_v61 }
 0x23d   : > { %4906 = vmatmul.mubr.bf16.gmra.mrb[4].mxu0 %v5440_v16  ;;  %4014 = vmatprep.mubr.bf16.mxu1 %v5645_v31  ;;  %v5695_v16 = vcombine.high %v1084_v18, %v1089_v28  ;;  %v5501_v31 = vcombine.high %v887_v7, %v892_v10 }
 0x23e   : > { %4913 = vmatprep.mubr.bf16.mxu0 %v5451_v17  ;;  %v532_v17 = vld [vmem:[%s8816_s2 + $0x8c8] sm:$0xff] }
 0x23f   : > { %v1094_v25 = vmul.bf16 %v7513_v53, %v532_v17 }
 0x241   : > { %v5705_v6 = vcombine.high %v1094_v25, %v1099_v46  ;;  %v5704_v47 = vcombine.low %v1094_v25, %v1099_v46  ;;  %v577_v25 = vld [vmem:[%s8816_s2 + $0xa30] sm:$0xff]  ;;  %v375_v46 = vld [vmem:[%s8816_s2 + $0x3e0] sm:$0xff] }
 0x244   : > { %4015 = vmatmul.mubr.bf16.gmra.mrb[88].mxu1 %v5644_v27 }
 0x245   : > { %4914 = vmatmul.mubr.bf16.gmra.mrb[8].mxu0 %v5450_v32  ;;  %4022 = vmatprep.mubr.bf16.mxu1 %v5655_v33  ;;  %v5694_v32 = vcombine.low %v1084_v18, %v1089_v28  ;;  %v1129_v18 = vmul.bf16 %v7513_v53, %v567_v3  ;;  %v927_v28 = vmul.bf16 %v7883_v48, %v365_v4 }
 0x246   : > { %4921 = vmatprep.mubr.bf16.mxu0 %v5461_v36  ;;  %v5500_v36 = vcombine.low %v887_v7, %v892_v10  ;;  %v932_v7 = vmul.bf16 %v7883_v48, %v370_v5 }
 0x248   : > { %v5541_v21 = vcombine.high %v927_v28, %v932_v7 }
 0x24c   : > { %4023 = vmatmul.mubr.bf16.gmra.mrb[92].mxu1 %v5654_v41  ;;  %v1109_v41 = vmul.bf16 %v7513_v53, %v547_v38  ;;  %v5540_v38 = vcombine.low %v927_v28, %v932_v7 }
 0x24d   : > { %4922 = vmatmul.mubr.bf16.gmra.mrb[12].mxu0 %v5460_v42  ;;  %4030 = vmatprep.mubr.bf16.mxu1 %v5665_v44  ;;  %v907_v42 = vmul.bf16 %v7883_v48, %v345_v29  ;;  %v912_v44 = vmul.bf16 %v7883_v48, %v350_v39 }
 0x24e   : > { %4929 = vmatprep.mubr.bf16.mxu0 %v5471_v43  ;;  %v5715_v23 = vcombine.high %v1104_v40, %v1109_v41  ;;  %v5714_v59 = vcombine.low %v1104_v40, %v1109_v41  ;;  %v582_v41 = vld [vmem:[%s8816_s2 + $0xa58] sm:$0xff] }
 0x24f   : > { %v5521_v8 = vcombine.high %v907_v42, %v912_v44  ;;  %v5520_v61 = vcombine.low %v907_v42, %v912_v44  ;;  %v587_v42 = vld [vmem:[%s8816_s2 + $0xa80] sm:$0xff]  ;;  %v385_v44 = vld [vmem:[%s8816_s2 + $0x430] sm:$0xff] }
 0x254   : > { %4031 = vmatmul.mubr.bf16.gmra.mrb[96].mxu1 %v5664_v52  ;;  %v557_v52 = vld [vmem:[%s8816_s2 + $0x990] sm:$0xff] }
 0x255   : > { %4930 = vmatmul.mubr.bf16.gmra.mrb[16].mxu0 %v5470_v54  ;;  %4038 = vmatprep.mubr.bf16.mxu1 %v5675_v55  ;;  %v355_v54 = vld [vmem:[%s8816_s2 + $0x340] sm:$0xff]  ;;  %v360_v55 = vld [vmem:[%s8816_s2 + $0x368] sm:$0xff]  ;;  %v1119_v12 = vmul.bf16 %v7513_v53, %v557_v52 }
 0x256   : > { %4937 = vmatprep.mubr.bf16.mxu0 %v5481_v56  ;;  %v1114_v56 = vmul.bf16 %v7513_v53, %v552_v51  ;;  %v917_v14 = vmul.bf16 %v7883_v48, %v355_v54  ;;  %v922_v57 = vmul.bf16 %v7883_v48, %v360_v55 }
 0x25c   : > { %4039 = vmatmul.mubr.bf16.gmra.mrb[100].mxu1 %v5674_v62  ;;  %v5725_v62 = vcombine.high %v1114_v56, %v1119_v12 }
 0x25d   : > { %4938 = vmatmul.mubr.bf16.gmra.mrb[20].mxu0 %v5480_v63  ;;  %4046 = vmatprep.mubr.bf16.mxu1 %v5685_v2  ;;  %v5531_v2 = vcombine.high %v917_v14, %v922_v57 }
 0x25e   : > { %4945 = vmatprep.mubr.bf16.mxu0 %v5491_v9  ;;  %v562_v9 = vld [vmem:[%s8816_s2 + $0x9b8] sm:$0xff] }
 0x25f   : > { %v1124_v19 = vmul.bf16 %v7513_v53, %v562_v9 }
 0x261   : > { %v5735_v17 = vcombine.high %v1124_v19, %v1129_v18 }
 0x264   : > { %4047 = vmatmul.mubr.bf16.gmra.mrb[104].mxu1 %v5684_v24 }
 0x265   : > { %4946 = vmatmul.mubr.bf16.gmra.mrb[24].mxu0 %v5490_v11  ;;  %4054 = vmatprep.mubr.bf16.mxu1 %v5695_v16  ;;  %v5724_v11 = vcombine.low %v1114_v56, %v1119_v12 }
 0x266   : > { %4953 = vmatprep.mubr.bf16.mxu0 %v5501_v31  ;;  %v5530_v31 = vcombine.low %v917_v14, %v922_v57  ;;  %v592_v57 = vld [vmem:[%s8816_s2 + $0xaa8] sm:$0xff] }
 0x267   : > { %v8023_v30 = vpop.f32.mrb[0].mxu1 }
 0x268   : > { %v3842_v27 = vpop.f32.mrb[1].mxu1 }
 0x269   : > { %v8025_v33 = vpop.f32.mrb[2].mxu1  ;;  %v1139_v27 = vmul.bf16 %v7513_v53, %v577_v25 }
 0x26a   : > { %v3845_v0 = vpop.f32.mrb[3].mxu1 }
 0x26b   : > { %v5745_v29 = vcombine.high %v1134_v26, %v1139_v27  ;;  %v5744_v52 = vcombine.low %v1134_v26, %v1139_v27 }
 0x26c   : > { %4055 = vmatmul.mubr.bf16.gmra.mrb[108].mxu1 %v5694_v32  ;;  %v937_v32 = vmul.bf16 %v7883_v48, %v375_v46 }
 0x26d   : > { %4954 = vmatmul.mubr.bf16.gmra.mrb[28].mxu0 %v5500_v36  ;;  %4062 = vmatprep.mubr.bf16.mxu1 %v5705_v6  ;;  %v942_v36 = vmul.bf16 %v7883_v48, %v380_v22 }
 0x26e   : > { %4961 = vmatprep.mubr.bf16.mxu0 %v5511_v35  ;;  %v5734_v35 = vcombine.low %v1124_v19, %v1129_v18 }
 0x26f   : > { %v8043_v43 = vpop.f32.mrb[4].mxu1  ;;  %v5551_v40 = vcombine.high %v937_v32, %v942_v36  ;;  %v5550_v55 = vcombine.low %v937_v32, %v942_v36 }
 0x270   : > { %v3850_v45 = vpop.f32.mrb[5].mxu1 }
 0x271   : > { %v8045_v50 = vpop.f32.mrb[6].mxu1  ;;  %v390_v45 = vld [vmem:[%s8816_s2 + $0x458] sm:$0xff] }
 0x272   : > { %v3853_v49 = vpop.f32.mrb[7].mxu1 }
 0x273   : > { %v952_v49 = vmul.bf16 %v7883_v48, %v390_v45 }
 0x274   : > { %4063 = vmatmul.mubr.bf16.gmra.mrb[112].mxu1 %v5704_v47  ;;  %v1144_v47 = vmul.bf16 %v7513_v53, %v582_v41  ;;  %v420_v41 = vld [vmem:[%s8816_s2 + $0x548] sm:$0xff] }
 0x275   : > { %4962 = vmatmul.mubr.bf16.gmra.mrb[32].mxu0 %v5510_v34  ;;  %4070 = vmatprep.mubr.bf16.mxu1 %v5715_v23  ;;  %v1149_v34 = vmul.bf16 %v7513_v53, %v587_v42  ;;  %v947_v23 = vmul.bf16 %v7883_v48, %v385_v44 }
 0x276   : > { %4969 = vmatprep.mubr.bf16.mxu0 %v5521_v8 }
 0x277   : > { %v8063_v1 = vpop.f32.mrb[8].mxu1  ;;  %v5755_v56 = vcombine.high %v1144_v47, %v1149_v34  ;;  %v5561_v14 = vcombine.high %v947_v23, %v952_v49  ;;  %v5754_v5 = vcombine.low %v1144_v47, %v1149_v34  ;;  %v5560_v18 = vcombine.low %v947_v23, %v952_v49 }
 0x278   : > { %v3858_v58 = vpop.f32.mrb[9].mxu1  ;;  %v982_v47 = vmul.bf16 %v7883_v48, %v420_v41  ;;  %v642_v41 = vld [vmem:[%s8816_s2 + $0xc38] sm:$0xff] }
 0x279   : > { %v8065_v60 = vpop.f32.mrb[10].mxu1  ;;  %v597_v58 = vld [vmem:[%s8816_s2 + $0xad0] sm:$0xff] }
 0x27a   : > { %v3861_v63 = vpop.f32.mrb[11].mxu1 }
 0x27b   : > { %v1159_v63 = vmul.bf16 %v7513_v53, %v597_v58  ;;  %v425_v58 = vld [vmem:[%s8816_s2 + $0x570] sm:$0xff] }
 0x27c   : > { %4071 = vmatmul.mubr.bf16.gmra.mrb[116].mxu1 %v5714_v59  ;;  %v395_v59 = vld [vmem:[%s8816_s2 + $0x480] sm:$0xff] }
 0x27d   : > { %4970 = vmatmul.mubr.bf16.gmra.mrb[36].mxu0 %v5520_v61  ;;  %4078 = vmatprep.mubr.bf16.mxu1 %v5725_v62  ;;  %v400_v61 = vld [vmem:[%s8816_s2 + $0x4a8] sm:$0xff]  ;;  %v1154_v62 = vmul.bf16 %v7513_v53, %v592_v57  ;;  %v627_v57 = vld [vmem:[%s8816_s2 + $0xbc0] sm:$0xff] }
 0x27e   : > { %4977 = vmatprep.mubr.bf16.mxu0 %v5531_v2  ;;  %v957_v2 = vmul.bf16 %v7883_v48, %v395_v59  ;;  %v962_v9 = vmul.bf16 %v7883_v48, %v400_v61  ;;  %v430_v59 = vld [vmem:[%s8816_s2 + $0x598] sm:$0xff] }
 0x27f   : > { %v8083_v10 = vpop.f32.mrb[12].mxu1  ;;  %v5765_v28 = vcombine.high %v1154_v62, %v1159_v63  ;;  %v5764_v27 = vcombine.low %v1154_v62, %v1159_v63  ;;  %v1189_v62 = vmul.bf16 %v7513_v53, %v627_v57  ;;  %v987_v63 = vmul.bf16 %v7883_v48, %v425_v58 }
 0x280   : > { %v3866_v24 = vpop.f32.mrb[13].mxu1  ;;  %v5570_v36 = vcombine.low %v957_v2, %v962_v9 }
 0x281   : > { %v8085_v16 = vpop.f32.mrb[14].mxu1  ;;  %v5571_v24 = vcombine.high %v957_v2, %v962_v9  ;;  %v992_v2 = vmul.bf16 %v7883_v48, %v430_v59 }
 0x282   : > { %v3869_v20 = vpop.f32.mrb[15].mxu1 }
 0x283   : > { %v410_v20 = vld [vmem:[%s8816_s2 + $0x4f8] sm:$0xff] }
 0x284   : > { %4079 = vmatmul.mubr.bf16.gmra.mrb[120].mxu1 %v5724_v11  ;;  %v602_v11 = vld [vmem:[%s8816_s2 + $0xaf8] sm:$0xff]  ;;  %v972_v46 = vmul.bf16 %v7883_v48, %v410_v20  ;;  %v435_v20 = vld [vmem:[%s8816_s2 + $0x5c0] sm:$0xff] }
 0x285   : > { %4978 = vmatmul.mubr.bf16.gmra.mrb[40].mxu0 %v5530_v31  ;;  %4086 = vmatprep.mubr.bf16.mxu1 %v5735_v17  ;;  %v607_v31 = vld [vmem:[%s8816_s2 + $0xb20] sm:$0xff]  ;;  %v405_v17 = vld [vmem:[%s8816_s2 + $0x4d0] sm:$0xff] }
 0x286   : > { %4985 = vmatprep.mubr.bf16.mxu0 %v5541_v21  ;;  %v1164_v21 = vmul.bf16 %v7513_v53, %v602_v11  ;;  %v1169_v13 = vmul.bf16 %v7513_v53, %v607_v31  ;;  %v967_v25 = vmul.bf16 %v7883_v48, %v405_v17  ;;  %v5601_v11 = vcombine.high %v987_v63, %v992_v2  ;;  %v632_v31 = vld [vmem:[%s8816_s2 + $0xbe8] sm:$0xff]  ;;  %v637_v17 = vld [vmem:[%s8816_s2 + $0xc10] sm:$0xff] }
 0x287   : > { %v8103_v6 = vpop.f32.mrb[16].mxu1 }
 0x288   : > { %v3874_v0 = vpop.f32.mrb[17].mxu1  ;;  %v5774_v49 = vcombine.low %v1164_v21, %v1169_v13 }
 0x289   : > { %v8105_v37 = vpop.f32.mrb[18].mxu1  ;;  %v5775_v0 = vcombine.high %v1164_v21, %v1169_v13  ;;  %v440_v21 = vld [vmem:[%s8816_s2 + $0x5e8] sm:$0xff]  ;;  %v1194_v13 = vmul.bf16 %v7513_v53, %v632_v31 }
 0x28a   : > { %v3877_v39 = vpop.f32.mrb[19].mxu1 }
 0x28b   : > { %v617_v39 = vld [vmem:[%s8816_s2 + $0xb70] sm:$0xff] }
 0x28c   : > { %4087 = vmatmul.mubr.bf16.gmra.mrb[124].mxu1 %v5734_v35  ;;  %v1179_v44 = vmul.bf16 %v7513_v53, %v617_v39 }
 0x28d   : > { %4986 = vmatmul.mubr.bf16.gmra.mrb[44].mxu0 %v5540_v38  ;;  %4094 = vmatprep.mubr.bf16.mxu1 %v5745_v29  ;;  %v5581_v38 = vcombine.high %v967_v25, %v972_v46  ;;  %v612_v29 = vld [vmem:[%s8816_s2 + $0xb48] sm:$0xff] }
 0x28e   : > { %4993 = vmatprep.mubr.bf16.mxu0 %v5551_v40  ;;  %v415_v40 = vld [vmem:[%s8816_s2 + $0x520] sm:$0xff]  ;;  %v1174_v42 = vmul.bf16 %v7513_v53, %v612_v29 }
 0x28f   : > { %v8123_v8 = vpop.f32.mrb[20].mxu1  ;;  %v977_v45 = vmul.bf16 %v7883_v48, %v415_v40 }
 0x290   : > { %v3882_v51 = vpop.f32.mrb[21].mxu1 }
 0x291   : > { %v8125_v54 = vpop.f32.mrb[22].mxu1 }
 0x292   : > { %v3885_v12 = vpop.f32.mrb[23].mxu1 }
 0x293   : > { %v5591_v12 = vcombine.high %v977_v45, %v982_v47 }
 0x294   : > { %4095 = vmatmul.mubr.bf16.gmra.mrb[128].mxu1 %v5744_v52  ;;  %v5580_v52 = vcombine.low %v967_v25, %v972_v46  ;;  %v1199_v25 = vmul.bf16 %v7513_v53, %v637_v17  ;;  %v997_v46 = vmul.bf16 %v7883_v48, %v435_v20 }
 0x295   : > { %4994 = vmatmul.mubr.bf16.gmra.mrb[48].mxu0 %v5550_v55  ;;  %4102 = vmatprep.mubr.bf16.mxu1 %v5755_v56  ;;  %v5785_v55 = vcombine.high %v1174_v42, %v1179_v44 }
 0x296   : > { %5001 = vmatprep.mubr.bf16.mxu0 %v5561_v14  ;;  %v622_v14 = vld [vmem:[%s8816_s2 + $0xb98] sm:$0xff]  ;;  %v5805_v29 = vcombine.high %v1194_v13, %v1199_v25 }
 0x297   : > { %v8143_v3 = vpop.f32.mrb[24].mxu1  ;;  %v1184_v61 = vmul.bf16 %v7513_v53, %v622_v14 }
 0x298   : > { %v3890_v4 = vpop.f32.mrb[25].mxu1 }
 0x299   : > { %v8145_v19 = vpop.f32.mrb[26].mxu1 }
 0x29a   : > { %v3893_v7 = vpop.f32.mrb[27].mxu1 }
 0x29b   : > { %v5795_v7 = vcombine.high %v1184_v61, %v1189_v62 }
 0x29c   : > { %4103 = vmatmul.mubr.bf16.gmra.mrb[132].mxu1 %v5754_v5  ;;  %v5784_v5 = vcombine.low %v1174_v42, %v1179_v44  ;;  %v647_v42 = vld [vmem:[%s8816_s2 + $0xc60] sm:$0xff]  ;;  %v445_v44 = vld [vmem:[%s8816_s2 + $0x610] sm:$0xff] }
 0x29d   : > { %5002 = vmatmul.mubr.bf16.gmra.mrb[52].mxu0 %v5560_v18  ;;  %4110 = vmatprep.mubr.bf16.mxu1 %v5765_v28  ;;  %v5590_v28 = vcombine.low %v977_v45, %v982_v47  ;;  %v450_v45 = vld [vmem:[%s8816_s2 + $0x638] sm:$0xff]  ;;  %v1204_v47 = vmul.bf16 %v7513_v53, %v642_v41 }
 0x29e   : > { %5009 = vmatprep.mubr.bf16.mxu0 %v5571_v24 }
 0x29f   : > { %v8163_v22 = vpop.f32.mrb[28].mxu1 }
 0x2a0   : > { %v3898_v26 = vpop.f32.mrb[29].mxu1 }
 0x2a1   : > { %v8165_v32 = vpop.f32.mrb[30].mxu1  ;;  %v1002_v26 = vmul.bf16 %v7883_v48, %v440_v21 }
 0x2a2   : > { %v3901_v35 = vpop.f32.mrb[31].mxu1 }
 0x2a3   : > { %v5611_v40 = vcombine.high %v997_v46, %v1002_v26  ;;  %v5610_v57 = vcombine.low %v997_v46, %v1002_v26  ;;  %v463_v46 = vld [vmem:[%s8816_s2 + $0x6a0] sm:$0xff]  ;;  %v468_v26 = vld [vmem:[%s8816_s2 + $0x6c8] sm:$0xff] }
 0x2a4   : > { %4111 = vmatmul.mubr.bf16.gmra.mrb[136].mxu1 %v5764_v27 }
 0x2a5   : > { %5010 = vmatmul.mubr.bf16.gmra.mrb[56].mxu0 %v5570_v36  ;;  %4118 = vmatprep.mubr.bf16.mxu1 %v5775_v0  ;;  %v5794_v0 = vcombine.low %v1184_v61, %v1189_v62  ;;  %v453_v62 = vld [vmem:[%s8816_s2 + $0x650] sm:$0xff] }
 0x2a6   : > { %5017 = vmatprep.mubr.bf16.mxu0 %v5581_v38  ;;  %v5600_v38 = vcombine.low %v987_v63, %v992_v2  ;;  %v455_v63 = vld [vmem:[%s8816_s2 + $0x660] sm:$0xff]  ;;  %v460_v2 = vld [vmem:[%s8816_s2 + $0x688] sm:$0xff] }
 0x2a7   : > { %v8183_v34 = vpop.f32.mrb[32].mxu1 }
 0x2a8   : > { %v3906_v23 = vpop.f32.mrb[33].mxu1 }
 0x2a9   : > { %v8185_v51 = vpop.f32.mrb[34].mxu1  ;;  %v1209_v23 = vmul.bf16 %v7513_v53, %v647_v42  ;;  %v458_v53 = vld [vmem:[%s8816_s2 + $0x678] sm:$0xff] }
 0x2aa   : > { %v3909_v56 = vpop.f32.mrb[35].mxu1 }
 0x2ab   : > { %v5815_v58 = vcombine.high %v1204_v47, %v1209_v23  ;;  %v5814_v31 = vcombine.low %v1204_v47, %v1209_v23 }
 0x2ac   : > { %4119 = vmatmul.mubr.bf16.gmra.mrb[140].mxu1 %v5774_v49  ;;  %v1007_v49 = vmul.bf16 %v7883_v48, %v445_v44 }
 0x2ad   : > { %5018 = vmatmul.mubr.bf16.gmra.mrb[60].mxu0 %v5580_v52  ;;  %4126 = vmatprep.mubr.bf16.mxu1 %v5785_v55  ;;  %v1012_v52 = vmul.bf16 %v7883_v48, %v450_v45 }
 0x2ae   : > { %5025 = vmatprep.mubr.bf16.mxu0 %v5591_v12  ;;  %v5804_v12 = vcombine.low %v1194_v13, %v1199_v25 }
 0x2af   : > { %v8203_v9 = vpop.f32.mrb[36].mxu1  ;;  %v5621_v61 = vcombine.high %v1007_v49, %v1012_v52  ;;  %v5620_v20 = vcombine.low %v1007_v49, %v1012_v52 }
 0x2b0   : > { %v3914_v4 = vpop.f32.mrb[37].mxu1 }
 0x2b1   : > { %v8205_v18 = vpop.f32.mrb[38].mxu1  ;;  %v1015_v4 = vmul.bf16 %v6703_v15, %v453_v62 }
 0x2b2   : > { %v3917_v24 = vpop.f32.mrb[39].mxu1 }
 0x2b4   : > { %4127 = vmatmul.mubr.bf16.gmra.mrb[144].mxu1 %v5784_v5  ;;  %v1020_v5 = vmul.bf16 %v6703_v15, %v458_v53 }
 0x2b5   : > { %5026 = vmatmul.mubr.bf16.gmra.mrb[64].mxu0 %v5590_v28  ;;  %4134 = vmatprep.mubr.bf16.mxu1 %v5795_v7  ;;  %v1017_v28 = vmul.bf16 %v7883_v48, %v455_v63  ;;  %v1022_v7 = vmul.bf16 %v7883_v48, %v460_v2 }
 0x2b6   : > { %5033 = vmatprep.mubr.bf16.mxu0 %v5601_v11  ;;  %v5627_v21 = vcombine.high %v1015_v4, %v1020_v5  ;;  %v5626_v44 = vcombine.low %v1015_v4, %v1020_v5 }
 0x2b7   : > { %v8223_v27 = vpop.f32.mrb[40].mxu1  ;;  %v5631_v25 = vcombine.high %v1017_v28, %v1022_v7  ;;  %v5630_v47 = vcombine.low %v1017_v28, %v1022_v7 }
 0x2b8   : > { %v3922_v36 = vpop.f32.mrb[41].mxu1 }
 0x2b9   : > { %v8225_v35 = vpop.f32.mrb[42].mxu1  ;;  %v465_v36 = vld [vmem:[%s8816_s2 + $0x6b0] sm:$0xff] }
 0x2ba   : > { %v3925_v39 = vpop.f32.mrb[43].mxu1 }
 0x2bb   : > { %v1027_v39 = vmul.bf16 %v7883_v48, %v465_v36 }
 0x2bc   : > { %4135 = vmatmul.mubr.bf16.gmra.mrb[148].mxu1 %v5794_v0  ;;  %v470_v0 = vld [vmem:[%s8816_s2 + $0x6d8] sm:$0xff] }
 0x2bd   : > { %5034 = vmatmul.mubr.bf16.gmra.mrb[68].mxu0 %v5600_v38  ;;  %4142 = vmatprep.mubr.bf16.mxu1 %v5805_v29  ;;  %v1025_v38 = vmul.bf16 %v6703_v15, %v463_v46  ;;  %v1030_v29 = vmul.bf16 %v6703_v15, %v468_v26 }
 0x2be   : > { %5041 = vmatprep.mubr.bf16.mxu0 %v5611_v40  ;;  %v1032_v40 = vmul.bf16 %v7883_v48, %v470_v0 }
 0x2bf   : > { %v8243_v55 = vpop.f32.mrb[44].mxu1  ;;  %v5637_v23 = vcombine.high %v1025_v38, %v1030_v29  ;;  %v5636_v4 = vcombine.low %v1025_v38, %v1030_v29 }
 0x2c0   : > { %v3930_v56 = vpop.f32.mrb[45].mxu1  ;;  %v5641_v52 = vcombine.high %v1027_v39, %v1032_v40  ;;  %v5640_v28 = vcombine.low %v1027_v39, %v1032_v40 }
 0x2c1   : > { %v8245_v14 = vpop.f32.mrb[46].mxu1  ;;  %v473_v56 = vld [vmem:[%s8816_s2 + $0x6f0] sm:$0xff] }
 0x2c2   : > { %v3933_v59 = vpop.f32.mrb[47].mxu1 }
 0x2c3   : > { %v1035_v59 = vmul.bf16 %v6703_v15, %v473_v56  ;;  %v495_v56 = vld [vmem:[%s8816_s2 + $0x7a0] sm:$0xff] }
 0x2c4   : > { %4143 = vmatmul.mubr.bf16.gmra.mrb[152].mxu1 %v5804_v12  ;;  %v478_v12 = vld [vmem:[%s8816_s2 + $0x718] sm:$0xff] }
 0x2c5   : > { %5042 = vmatmul.mubr.bf16.gmra.mrb[72].mxu0 %v5610_v57  ;;  %4150 = vmatprep.mubr.bf16.mxu1 %v5815_v58  ;;  %v475_v57 = vld [vmem:[%s8816_s2 + $0x700] sm:$0xff]  ;;  %v480_v58 = vld [vmem:[%s8816_s2 + $0x728] sm:$0xff] }
 0x2c6   : > { %5049 = vmatprep.mubr.bf16.mxu0 %v5621_v61  ;;  %v1040_v61 = vmul.bf16 %v6703_v15, %v478_v12  ;;  %v1037_v62 = vmul.bf16 %v7883_v48, %v475_v57  ;;  %v1042_v53 = vmul.bf16 %v7883_v48, %v480_v58  ;;  %v500_v12 = vld [vmem:[%s8816_s2 + $0x7c8] sm:$0xff] }
 0x2c7   : > { %v8263_v24 = vpop.f32.mrb[48].mxu1 }
 0x2c8   : > { %v3938_v11 = vpop.f32.mrb[49].mxu1  ;;  %v5647_v7 = vcombine.high %v1035_v59, %v1040_v61  ;;  %v5646_v39 = vcombine.low %v1035_v59, %v1040_v61  ;;  %v1057_v59 = vmul.bf16 %v7883_v48, %v495_v56  ;;  %v1062_v61 = vmul.bf16 %v7883_v48, %v500_v12  ;;  %v513_v56 = vld [vmem:[%s8816_s2 + $0x830] sm:$0xff]  ;;  %v518_v12 = vld [vmem:[%s8816_s2 + $0x858] sm:$0xff] }
 0x2c9   : > { %v8265_v17 = vpop.f32.mrb[50].mxu1 }
 0x2ca   : > { %v3941_v13 = vpop.f32.mrb[51].mxu1 }
 0x2cb   : > { %v485_v13 = vld [vmem:[%s8816_s2 + $0x750] sm:$0xff] }
 0x2cc   : > { %4151 = vmatmul.mubr.bf16.gmra.mrb[156].mxu1 %v5814_v31  ;;  %v5651_v31 = vcombine.high %v1037_v62, %v1042_v53  ;;  %v1047_v36 = vmul.bf16 %v7883_v48, %v485_v13  ;;  %v505_v13 = vld [vmem:[%s8816_s2 + $0x7f0] sm:$0xff] }
 0x2cd   : > { %5050 = vmatmul.mubr.bf16.gmra.mrb[76].mxu0 %v5620_v20  ;;  %4351 = vmatprep.mubr.bf16.mxu1 %v5627_v21  ;;  %v483_v20 = vld [vmem:[%s8816_s2 + $0x740] sm:$0xff]  ;;  %v488_v21 = vld [vmem:[%s8816_s2 + $0x768] sm:$0xff] }
 0x2ce   : > { %5057 = vmatprep.mubr.bf16.mxu0 %v5631_v25  ;;  %v490_v25 = vld [vmem:[%s8816_s2 + $0x778] sm:$0xff]  ;;  %v1045_v46 = vmul.bf16 %v6703_v15, %v483_v20  ;;  %v1050_v26 = vmul.bf16 %v6703_v15, %v488_v21  ;;  %v503_v20 = vld [vmem:[%s8816_s2 + $0x7e0] sm:$0xff]  ;;  %v508_v21 = vld [vmem:[%s8816_s2 + $0x808] sm:$0xff] }
 0x2cf   : > { %v8283_v41 = vpop.f32.mrb[52].mxu1  ;;  %v1052_v0 = vmul.bf16 %v7883_v48, %v490_v25  ;;  %v510_v25 = vld [vmem:[%s8816_s2 + $0x818] sm:$0xff] }
 0x2d0   : > { %v3946_v42 = vpop.f32.mrb[53].mxu1 }
 0x2d1   : > { %v8285_v45 = vpop.f32.mrb[54].mxu1  ;;  %v5650_v42 = vcombine.low %v1037_v62, %v1042_v53 }
 0x2d2   : > { %v3949_v49 = vpop.f32.mrb[55].mxu1 }
 0x2d3   : > { %v493_v49 = vld [vmem:[%s8816_s2 + $0x790] sm:$0xff] }
 0x2d4   : > { %4352 = vmatmul.mubr.bf16.vlgmr.msra.gmra.mrb[80].mxu1 %v5626_v44  ;;  %v5657_v44 = vcombine.high %v1045_v46, %v1050_v26  ;;  %v1055_v57 = vmul.bf16 %v6703_v15, %v493_v49 }
 0x2d5   : > { %5058 = vmatmul.mubr.bf16.gmra.mrb[80].mxu0 %v5630_v47  ;;  %4359 = vmatprep.mubr.bf16.mxu1 %v5637_v23  ;;  %v5661_v23 = vcombine.high %v1047_v36, %v1052_v0 }
 0x2d6   : > { %5065 = vmatprep.mubr.bf16.mxu0 %v5641_v52  ;;  %v498_v52 = vld [vmem:[%s8816_s2 + $0x7b8] sm:$0xff] }
 0x2d7   : > { %v8303_v63 = vpop.f32.mrb[56].mxu1  ;;  %v1060_v58 = vmul.bf16 %v6703_v15, %v498_v52 }
 0x2d8   : > { %v3954_v2 = vpop.f32.mrb[57].mxu1 }
 0x2d9   : > { %v8305_v5 = vpop.f32.mrb[58].mxu1  ;;  %v5656_v2 = vcombine.low %v1045_v46, %v1050_v26  ;;  %v1065_v46 = vmul.bf16 %v6703_v15, %v503_v20  ;;  %v1070_v26 = vmul.bf16 %v6703_v15, %v508_v21 }
 0x2da   : > { %v3957_v11 = vpop.f32.mrb[59].mxu1 }
 0x2dc   : > { %4360 = vmatmul.mubr.bf16.gmra.mrb[84].mxu1 %v5636_v4 }
 0x2dd   : > { %5066 = vmatmul.mubr.bf16.gmra.mrb[84].mxu0 %v5640_v28  ;;  %4367 = vmatprep.mubr.bf16.mxu1 %v5647_v7  ;;  %v5660_v28 = vcombine.low %v1047_v36, %v1052_v0  ;;  %v5667_v7 = vcombine.high %v1055_v57, %v1060_v58  ;;  %v1067_v36 = vmul.bf16 %v7883_v48, %v505_v13 }
 0x2de   : > { %5073 = vmatprep.mubr.bf16.mxu0 %v5651_v31  ;;  %v5671_v31 = vcombine.high %v1057_v59, %v1062_v61  ;;  %v1072_v0 = vmul.bf16 %v7883_v48, %v510_v25 }
 0x2df   : > { %v8323_v38 = vpop.f32.mrb[60].mxu1 }
 0x2e0   : > { %v3962_v29 = vpop.f32.mrb[61].mxu1  ;;  %v5681_v52 = vcombine.high %v1067_v36, %v1072_v0  ;;  %v5680_v20 = vcombine.low %v1067_v36, %v1072_v0 }
 0x2e1   : > { %v8325_v40 = vpop.f32.mrb[62].mxu1 }
 0x2e2   : > { %v3965_v47 = vpop.f32.mrb[63].mxu1 }
 0x2e3   : > { %v5670_v47 = vcombine.low %v1057_v59, %v1062_v61  ;;  %v1080_v59 = vmul.bf16 %v6703_v15, %v518_v12 }
 0x2e4   : > { %4368 = vmatmul.mubr.bf16.gmra.mrb[88].mxu1 %v5646_v39 }
 0x2e5   : > { %5074 = vmatmul.mubr.bf16.gmra.mrb[88].mxu0 %v5650_v42  ;;  %4375 = vmatprep.mubr.bf16.mxu1 %v5657_v44  ;;  %v5666_v42 = vcombine.low %v1055_v57, %v1060_v58  ;;  %v520_v57 = vld [vmem:[%s8816_s2 + $0x868] sm:$0xff]  ;;  %v1075_v58 = vmul.bf16 %v6703_v15, %v513_v56 }
 0x2e6   : > { %5081 = vmatprep.mubr.bf16.mxu0 %v5661_v23  ;;  %v5677_v23 = vcombine.high %v1065_v46, %v1070_v26 }
 0x2e7   : > { %v8343_v62 = vpop.f32.mrb[64].mxu1  ;;  %v5687_v21 = vcombine.high %v1075_v58, %v1080_v59  ;;  %v5686_v56 = vcombine.low %v1075_v58, %v1080_v59  ;;  %v540_v58 = vld [vmem:[%s8816_s2 + $0x908] sm:$0xff] }
 0x2e8   : > { %v3970_v53 = vpop.f32.mrb[65].mxu1 }
 0x2e9   : > { %v8345_v4 = vpop.f32.mrb[66].mxu1  ;;  %v515_v53 = vld [vmem:[%s8816_s2 + $0x840] sm:$0xff] }
 0x2ea   : > { %v3973_v11 = vpop.f32.mrb[67].mxu1  ;;  %v1077_v61 = vmul.bf16 %v7883_v48, %v515_v53 }
 0x2eb   : > { %v5676_v11 = vcombine.low %v1065_v46, %v1070_v26  ;;  %v530_v46 = vld [vmem:[%s8816_s2 + $0x8b8] sm:$0xff] }
 0x2ec   : > { %4376 = vmatmul.mubr.bf16.gmra.mrb[92].mxu1 %v5656_v2  ;;  %v1082_v2 = vmul.bf16 %v7883_v48, %v520_v57 }
 0x2ed   : > { %5082 = vmatmul.mubr.bf16.gmra.mrb[92].mxu0 %v5660_v28  ;;  %4383 = vmatprep.mubr.bf16.mxu1 %v5667_v7 }
 0x2ee   : > { %5089 = vmatprep.mubr.bf16.mxu0 %v5671_v31  ;;  %v5691_v25 = vcombine.high %v1077_v61, %v1082_v2  ;;  %v5690_v53 = vcombine.low %v1077_v61, %v1082_v2 }
 0x2ef   : > { %v8363_v29 = vpop.f32.mrb[68].mxu1 }
 0x2f0   : > { %v3978_v39 = vpop.f32.mrb[69].mxu1 }
 0x2f1   : > { %v8365_v44 = vpop.f32.mrb[70].mxu1  ;;  %v523_v39 = vld [vmem:[%s8816_s2 + $0x880] sm:$0xff] }
 0x2f2   : > { %v3981_v49 = vpop.f32.mrb[71].mxu1  ;;  %v1085_v26 = vmul.bf16 %v6703_v15, %v523_v39 }
 0x2f4   : > { %4384 = vmatmul.mubr.bf16.gmra.mrb[96].mxu1 %v5666_v42  ;;  %v528_v42 = vld [vmem:[%s8816_s2 + $0x8a8] sm:$0xff] }
 0x2f5   : > { %5090 = vmatmul.mubr.bf16.gmra.mrb[96].mxu0 %v5670_v47  ;;  %4391 = vmatprep.mubr.bf16.mxu1 %v5677_v23  ;;  %v525_v47 = vld [vmem:[%s8816_s2 + $0x890] sm:$0xff]  ;;  %v1090_v36 = vmul.bf16 %v6703_v15, %v528_v42  ;;  %v1092_v23 = vmul.bf16 %v7883_v48, %v530_v46 }
 0x2f6   : > { %5097 = vmatprep.mubr.bf16.mxu0 %v5681_v52  ;;  %v1087_v0 = vmul.bf16 %v7883_v48, %v525_v47 }
 0x2f7   : > { %v8383_v28 = vpop.f32.mrb[72].mxu1  ;;  %v5697_v57 = vcombine.high %v1085_v26, %v1090_v36  ;;  %v5696_v42 = vcombine.low %v1085_v26, %v1090_v36  ;;  %v550_v36 = vld [vmem:[%s8816_s2 + $0x958] sm:$0xff] }
 0x2f8   : > { %v3986_v7 = vpop.f32.mrb[73].mxu1 }
 0x2f9   : > { %v8385_v31 = vpop.f32.mrb[74].mxu1 }
 0x2fa   : > { %v3989_v13 = vpop.f32.mrb[75].mxu1 }
 0x2fb   : > { %v535_v13 = vld [vmem:[%s8816_s2 + $0x8e0] sm:$0xff] }
 0x2fc   : > { %4392 = vmatmul.mubr.bf16.gmra.mrb[100].mxu1 %v5676_v11  ;;  %v5701_v11 = vcombine.high %v1087_v0, %v1092_v23  ;;  %v1097_v2 = vmul.bf16 %v7883_v48, %v535_v13 }
 0x2fd   : > { %5098 = vmatmul.mubr.bf16.gmra.mrb[100].mxu0 %v5680_v20  ;;  %4399 = vmatprep.mubr.bf16.mxu1 %v5687_v21  ;;  %v533_v20 = vld [vmem:[%s8816_s2 + $0x8d0] sm:$0xff]  ;;  %v538_v21 = vld [vmem:[%s8816_s2 + $0x8f8] sm:$0xff] }
 0x2fe   : > { %5105 = vmatprep.mubr.bf16.mxu0 %v5691_v25  ;;  %v1095_v59 = vmul.bf16 %v6703_v15, %v533_v20  ;;  %v1100_v61 = vmul.bf16 %v6703_v15, %v538_v21  ;;  %v1102_v25 = vmul.bf16 %v7883_v48, %v540_v58  ;;  %v1112_v21 = vmul.bf16 %v7883_v48, %v550_v36 }
 0x2ff   : > { %v8403_v49 = vpop.f32.mrb[76].mxu1 }
 0x300   : > { %v3994_v52 = vpop.f32.mrb[77].mxu1  ;;  %v5706_v58 = vcombine.low %v1095_v59, %v1100_v61 }
 0x301   : > { %v8405_v12 = vpop.f32.mrb[78].mxu1  ;;  %v5700_v52 = vcombine.low %v1087_v0, %v1092_v23 }
 0x302   : > { %v3997_v7 = vpop.f32.mrb[79].mxu1 }
 0x303   : > { %v543_v7 = vld [vmem:[%s8816_s2 + $0x920] sm:$0xff] }
 0x304   : > { %4400 = vmatmul.mubr.bf16.gmra.mrb[104].mxu1 %v5686_v56  ;;  %v5707_v56 = vcombine.high %v1095_v59, %v1100_v61  ;;  %v1105_v0 = vmul.bf16 %v6703_v15, %v543_v7  ;;  %v560_v61 = vld [vmem:[%s8816_s2 + $0x9a8] sm:$0xff] }
 0x305   : > { %5106 = vmatmul.mubr.bf16.gmra.mrb[104].mxu0 %v5690_v53  ;;  %4407 = vmatprep.mubr.bf16.mxu1 %v5697_v57  ;;  %v5711_v57 = vcombine.high %v1097_v2, %v1102_v25 }
 0x306   : > { %5113 = vmatprep.mubr.bf16.mxu0 %v5701_v11  ;;  %v548_v11 = vld [vmem:[%s8816_s2 + $0x948] sm:$0xff] }
 0x307   : > { %v1110_v23 = vmul.bf16 %v6703_v15, %v548_v11  ;;  %v1122_v11 = vmul.bf16 %v7883_v48, %v560_v61 }
 0x308   : > { %v4899_v39 = vpop.f32.mrb[0].mxu0 }
 0x309   : > { %v5856_v47 = vadd.f32 %v4899_v39, %v8023_v30  ;;  %v4901_v46 = vpop.f32.mrb[1].mxu0  ;;  %v545_v30 = vld [vmem:[%s8816_s2 + $0x930] sm:$0xff] }
 0x30a   : > { %v4902_v53 = vpop.f32.mrb[2].mxu0  ;;  %v5717_v46 = vcombine.high %v1105_v0, %v1110_v23 }
 0x30b   : > { %5219 = vst.msk [vmem:[%s8427_s11] sm:$0xff] %vm5218_vm0, %v5856_v47  ;;  %v5857_v20 = vadd.f32 %v4902_v53, %v8025_v33  ;;  %v4904_v26 = vpop.f32.mrb[3].mxu0  ;;  %v1107_v33 = vmul.bf16 %v7883_v48, %v545_v30  ;;  %v5710_v47 = vcombine.low %v1097_v2, %v1102_v25  ;;  %v553_v53 = vld [vmem:[%s8816_s2 + $0x970] sm:$0xff] }
 0x30c   : > { %4408 = vmatmul.mubr.bf16.gmra.mrb[108].mxu1 %v5696_v42  ;;  %v1115_v2 = vmul.bf16 %v6703_v15, %v553_v53  ;;  %v5716_v26 = vcombine.low %v1105_v0, %v1110_v23  ;;  %v570_v23 = vld [vmem:[%s8816_s2 + $0x9f8] sm:$0xff] }
 0x30d   : > { %5220 = vst.msk [vmem:[%s8427_s11 + $0x8] sm:$0xff] %vm5218_vm0, %v5857_v20  ;;  %5114 = vmatmul.mubr.bf16.gmra.mrb[108].mxu0 %v5700_v52  ;;  %4415 = vmatprep.mubr.bf16.mxu1 %v5707_v56  ;;  %v5721_v56 = vcombine.high %v1107_v33, %v1112_v21 }
 0x30e   : > { %5121 = vmatprep.mubr.bf16.mxu0 %v5711_v57  ;;  %v558_v57 = vld [vmem:[%s8816_s2 + $0x998] sm:$0xff] }
 0x30f   : > { %v1120_v25 = vmul.bf16 %v6703_v15, %v558_v57 }
 0x310   : > { %v4907_v13 = vpop.f32.mrb[4].mxu0 }
 0x311   : > { %v5858_v39 = vadd.f32 %v4907_v13, %v8043_v43  ;;  %v4909_v42 = vpop.f32.mrb[5].mxu0  ;;  %v555_v43 = vld [vmem:[%s8816_s2 + $0x980] sm:$0xff]  ;;  %v5720_v13 = vcombine.low %v1107_v33, %v1112_v21  ;;  %v5726_v57 = vcombine.low %v1115_v2, %v1120_v25 }
 0x312   : > { %v4910_v52 = vpop.f32.mrb[6].mxu0 }
 0x313   : > { %5221 = vst.msk [vmem:[%s8427_s11 + $0x10] sm:$0xff] %vm5218_vm0, %v5858_v39  ;;  %v5859_v7 = vadd.f32 %v4910_v52, %v8045_v50  ;;  %v4912_v59 = vpop.f32.mrb[7].mxu0  ;;  %v1117_v50 = vmul.bf16 %v7883_v48, %v555_v43 }
 0x314   : > { %4416 = vmatmul.mubr.bf16.gmra.mrb[112].mxu1 %v5706_v58  ;;  %v5727_v58 = vcombine.high %v1115_v2, %v1120_v25  ;;  %v580_v25 = vld [vmem:[%s8816_s2 + $0xa48] sm:$0xff] }
 0x315   : > { %5222 = vst.msk [vmem:[%s8427_s11 + $0x18] sm:$0xff] %vm5218_vm0, %v5859_v7  ;;  %5122 = vmatmul.mubr.bf16.gmra.mrb[112].mxu0 %v5710_v47  ;;  %4423 = vmatprep.mubr.bf16.mxu1 %v5717_v46  ;;  %v5731_v42 = vcombine.high %v1117_v50, %v1122_v11  ;;  %v563_v47 = vld [vmem:[%s8816_s2 + $0x9c0] sm:$0xff]  ;;  %v568_v46 = vld [vmem:[%s8816_s2 + $0x9e8] sm:$0xff]  ;;  %v5730_v43 = vcombine.low %v1117_v50, %v1122_v11 }
 0x316   : > { %5129 = vmatprep.mubr.bf16.mxu0 %v5721_v56  ;;  %v1125_v33 = vmul.bf16 %v6703_v15, %v563_v47  ;;  %v1130_v21 = vmul.bf16 %v6703_v15, %v568_v46  ;;  %v1132_v56 = vmul.bf16 %v7883_v48, %v570_v23 }
 0x318   : > { %v4915_v20 = vpop.f32.mrb[8].mxu0  ;;  %v5737_v61 = vcombine.high %v1125_v33, %v1130_v21 }
 0x319   : > { %v5860_v30 = vadd.f32 %v4915_v20, %v8063_v1  ;;  %v4917_v36 = vpop.f32.mrb[9].mxu0  ;;  %v565_v1 = vld [vmem:[%s8816_s2 + $0x9d0] sm:$0xff] }
 0x31a   : > { %v4918_v39 = vpop.f32.mrb[10].mxu0  ;;  %v578_v36 = vld [vmem:[%s8816_s2 + $0xa38] sm:$0xff] }
 0x31b   : > { %5223 = vst.msk [vmem:[%s8427_s11 + $0x20] sm:$0xff] %vm5218_vm0, %v5860_v30  ;;  %v5861_v52 = vadd.f32 %v4918_v39, %v8065_v60  ;;  %v4920_v0 = vpop.f32.mrb[11].mxu0  ;;  %v1127_v60 = vmul.bf16 %v7883_v48, %v565_v1  ;;  %v573_v30 = vld [vmem:[%s8816_s2 + $0xa10] sm:$0xff]  ;;  %v1140_v11 = vmul.bf16 %v6703_v15, %v578_v36 }
 0x31c   : > { %4424 = vmatmul.mubr.bf16.gmra.mrb[116].mxu1 %v5716_v26  ;;  %v1135_v50 = vmul.bf16 %v6703_v15, %v573_v30 }
 0x31d   : > { %5224 = vst.msk [vmem:[%s8427_s11 + $0x28] sm:$0xff] %vm5218_vm0, %v5861_v52  ;;  %5130 = vmatmul.mubr.bf16.gmra.mrb[116].mxu0 %v5720_v13  ;;  %4431 = vmatprep.mubr.bf16.mxu1 %v5727_v58  ;;  %v5741_v26 = vcombine.high %v1127_v60, %v1132_v56  ;;  %v1142_v58 = vmul.bf16 %v7883_v48, %v580_v25  ;;  %v598_v25 = vld [vmem:[%s8816_s2 + $0xad8] sm:$0xff] }
 0x31e   : > { %5137 = vmatprep.mubr.bf16.mxu0 %v5731_v42  ;;  %v5736_v42 = vcombine.low %v1125_v33, %v1130_v21  ;;  %v5740_v52 = vcombine.low %v1127_v60, %v1132_v56  ;;  %v5747_v0 = vcombine.high %v1135_v50, %v1140_v11  ;;  %v590_v21 = vld [vmem:[%s8816_s2 + $0xa98] sm:$0xff] }
 0x320   : > { %v4923_v53 = vpop.f32.mrb[12].mxu0 }
 0x321   : > { %v5862_v7 = vadd.f32 %v4923_v53, %v8083_v10  ;;  %v4925_v59 = vpop.f32.mrb[13].mxu0  ;;  %v575_v10 = vld [vmem:[%s8816_s2 + $0xa20] sm:$0xff] }
 0x322   : > { %v4926_v20 = vpop.f32.mrb[14].mxu0  ;;  %v583_v53 = vld [vmem:[%s8816_s2 + $0xa60] sm:$0xff]  ;;  %v1152_v59 = vmul.bf16 %v7883_v48, %v590_v21 }
 0x323   : > { %5225 = vst.msk [vmem:[%s8427_s11 + $0x30] sm:$0xff] %vm5218_vm0, %v5862_v7  ;;  %v5863_v13 = vadd.f32 %v4926_v20, %v8085_v16  ;;  %v4928_v2 = vpop.f32.mrb[15].mxu0  ;;  %v1137_v16 = vmul.bf16 %v7883_v48, %v575_v10  ;;  %v1145_v60 = vmul.bf16 %v6703_v15, %v583_v53  ;;  %v593_v10 = vld [vmem:[%s8816_s2 + $0xab0] sm:$0xff] }
 0x324   : > { %4432 = vmatmul.mubr.bf16.gmra.mrb[120].mxu1 %v5726_v57  ;;  %v588_v57 = vld [vmem:[%s8816_s2 + $0xa88] sm:$0xff] }
 0x325   : > { %5226 = vst.msk [vmem:[%s8427_s11 + $0x38] sm:$0xff] %vm5218_vm0, %v5863_v13  ;;  %5138 = vmatmul.mubr.bf16.gmra.mrb[120].mxu0 %v5730_v43  ;;  %4439 = vmatprep.mubr.bf16.mxu1 %v5737_v61  ;;  %v5751_v23 = vcombine.high %v1137_v16, %v1142_v58  ;;  %v1150_v56 = vmul.bf16 %v6703_v15, %v588_v57 }
 0x326   : > { %5145 = vmatprep.mubr.bf16.mxu0 %v5741_v26  ;;  %v5746_v61 = vcombine.low %v1135_v50, %v1140_v11  ;;  %v5750_v30 = vcombine.low %v1137_v16, %v1142_v58  ;;  %v600_v11 = vld [vmem:[%s8816_s2 + $0xae8] sm:$0xff]  ;;  %v1155_v16 = vmul.bf16 %v6703_v15, %v593_v10  ;;  %v1160_v58 = vmul.bf16 %v6703_v15, %v598_v25  ;;  %v613_v10 = vld [vmem:[%s8816_s2 + $0xb50] sm:$0xff]  ;;  %v618_v25 = vld [vmem:[%s8816_s2 + $0xb78] sm:$0xff] }
 0x327   : > { %v5757_v36 = vcombine.high %v1145_v60, %v1150_v56 }
 0x328   : > { %v4931_v39 = vpop.f32.mrb[16].mxu0 }
 0x329   : > { %v5864_v47 = vadd.f32 %v4931_v39, %v8103_v6  ;;  %v4933_v46 = vpop.f32.mrb[17].mxu0  ;;  %v585_v6 = vld [vmem:[%s8816_s2 + $0xa70] sm:$0xff] }
 0x32a   : > { %v4934_v1 = vpop.f32.mrb[18].mxu0  ;;  %v5756_v46 = vcombine.low %v1145_v60, %v1150_v56  ;;  %v610_v60 = vld [vmem:[%s8816_s2 + $0xb38] sm:$0xff] }
 0x32b   : > { %5227 = vst.msk [vmem:[%s8427_s11 + $0x40] sm:$0xff] %vm5218_vm0, %v5864_v47  ;;  %v5865_v7 = vadd.f32 %v4934_v1, %v8105_v37  ;;  %v4936_v33 = vpop.f32.mrb[19].mxu0  ;;  %v1147_v37 = vmul.bf16 %v7883_v48, %v585_v6 }
 0x32c   : > { %4440 = vmatmul.mubr.bf16.gmra.mrb[124].mxu1 %v5736_v42  ;;  %v1162_v42 = vmul.bf16 %v7883_v48, %v600_v11  ;;  %v608_v33 = vld [vmem:[%s8816_s2 + $0xb28] sm:$0xff]  ;;  %v1175_v11 = vmul.bf16 %v6703_v15, %v613_v10 }
 0x32d   : > { %5228 = vst.msk [vmem:[%s8427_s11 + $0x48] sm:$0xff] %vm5218_vm0, %v5865_v7  ;;  %5146 = vmatmul.mubr.bf16.gmra.mrb[124].mxu0 %v5740_v52  ;;  %4447 = vmatprep.mubr.bf16.mxu1 %v5747_v0  ;;  %v5761_v2 = vcombine.high %v1147_v37, %v1152_v59  ;;  %v5760_v1 = vcombine.low %v1147_v37, %v1152_v59  ;;  %v603_v7 = vld [vmem:[%s8816_s2 + $0xb00] sm:$0xff]  ;;  %v640_v10 = vld [vmem:[%s8816_s2 + $0xc28] sm:$0xff] }
 0x32e   : > { %5153 = vmatprep.mubr.bf16.mxu0 %v5751_v23  ;;  %v5767_v23 = vcombine.high %v1155_v16, %v1160_v58  ;;  %v1165_v56 = vmul.bf16 %v6703_v15, %v603_v7  ;;  %v1170_v37 = vmul.bf16 %v6703_v15, %v608_v33  ;;  %v1172_v59 = vmul.bf16 %v7883_v48, %v610_v60 }
 0x330   : > { %v4939_v43 = vpop.f32.mrb[20].mxu0 }
 0x331   : > { %v5866_v20 = vadd.f32 %v4939_v43, %v8123_v8  ;;  %v4941_v26 = vpop.f32.mrb[21].mxu0  ;;  %v595_v8 = vld [vmem:[%s8816_s2 + $0xac0] sm:$0xff] }
 0x332   : > { %v4942_v13 = vpop.f32.mrb[22].mxu0 }
 0x333   : > { %5229 = vst.msk [vmem:[%s8427_s11 + $0x50] sm:$0xff] %vm5218_vm0, %v5866_v20  ;;  %v5867_v39 = vadd.f32 %v4942_v13, %v8125_v54  ;;  %v4944_v50 = vpop.f32.mrb[23].mxu0  ;;  %v1157_v54 = vmul.bf16 %v7883_v48, %v595_v8  ;;  %v620_v8 = vld [vmem:[%s8816_s2 + $0xb88] sm:$0xff] }
 0x334   : > { %4448 = vmatmul.mubr.bf16.gmra.mrb[128].mxu1 %v5746_v61  ;;  %v5766_v61 = vcombine.low %v1155_v16, %v1160_v58  ;;  %v1180_v16 = vmul.bf16 %v6703_v15, %v618_v25  ;;  %v1182_v58 = vmul.bf16 %v7883_v48, %v620_v8 }
 0x335   : > { %5230 = vst.msk [vmem:[%s8427_s11 + $0x58] sm:$0xff] %vm5218_vm0, %v5867_v39  ;;  %5154 = vmatmul.mubr.bf16.gmra.mrb[128].mxu0 %v5750_v30  ;;  %4455 = vmatprep.mubr.bf16.mxu1 %v5757_v36  ;;  %v5771_v57 = vcombine.high %v1157_v54, %v1162_v42  ;;  %v5770_v30 = vcombine.low %v1157_v54, %v1162_v42 }
 0x336   : > { %5161 = vmatprep.mubr.bf16.mxu0 %v5761_v2  ;;  %v5777_v36 = vcombine.high %v1165_v56, %v1170_v37  ;;  %v5776_v42 = vcombine.low %v1165_v56, %v1170_v37  ;;  %v5786_v37 = vcombine.low %v1175_v11, %v1180_v16 }
 0x338   : > { %v4947_v47 = vpop.f32.mrb[24].mxu0 }
 0x339   : > { %v5868_v52 = vadd.f32 %v4947_v47, %v8143_v3  ;;  %v4949_v0 = vpop.f32.mrb[25].mxu0  ;;  %v605_v3 = vld [vmem:[%s8816_s2 + $0xb10] sm:$0xff] }
 0x33a   : > { %v4950_v53 = vpop.f32.mrb[26].mxu0  ;;  %v5787_v0 = vcombine.high %v1175_v11, %v1180_v16 }
 0x33b   : > { %5231 = vst.msk [vmem:[%s8427_s11 + $0x60] sm:$0xff] %vm5218_vm0, %v5868_v52  ;;  %v5869_v6 = vadd.f32 %v4950_v53, %v8145_v19  ;;  %v4952_v21 = vpop.f32.mrb[27].mxu0  ;;  %v1167_v19 = vmul.bf16 %v7883_v48, %v605_v3  ;;  %v623_v53 = vld [vmem:[%s8816_s2 + $0xba0] sm:$0xff] }
 0x33c   : > { %4456 = vmatmul.mubr.bf16.gmra.mrb[132].mxu1 %v5756_v46  ;;  %v1185_v21 = vmul.bf16 %v6703_v15, %v623_v53 }
 0x33d   : > { %5232 = vst.msk [vmem:[%s8427_s11 + $0x68] sm:$0xff] %vm5218_vm0, %v5869_v6  ;;  %5162 = vmatmul.mubr.bf16.gmra.mrb[132].mxu0 %v5760_v1  ;;  %4463 = vmatprep.mubr.bf16.mxu1 %v5767_v23  ;;  %v5781_v2 = vcombine.high %v1167_v19, %v1172_v59  ;;  %v5780_v52 = vcombine.low %v1167_v19, %v1172_v59  ;;  %v630_v6 = vld [vmem:[%s8816_s2 + $0xbd8] sm:$0xff] }
 0x33e   : > { %5169 = vmatprep.mubr.bf16.mxu0 %v5771_v57  ;;  %v628_v57 = vld [vmem:[%s8816_s2 + $0xbc8] sm:$0xff]  ;;  %v1192_v60 = vmul.bf16 %v7883_v48, %v630_v6 }
 0x33f   : > { %v1190_v3 = vmul.bf16 %v6703_v15, %v628_v57 }
 0x340   : > { %v4955_v43 = vpop.f32.mrb[28].mxu0 }
 0x341   : > { %v5870_v20 = vadd.f32 %v4955_v43, %v8163_v22  ;;  %v4957_v26 = vpop.f32.mrb[29].mxu0  ;;  %v615_v22 = vld [vmem:[%s8816_s2 + $0xb60] sm:$0xff]  ;;  %v5796_v8 = vcombine.low %v1185_v21, %v1190_v3 }
 0x342   : > { %v4958_v13 = vpop.f32.mrb[30].mxu0 }
 0x343   : > { %5233 = vst.msk [vmem:[%s8427_s11 + $0x70] sm:$0xff] %vm5218_vm0, %v5870_v20  ;;  %v5871_v39 = vadd.f32 %v4958_v13, %v8165_v32  ;;  %v4960_v50 = vpop.f32.mrb[31].mxu0  ;;  %v1177_v32 = vmul.bf16 %v7883_v48, %v615_v22 }
 0x344   : > { %4464 = vmatmul.mubr.bf16.gmra.mrb[136].mxu1 %v5766_v61  ;;  %v5797_v61 = vcombine.high %v1185_v21, %v1190_v3  ;;  %v1202_v50 = vmul.bf16 %v7883_v48, %v640_v10 }
 0x345   : > { %5234 = vst.msk [vmem:[%s8427_s11 + $0x78] sm:$0xff] %vm5218_vm0, %v5871_v39  ;;  %5170 = vmatmul.mubr.bf16.gmra.mrb[136].mxu0 %v5770_v30  ;;  %4471 = vmatprep.mubr.bf16.mxu1 %v5777_v36  ;;  %v5791_v23 = vcombine.high %v1177_v32, %v1182_v58  ;;  %v5790_v43 = vcombine.low %v1177_v32, %v1182_v58  ;;  %v633_v30 = vld [vmem:[%s8816_s2 + $0xbf0] sm:$0xff]  ;;  %v638_v36 = vld [vmem:[%s8816_s2 + $0xc18] sm:$0xff] }
 0x346   : > { %5177 = vmatprep.mubr.bf16.mxu0 %v5781_v2  ;;  %v1195_v25 = vmul.bf16 %v6703_v15, %v633_v30  ;;  %v1200_v39 = vmul.bf16 %v6703_v15, %v638_v36 }
 0x348   : > { %v4963_v54 = vpop.f32.mrb[32].mxu0  ;;  %v5807_v58 = vcombine.high %v1195_v25, %v1200_v39 }
 0x349   : > { %v5872_v47 = vadd.f32 %v4963_v54, %v8183_v34  ;;  %v4965_v46 = vpop.f32.mrb[33].mxu0  ;;  %v625_v34 = vld [vmem:[%s8816_s2 + $0xbb0] sm:$0xff] }
 0x34a   : > { %v4966_v1 = vpop.f32.mrb[34].mxu0  ;;  %v648_v46 = vld [vmem:[%s8816_s2 + $0xc68] sm:$0xff] }
 0x34b   : > { %5235 = vst.msk [vmem:[%s8427_s11 + $0x80] sm:$0xff] %vm5218_vm0, %v5872_v47  ;;  %v5873_v7 = vadd.f32 %v4966_v1, %v8185_v51  ;;  %v4968_v33 = vpop.f32.mrb[35].mxu0  ;;  %v1187_v51 = vmul.bf16 %v7883_v48, %v625_v34  ;;  %v643_v47 = vld [vmem:[%s8816_s2 + $0xc40] sm:$0xff]  ;;  %v650_v1 = vld [vmem:[%s8816_s2 + $0xc78] sm:$0xff]  ;;  %v1210_v53 = vmul.bf16 %v6703_v15, %v648_v46 }
 0x34c   : > { %4472 = vmatmul.mubr.bf16.gmra.mrb[140].mxu1 %v5776_v42  ;;  %v1212_v57 = vmul.bf16 %v7883_v48, %v650_v1  ;;  %v5806_v33 = vcombine.low %v1195_v25, %v1200_v39 }
 0x34d   : > { %5236 = vst.msk [vmem:[%s8427_s11 + $0x88] sm:$0xff] %vm5218_vm0, %v5873_v7  ;;  %5178 = vmatmul.mubr.bf16.gmra.mrb[140].mxu0 %v5780_v52  ;;  %4479 = vmatprep.mubr.bf16.mxu1 %v5787_v0  ;;  %v5801_v26 = vcombine.high %v1187_v51, %v1192_v60  ;;  %v5800_v32 = vcombine.low %v1187_v51, %v1192_v60 }
 0x34e   : > { %5185 = vmatprep.mubr.bf16.mxu0 %v5791_v23  ;;  %v1205_v23 = vmul.bf16 %v6703_v15, %v643_v47 }
 0x350   : > { %v4971_v56 = vpop.f32.mrb[36].mxu0  ;;  %v5817_v3 = vcombine.high %v1205_v23, %v1210_v53 }
 0x351   : > { %v5874_v19 = vadd.f32 %v4971_v56, %v8203_v9  ;;  %v4973_v59 = vpop.f32.mrb[37].mxu0  ;;  %v635_v9 = vld [vmem:[%s8816_s2 + $0xc00] sm:$0xff] }
 0x352   : > { %v4974_v20 = vpop.f32.mrb[38].mxu0 }
 0x353   : > { %5237 = vst.msk [vmem:[%s8427_s11 + $0x90] sm:$0xff] %vm5218_vm0, %v5874_v19  ;;  %v5875_v13 = vadd.f32 %v4974_v20, %v8205_v18  ;;  %v4976_v2 = vpop.f32.mrb[39].mxu0  ;;  %v1197_v18 = vmul.bf16 %v7883_v48, %v635_v9 }
 0x354   : > { %4480 = vmatmul.mubr.bf16.gmra.mrb[144].mxu1 %v5786_v37 }
 0x355   : > { %5238 = vst.msk [vmem:[%s8427_s11 + $0x98] sm:$0xff] %vm5218_vm0, %v5875_v13  ;;  %5186 = vmatmul.mubr.bf16.gmra.mrb[144].mxu0 %v5790_v43  ;;  %4487 = vmatprep.mubr.bf16.mxu1 %v5797_v61  ;;  %v5811_v42 = vcombine.high %v1197_v18, %v1202_v50  ;;  %v5810_v21 = vcombine.low %v1197_v18, %v1202_v50 }
 0x356   : > { %5193 = vmatprep.mubr.bf16.mxu0 %v5801_v26 }
 0x358   : > { %v4979_v22 = vpop.f32.mrb[40].mxu0 }
 0x359   : > { %v5876_v11 = vadd.f32 %v4979_v22, %v8223_v27  ;;  %v4981_v16 = vpop.f32.mrb[41].mxu0  ;;  %v645_v27 = vld [vmem:[%s8816_s2 + $0xc50] sm:$0xff] }
 0x35a   : > { %v4982_v54 = vpop.f32.mrb[42].mxu0 }
 0x35b   : > { %5239 = vst.msk [vmem:[%s8427_s11 + $0xa0] sm:$0xff] %vm5218_vm0, %v5876_v11  ;;  %v5877_v52 = vadd.f32 %v4982_v54, %v8225_v35  ;;  %v4984_v0 = vpop.f32.mrb[43].mxu0  ;;  %v1207_v35 = vmul.bf16 %v7883_v48, %v645_v27 }
 0x35c   : > { %4488 = vmatmul.mubr.bf16.gmra.mrb[148].mxu1 %v5796_v8 }
 0x35d   : > { %5240 = vst.msk [vmem:[%s8427_s11 + $0xa8] sm:$0xff] %vm5218_vm0, %v5877_v52  ;;  %5194 = vmatmul.mubr.bf16.gmra.mrb[148].mxu0 %v5800_v32  ;;  %4495 = vmatprep.mubr.bf16.mxu1 %v5807_v58  ;;  %v5821_v60 = vcombine.high %v1207_v35, %v1212_v57  ;;  %v5820_v59 = vcombine.low %v1207_v35, %v1212_v57 }
 0x35e   : > { %5201 = vmatprep.mubr.bf16.mxu0 %v5811_v42 }
 0x360   : > { %v4987_v7 = vpop.f32.mrb[44].mxu0 }
 0x361   : > { %v5878_v34 = vadd.f32 %v4987_v7, %v8243_v55  ;;  %v4989_v6 = vpop.f32.mrb[45].mxu0  ;;  %v5816_v55 = vcombine.low %v1205_v23, %v1210_v53 }
 0x362   : > { %v4990_v51 = vpop.f32.mrb[46].mxu0 }
 0x363   : > { %5241 = vst.msk [vmem:[%s8427_s11 + $0xb0] sm:$0xff] %vm5218_vm0, %v5878_v34  ;;  %v5879_v15 = vadd.f32 %v4990_v51, %v8245_v14  ;;  %v4992_v56 = vpop.f32.mrb[47].mxu0 }
 0x364   : > { %4496 = vmatmul.mubr.bf16.gmra.mrb[152].mxu1 %v5806_v33 }
 0x365   : > { %5242 = vst.msk [vmem:[%s8427_s11 + $0xb8] sm:$0xff] %vm5218_vm0, %v5879_v15  ;;  %5202 = vmatmul.mubr.bf16.gmra.mrb[152].mxu0 %v5810_v21  ;;  %4503 = vmatprep.mubr.bf16.mxu1 %v5817_v3 }
 0x366   : > { %5209 = vmatprep.mubr.bf16.mxu0 %v5821_v60 }
 0x368   : > { %v4995_v48 = vpop.f32.mrb[48].mxu0 }
 0x369   : > { %v5880_v37 = vadd.f32 %v4995_v48, %v8263_v24  ;;  %v4997_v19 = vpop.f32.mrb[49].mxu0 }
 0x36a   : > { %v4998_v43 = vpop.f32.mrb[50].mxu0 }
 0x36b   : > { %5243 = vst.msk [vmem:[%s8427_s11 + $0xc0] sm:$0xff] %vm5218_vm0, %v5880_v37  ;;  %v5881_v14 = vadd.f32 %v4998_v43, %v8265_v17  ;;  %v5000_v61 = vpop.f32.mrb[51].mxu0 }
 0x36c   : > { %4504 = vmatmul.mubr.bf16.gmra.mrb[156].mxu1 %v5816_v55 }
 0x36d   : > { %5244 = vst.msk [vmem:[%s8427_s11 + $0xc8] sm:$0xff] %vm5218_vm0, %v5881_v14  ;;  %5210 = vmatmul.mubr.bf16.gmra.mrb[156].mxu0 %v5820_v59 }
 0x370   : > { %v5003_v20 = vpop.f32.mrb[52].mxu0 }
 0x371   : > { %v5882_v26 = vadd.f32 %v5003_v20, %v8283_v41  ;;  %v5005_v30 = vpop.f32.mrb[53].mxu0 }
 0x372   : > { %v5006_v24 = vpop.f32.mrb[54].mxu0 }
 0x373   : > { %5245 = vst.msk [vmem:[%s8427_s11 + $0xd0] sm:$0xff] %vm5218_vm0, %v5882_v26  ;;  %v5883_v36 = vadd.f32 %v5006_v24, %v8285_v45  ;;  %v5008_v13 = vpop.f32.mrb[55].mxu0 }
 0x375   : > { %5246 = vst.msk [vmem:[%s8427_s11 + $0xd8] sm:$0xff] %vm5218_vm0, %v5883_v36 }
 0x378   : > { %v5011_v17 = vpop.f32.mrb[56].mxu0 }
 0x379   : > { %v5884_v2 = vadd.f32 %v5011_v17, %v8303_v63  ;;  %v5013_v9 = vpop.f32.mrb[57].mxu0 }
 0x37a   : > { %v5014_v10 = vpop.f32.mrb[58].mxu0 }
 0x37b   : > { %5247 = vst.msk [vmem:[%s8427_s11 + $0xe0] sm:$0xff] %vm5218_vm0, %v5884_v2  ;;  %v5885_v41 = vadd.f32 %v5014_v10, %v8305_v5  ;;  %v5016_v25 = vpop.f32.mrb[59].mxu0 }
 0x37d   : > { %5248 = vst.msk [vmem:[%s8427_s11 + $0xe8] sm:$0xff] %vm5218_vm0, %v5885_v41 }
 0x380   : > { %v5019_v39 = vpop.f32.mrb[60].mxu0 }
 0x381   : > { %v5886_v45 = vadd.f32 %v5019_v39, %v8323_v38  ;;  %v5021_v18 = vpop.f32.mrb[61].mxu0 }
 0x382   : > { %v5022_v50 = vpop.f32.mrb[62].mxu0 }
 0x383   : > { %5249 = vst.msk [vmem:[%s8427_s11 + $0xf0] sm:$0xff] %vm5218_vm0, %v5886_v45  ;;  %v5887_v63 = vadd.f32 %v5022_v50, %v8325_v40  ;;  %v5024_v22 = vpop.f32.mrb[63].mxu0 }
 0x385   : > { %5250 = vst.msk [vmem:[%s8427_s11 + $0xf8] sm:$0xff] %vm5218_vm0, %v5887_v63 }
 0x388   : > { %v5027_v8 = vpop.f32.mrb[64].mxu0 }
 0x389   : > { %v5888_v5 = vadd.f32 %v5027_v8, %v8343_v62  ;;  %v5029_v11 = vpop.f32.mrb[65].mxu0 }
 0x38a   : > { %v5030_v16 = vpop.f32.mrb[66].mxu0 }
 0x38b   : > { %5251 = vst.msk [vmem:[%s8427_s11 + $0x100] sm:$0xff] %vm5218_vm0, %v5888_v5  ;;  %v5889_v38 = vadd.f32 %v5030_v16, %v8345_v4  ;;  %v5032_v32 = vpop.f32.mrb[67].mxu0 }
 0x38d   : > { %5252 = vst.msk [vmem:[%s8427_s11 + $0x108] sm:$0xff] %vm5218_vm0, %v5889_v38 }
 0x390   : > { %v5035_v58 = vpop.f32.mrb[68].mxu0 }
 0x391   : > { %v5890_v40 = vadd.f32 %v5035_v58, %v8363_v29  ;;  %v5037_v54 = vpop.f32.mrb[69].mxu0 }
 0x392   : > { %v5038_v42 = vpop.f32.mrb[70].mxu0 }
 0x393   : > { %5253 = vst.msk [vmem:[%s8427_s11 + $0x110] sm:$0xff] %vm5218_vm0, %v5890_v40  ;;  %v5891_v62 = vadd.f32 %v5038_v42, %v8365_v44  ;;  %v5040_v47 = vpop.f32.mrb[71].mxu0 }
 0x395   : > { %5254 = vst.msk [vmem:[%s8427_s11 + $0x118] sm:$0xff] %vm5218_vm0, %v5891_v62 }
 0x398   : > { %v5043_v46 = vpop.f32.mrb[72].mxu0 }
 0x399   : > { %v5892_v4 = vadd.f32 %v5043_v46, %v8383_v28  ;;  %v5045_v52 = vpop.f32.mrb[73].mxu0 }
 0x39a   : > { %v5046_v0 = vpop.f32.mrb[74].mxu0 }
 0x39b   : > { %5255 = vst.msk [vmem:[%s8427_s11 + $0x120] sm:$0xff] %vm5218_vm0, %v5892_v4  ;;  %v5893_v29 = vadd.f32 %v5046_v0, %v8385_v31  ;;  %v5048_v27 = vpop.f32.mrb[75].mxu0 }
 0x39d   : > { %5256 = vst.msk [vmem:[%s8427_s11 + $0x128] sm:$0xff] %vm5218_vm0, %v5893_v29 }
 0x3a0   : > { %v5051_v1 = vpop.f32.mrb[76].mxu0 }
 0x3a1   : > { %v5894_v44 = vadd.f32 %v5051_v1, %v8403_v49  ;;  %v5053_v23 = vpop.f32.mrb[77].mxu0 }
 0x3a2   : > { %v5054_v53 = vpop.f32.mrb[78].mxu0 }
 0x3a3   : > { %5257 = vst.msk [vmem:[%s8427_s11 + $0x130] sm:$0xff] %vm5218_vm0, %v5894_v44  ;;  %v5895_v28 = vadd.f32 %v5054_v53, %v8405_v12  ;;  %v5056_v35 = vpop.f32.mrb[79].mxu0 }
 0x3a5   : > { %5258 = vst.msk [vmem:[%s8427_s11 + $0x138] sm:$0xff] %vm5218_vm0, %v5895_v28 }
 0x3a7   : > { %v4353_v57 = vpop.f32.mrb[80].mxu1 }
 0x3a8   : > { %v5059_v7 = vpop.f32.mrb[80].mxu0  ;;  %v4355_v31 = vpop.f32.mrb[81].mxu1 }
 0x3a9   : > { %v5896_v33 = vadd.f32 %v5059_v7, %v4353_v57  ;;  %v5061_v34 = vpop.f32.mrb[81].mxu0  ;;  %v4356_v6 = vpop.f32.mrb[82].mxu1 }
 0x3aa   : > { %v5062_v21 = vpop.f32.mrb[82].mxu0  ;;  %v4358_v3 = vpop.f32.mrb[83].mxu1 }
 0x3ab   : > { %5259 = vst.msk [vmem:[%s8427_s11 + $0x140] sm:$0xff] %vm5218_vm0, %v5896_v33  ;;  %v5897_v49 = vadd.f32 %v5062_v21, %v4356_v6  ;;  %v5064_v51 = vpop.f32.mrb[83].mxu0 }
 0x3ad   : > { %5260 = vst.msk [vmem:[%s8427_s11 + $0x148] sm:$0xff] %vm5218_vm0, %v5897_v49 }
 0x3af   : > { %v4361_v12 = vpop.f32.mrb[84].mxu1 }
 0x3b0   : > { %v5067_v60 = vpop.f32.mrb[84].mxu0  ;;  %v4363_v15 = vpop.f32.mrb[85].mxu1 }
 0x3b1   : > { %v5898_v56 = vadd.f32 %v5067_v60, %v4361_v12  ;;  %v5069_v48 = vpop.f32.mrb[85].mxu0  ;;  %v4364_v55 = vpop.f32.mrb[86].mxu1 }
 0x3b2   : > { %v5070_v37 = vpop.f32.mrb[86].mxu0  ;;  %v4366_v19 = vpop.f32.mrb[87].mxu1 }
 0x3b3   : > { %5261 = vst.msk [vmem:[%s8427_s11 + $0x150] sm:$0xff] %vm5218_vm0, %v5898_v56  ;;  %v5899_v59 = vadd.f32 %v5070_v37, %v4364_v55  ;;  %v5072_v43 = vpop.f32.mrb[87].mxu0 }
 0x3b5   : > { %5262 = vst.msk [vmem:[%s8427_s11 + $0x158] sm:$0xff] %vm5218_vm0, %v5899_v59 }
 0x3b7   : > { %v4369_v14 = vpop.f32.mrb[88].mxu1 }
 0x3b8   : > { %v5075_v61 = vpop.f32.mrb[88].mxu0  ;;  %v4371_v20 = vpop.f32.mrb[89].mxu1 }
 0x3b9   : > { %v5900_v26 = vadd.f32 %v5075_v61, %v4369_v14  ;;  %v5077_v30 = vpop.f32.mrb[89].mxu0  ;;  %v4372_v24 = vpop.f32.mrb[90].mxu1 }
 0x3ba   : > { %v5078_v36 = vpop.f32.mrb[90].mxu0  ;;  %v4374_v13 = vpop.f32.mrb[91].mxu1 }
 0x3bb   : > { %5263 = vst.msk [vmem:[%s8427_s11 + $0x160] sm:$0xff] %vm5218_vm0, %v5900_v26  ;;  %v5901_v17 = vadd.f32 %v5078_v36, %v4372_v24  ;;  %v5080_v2 = vpop.f32.mrb[91].mxu0 }
 0x3bd   : > { %5264 = vst.msk [vmem:[%s8427_s11 + $0x168] sm:$0xff] %vm5218_vm0, %v5901_v17 }
 0x3bf   : > { %v4377_v9 = vpop.f32.mrb[92].mxu1 }
 0x3c0   : > { %v5083_v10 = vpop.f32.mrb[92].mxu0  ;;  %v4379_v41 = vpop.f32.mrb[93].mxu1 }
 0x3c1   : > { %v5902_v25 = vadd.f32 %v5083_v10, %v4377_v9  ;;  %v5085_v39 = vpop.f32.mrb[93].mxu0  ;;  %v4380_v45 = vpop.f32.mrb[94].mxu1 }
 0x3c2   : > { %v5086_v18 = vpop.f32.mrb[94].mxu0  ;;  %v4382_v50 = vpop.f32.mrb[95].mxu1 }
 0x3c3   : > { %5265 = vst.msk [vmem:[%s8427_s11 + $0x170] sm:$0xff] %vm5218_vm0, %v5902_v25  ;;  %v5903_v63 = vadd.f32 %v5086_v18, %v4380_v45  ;;  %v5088_v22 = vpop.f32.mrb[95].mxu0 }
 0x3c5   : > { %5266 = vst.msk [vmem:[%s8427_s11 + $0x178] sm:$0xff] %vm5218_vm0, %v5903_v63 }
 0x3c7   : > { %v4385_v8 = vpop.f32.mrb[96].mxu1 }
 0x3c8   : > { %v5091_v5 = vpop.f32.mrb[96].mxu0  ;;  %v4387_v11 = vpop.f32.mrb[97].mxu1 }
 0x3c9   : > { %v5904_v16 = vadd.f32 %v5091_v5, %v4385_v8  ;;  %v5093_v38 = vpop.f32.mrb[97].mxu0  ;;  %v4388_v32 = vpop.f32.mrb[98].mxu1 }
 0x3ca   : > { %v5094_v58 = vpop.f32.mrb[98].mxu0  ;;  %v4390_v40 = vpop.f32.mrb[99].mxu1 }
 0x3cb   : > { %5267 = vst.msk [vmem:[%s8427_s11 + $0x180] sm:$0xff] %vm5218_vm0, %v5904_v16  ;;  %v5905_v54 = vadd.f32 %v5094_v58, %v4388_v32  ;;  %v5096_v42 = vpop.f32.mrb[99].mxu0 }
 0x3cd   : > { %5268 = vst.msk [vmem:[%s8427_s11 + $0x188] sm:$0xff] %vm5218_vm0, %v5905_v54 }
 0x3cf   : > { %v4393_v62 = vpop.f32.mrb[100].mxu1 }
 0x3d0   : > { %v5099_v47 = vpop.f32.mrb[100].mxu0  ;;  %v4395_v46 = vpop.f32.mrb[101].mxu1 }
 0x3d1   : > { %v5906_v4 = vadd.f32 %v5099_v47, %v4393_v62  ;;  %v5101_v52 = vpop.f32.mrb[101].mxu0  ;;  %v4396_v0 = vpop.f32.mrb[102].mxu1 }
 0x3d2   : > { %v5102_v29 = vpop.f32.mrb[102].mxu0  ;;  %v4398_v27 = vpop.f32.mrb[103].mxu1 }
 0x3d3   : > { %5269 = vst.msk [vmem:[%s8427_s11 + $0x190] sm:$0xff] %vm5218_vm0, %v5906_v4  ;;  %v5907_v1 = vadd.f32 %v5102_v29, %v4396_v0  ;;  %v5104_v44 = vpop.f32.mrb[103].mxu0 }
 0x3d5   : > { %5270 = vst.msk [vmem:[%s8427_s11 + $0x198] sm:$0xff] %vm5218_vm0, %v5907_v1 }
 0x3d7   : > { %v4401_v23 = vpop.f32.mrb[104].mxu1 }
 0x3d8   : > { %v5107_v53 = vpop.f32.mrb[104].mxu0  ;;  %v4403_v28 = vpop.f32.mrb[105].mxu1 }
 0x3d9   : > { %v5908_v35 = vadd.f32 %v5107_v53, %v4401_v23  ;;  %v5109_v57 = vpop.f32.mrb[105].mxu0  ;;  %v4404_v7 = vpop.f32.mrb[106].mxu1 }
 0x3da   : > { %v5110_v31 = vpop.f32.mrb[106].mxu0  ;;  %v4406_v33 = vpop.f32.mrb[107].mxu1 }
 0x3db   : > { %5271 = vst.msk [vmem:[%s8427_s11 + $0x1a0] sm:$0xff] %vm5218_vm0, %v5908_v35  ;;  %v5909_v34 = vadd.f32 %v5110_v31, %v4404_v7  ;;  %v5112_v6 = vpop.f32.mrb[107].mxu0 }
 0x3dd   : > { %5272 = vst.msk [vmem:[%s8427_s11 + $0x1a8] sm:$0xff] %vm5218_vm0, %v5909_v34 }
 0x3df   : > { %v4409_v21 = vpop.f32.mrb[108].mxu1 }
 0x3e0   : > { %v5115_v3 = vpop.f32.mrb[108].mxu0  ;;  %v4411_v49 = vpop.f32.mrb[109].mxu1 }
 0x3e1   : > { %v5910_v51 = vadd.f32 %v5115_v3, %v4409_v21  ;;  %v5117_v12 = vpop.f32.mrb[109].mxu0  ;;  %v4412_v60 = vpop.f32.mrb[110].mxu1 }
 0x3e2   : > { %v5118_v15 = vpop.f32.mrb[110].mxu0  ;;  %v4414_v56 = vpop.f32.mrb[111].mxu1 }
 0x3e3   : > { %5273 = vst.msk [vmem:[%s8427_s11 + $0x1b0] sm:$0xff] %vm5218_vm0, %v5910_v51  ;;  %v5911_v48 = vadd.f32 %v5118_v15, %v4412_v60  ;;  %v5120_v55 = vpop.f32.mrb[111].mxu0 }
 0x3e5   : > { %5274 = vst.msk [vmem:[%s8427_s11 + $0x1b8] sm:$0xff] %vm5218_vm0, %v5911_v48 }
 0x3e7   : > { %v4417_v37 = vpop.f32.mrb[112].mxu1 }
 0x3e8   : > { %v5123_v19 = vpop.f32.mrb[112].mxu0  ;;  %v4419_v59 = vpop.f32.mrb[113].mxu1 }
 0x3e9   : > { %v5912_v43 = vadd.f32 %v5123_v19, %v4417_v37  ;;  %v5125_v14 = vpop.f32.mrb[113].mxu0  ;;  %v4420_v61 = vpop.f32.mrb[114].mxu1 }
 0x3ea   : > { %v5126_v20 = vpop.f32.mrb[114].mxu0  ;;  %v4422_v26 = vpop.f32.mrb[115].mxu1 }
 0x3eb   : > { %5275 = vst.msk [vmem:[%s8427_s11 + $0x1c0] sm:$0xff] %vm5218_vm0, %v5912_v43  ;;  %v5913_v30 = vadd.f32 %v5126_v20, %v4420_v61  ;;  %v5128_v24 = vpop.f32.mrb[115].mxu0 }
 0x3ed   : > { %5276 = vst.msk [vmem:[%s8427_s11 + $0x1c8] sm:$0xff] %vm5218_vm0, %v5913_v30 }
 0x3ef   : > { %v4425_v36 = vpop.f32.mrb[116].mxu1 }
 0x3f0   : > { %v5131_v13 = vpop.f32.mrb[116].mxu0  ;;  %v4427_v17 = vpop.f32.mrb[117].mxu1 }
 0x3f1   : > { %v5914_v2 = vadd.f32 %v5131_v13, %v4425_v36  ;;  %v5133_v9 = vpop.f32.mrb[117].mxu0  ;;  %v4428_v10 = vpop.f32.mrb[118].mxu1 }
 0x3f2   : > { %v5134_v41 = vpop.f32.mrb[118].mxu0  ;;  %v4430_v25 = vpop.f32.mrb[119].mxu1 }
 0x3f3   : > { %5277 = vst.msk [vmem:[%s8427_s11 + $0x1d0] sm:$0xff] %vm5218_vm0, %v5914_v2  ;;  %v5915_v39 = vadd.f32 %v5134_v41, %v4428_v10  ;;  %v5136_v45 = vpop.f32.mrb[119].mxu0 }
 0x3f5   : > { %5278 = vst.msk [vmem:[%s8427_s11 + $0x1d8] sm:$0xff] %vm5218_vm0, %v5915_v39 }
 0x3f7   : > { %v4433_v18 = vpop.f32.mrb[120].mxu1 }
 0x3f8   : > { %v5139_v50 = vpop.f32.mrb[120].mxu0  ;;  %v4435_v63 = vpop.f32.mrb[121].mxu1 }
 0x3f9   : > { %v5916_v22 = vadd.f32 %v5139_v50, %v4433_v18  ;;  %v5141_v8 = vpop.f32.mrb[121].mxu0  ;;  %v4436_v5 = vpop.f32.mrb[122].mxu1 }
 0x3fa   : > { %v5142_v11 = vpop.f32.mrb[122].mxu0  ;;  %v4438_v16 = vpop.f32.mrb[123].mxu1 }
 0x3fb   : > { %5279 = vst.msk [vmem:[%s8427_s11 + $0x1e0] sm:$0xff] %vm5218_vm0, %v5916_v22  ;;  %v5917_v38 = vadd.f32 %v5142_v11, %v4436_v5  ;;  %v5144_v32 = vpop.f32.mrb[123].mxu0 }
 0x3fd   : > { %5280 = vst.msk [vmem:[%s8427_s11 + $0x1e8] sm:$0xff] %vm5218_vm0, %v5917_v38 }
 0x3ff   : > { %v4441_v58 = vpop.f32.mrb[124].mxu1 }
 0x400   : > { %v5147_v40 = vpop.f32.mrb[124].mxu0  ;;  %v4443_v54 = vpop.f32.mrb[125].mxu1 }
 0x401   : > { %v5918_v42 = vadd.f32 %v5147_v40, %v4441_v58  ;;  %v5149_v62 = vpop.f32.mrb[125].mxu0  ;;  %v4444_v47 = vpop.f32.mrb[126].mxu1 }
 0x402   : > { %v5150_v46 = vpop.f32.mrb[126].mxu0  ;;  %v4446_v4 = vpop.f32.mrb[127].mxu1 }
 0x403   : > { %5281 = vst.msk [vmem:[%s8427_s11 + $0x1f0] sm:$0xff] %vm5218_vm0, %v5918_v42  ;;  %v5919_v52 = vadd.f32 %v5150_v46, %v4444_v47  ;;  %v5152_v0 = vpop.f32.mrb[127].mxu0 }
 0x405   : > { %5282 = vst.msk [vmem:[%s8427_s11 + $0x1f8] sm:$0xff] %vm5218_vm0, %v5919_v52 }
 0x407   : > { %v4449_v29 = vpop.f32.mrb[128].mxu1 }
 0x408   : > { %v5155_v27 = vpop.f32.mrb[128].mxu0  ;;  %v4451_v1 = vpop.f32.mrb[129].mxu1 }
 0x409   : > { %v5920_v44 = vadd.f32 %v5155_v27, %v4449_v29  ;;  %v5157_v23 = vpop.f32.mrb[129].mxu0  ;;  %v4452_v53 = vpop.f32.mrb[130].mxu1 }
 0x40a   : > { %v5158_v28 = vpop.f32.mrb[130].mxu0  ;;  %v4454_v35 = vpop.f32.mrb[131].mxu1 }
 0x40b   : > { %5283 = vst.msk [vmem:[%s8427_s11 + $0x200] sm:$0xff] %vm5218_vm0, %v5920_v44  ;;  %v5921_v57 = vadd.f32 %v5158_v28, %v4452_v53  ;;  %v5160_v7 = vpop.f32.mrb[131].mxu0 }
 0x40d   : > { %5284 = vst.msk [vmem:[%s8427_s11 + $0x208] sm:$0xff] %vm5218_vm0, %v5921_v57 }
 0x40f   : > { %v4457_v31 = vpop.f32.mrb[132].mxu1 }
 0x410   : > { %v5163_v33 = vpop.f32.mrb[132].mxu0  ;;  %v4459_v34 = vpop.f32.mrb[133].mxu1 }
 0x411   : > { %v5922_v6 = vadd.f32 %v5163_v33, %v4457_v31  ;;  %v5165_v21 = vpop.f32.mrb[133].mxu0  ;;  %v4460_v3 = vpop.f32.mrb[134].mxu1 }
 0x412   : > { %v5166_v49 = vpop.f32.mrb[134].mxu0  ;;  %v4462_v51 = vpop.f32.mrb[135].mxu1 }
 0x413   : > { %5285 = vst.msk [vmem:[%s8427_s11 + $0x210] sm:$0xff] %vm5218_vm0, %v5922_v6  ;;  %v5923_v12 = vadd.f32 %v5166_v49, %v4460_v3  ;;  %v5168_v60 = vpop.f32.mrb[135].mxu0 }
 0x415   : > { %5286 = vst.msk [vmem:[%s8427_s11 + $0x218] sm:$0xff] %vm5218_vm0, %v5923_v12 }
 0x417   : > { %v4465_v15 = vpop.f32.mrb[136].mxu1 }
 0x418   : > { %v5171_v56 = vpop.f32.mrb[136].mxu0  ;;  %v4467_v48 = vpop.f32.mrb[137].mxu1 }
 0x419   : > { %v5924_v55 = vadd.f32 %v5171_v56, %v4465_v15  ;;  %v5173_v37 = vpop.f32.mrb[137].mxu0  ;;  %v4468_v19 = vpop.f32.mrb[138].mxu1 }
 0x41a   : > { %v5174_v59 = vpop.f32.mrb[138].mxu0  ;;  %v4470_v43 = vpop.f32.mrb[139].mxu1 }
 0x41b   : > { %5287 = vst.msk [vmem:[%s8427_s11 + $0x220] sm:$0xff] %vm5218_vm0, %v5924_v55  ;;  %v5925_v14 = vadd.f32 %v5174_v59, %v4468_v19  ;;  %v5176_v61 = vpop.f32.mrb[139].mxu0 }
 0x41d   : > { %5288 = vst.msk [vmem:[%s8427_s11 + $0x228] sm:$0xff] %vm5218_vm0, %v5925_v14 }
 0x41f   : > { %v4473_v20 = vpop.f32.mrb[140].mxu1 }
 0x420   : > { %v5179_v26 = vpop.f32.mrb[140].mxu0  ;;  %v4475_v30 = vpop.f32.mrb[141].mxu1 }
 0x421   : > { %v5926_v24 = vadd.f32 %v5179_v26, %v4473_v20  ;;  %v5181_v36 = vpop.f32.mrb[141].mxu0  ;;  %v4476_v13 = vpop.f32.mrb[142].mxu1 }
 0x422   : > { %v5182_v17 = vpop.f32.mrb[142].mxu0  ;;  %v4478_v2 = vpop.f32.mrb[143].mxu1 }
 0x423   : > { %5289 = vst.msk [vmem:[%s8427_s11 + $0x230] sm:$0xff] %vm5218_vm0, %v5926_v24  ;;  %v5927_v9 = vadd.f32 %v5182_v17, %v4476_v13  ;;  %v5184_v10 = vpop.f32.mrb[143].mxu0 }
 0x425   : > { %5290 = vst.msk [vmem:[%s8427_s11 + $0x238] sm:$0xff] %vm5218_vm0, %v5927_v9 }
 0x427   : > { %v4481_v41 = vpop.f32.mrb[144].mxu1 }
 0x428   : > { %v5187_v25 = vpop.f32.mrb[144].mxu0  ;;  %v4483_v39 = vpop.f32.mrb[145].mxu1 }
 0x429   : > { %v5928_v45 = vadd.f32 %v5187_v25, %v4481_v41  ;;  %v5189_v18 = vpop.f32.mrb[145].mxu0  ;;  %v4484_v50 = vpop.f32.mrb[146].mxu1 }
 0x42a   : > { %v5190_v63 = vpop.f32.mrb[146].mxu0  ;;  %v4486_v22 = vpop.f32.mrb[147].mxu1 }
 0x42b   : > { %5291 = vst.msk [vmem:[%s8427_s11 + $0x240] sm:$0xff] %vm5218_vm0, %v5928_v45  ;;  %v5929_v8 = vadd.f32 %v5190_v63, %v4484_v50  ;;  %v5192_v5 = vpop.f32.mrb[147].mxu0 }
 0x42d   : > { %5292 = vst.msk [vmem:[%s8427_s11 + $0x248] sm:$0xff] %vm5218_vm0, %v5929_v8 }
 0x42f   : > { %v4489_v11 = vpop.f32.mrb[148].mxu1 }
 0x430   : > { %v5195_v16 = vpop.f32.mrb[148].mxu0  ;;  %v4491_v38 = vpop.f32.mrb[149].mxu1 }
 0x431   : > { %v5930_v32 = vadd.f32 %v5195_v16, %v4489_v11  ;;  %v5197_v58 = vpop.f32.mrb[149].mxu0  ;;  %v4492_v40 = vpop.f32.mrb[150].mxu1 }
 0x432   : > { %v5198_v54 = vpop.f32.mrb[150].mxu0  ;;  %v4494_v42 = vpop.f32.mrb[151].mxu1 }
 0x433   : > { %5293 = vst.msk [vmem:[%s8427_s11 + $0x250] sm:$0xff] %vm5218_vm0, %v5930_v32  ;;  %v5931_v62 = vadd.f32 %v5198_v54, %v4492_v40  ;;  %v5200_v47 = vpop.f32.mrb[151].mxu0 }
 0x435   : > { %5294 = vst.msk [vmem:[%s8427_s11 + $0x258] sm:$0xff] %vm5218_vm0, %v5931_v62 }
 0x437   : > { %v4497_v46 = vpop.f32.mrb[152].mxu1 }
 0x438   : > { %v5203_v4 = vpop.f32.mrb[152].mxu0  ;;  %v4499_v52 = vpop.f32.mrb[153].mxu1 }
 0x439   : > { %v5932_v0 = vadd.f32 %v5203_v4, %v4497_v46  ;;  %v5205_v29 = vpop.f32.mrb[153].mxu0  ;;  %v4500_v27 = vpop.f32.mrb[154].mxu1 }
 0x43a   : > { %v5206_v1 = vpop.f32.mrb[154].mxu0  ;;  %v4502_v44 = vpop.f32.mrb[155].mxu1 }
 0x43b   : > { %5295 = vst.msk [vmem:[%s8427_s11 + $0x260] sm:$0xff] %vm5218_vm0, %v5932_v0  ;;  %v5933_v23 = vadd.f32 %v5206_v1, %v4500_v27  ;;  %v5208_v53 = vpop.f32.mrb[155].mxu0 }
 0x43d   : > { %5296 = vst.msk [vmem:[%s8427_s11 + $0x268] sm:$0xff] %vm5218_vm0, %v5933_v23 }
 0x43f   : > { %v4505_v28 = vpop.f32.mrb[156].mxu1 }
 0x440   : > { %v5211_v35 = vpop.f32.mrb[156].mxu0  ;;  %v4507_v57 = vpop.f32.mrb[157].mxu1 }
 0x441   : > { %v5934_v7 = vadd.f32 %v5211_v35, %v4505_v28  ;;  %v5213_v31 = vpop.f32.mrb[157].mxu0  ;;  %v4508_v33 = vpop.f32.mrb[158].mxu1 }
 0x442   : > { %v5214_v34 = vpop.f32.mrb[158].mxu0  ;;  %v4510_v6 = vpop.f32.mrb[159].mxu1 }
 0x443   : > { %5297 = vst.msk [vmem:[%s8427_s11 + $0x270] sm:$0xff] %vm5218_vm0, %v5934_v7  ;;  %v5935_v21 = vadd.f32 %v5214_v34, %v4508_v33  ;;  %v5216_v3 = vpop.f32.mrb[159].mxu0 }
 0x445   : > { %5298 = vst.msk [vmem:[%s8427_s11 + $0x278] sm:$0xff] %vm5218_vm0, %v5935_v21 }
 0x446 PF: > { %s13_s14 = sadd.s32 1, %s6474_s14   ;;  %s8818_s12 = smov %s6470_s13 }
 0x447   : > { %p10_p5 = scmp.ge.s32.totalorder %s13_s14, 4   ;;  %s8819_s13 = smov %s8821_s15 }
 0x449   :  { %12 = sbr.rel (!%p10_p5) target bundleno = 2 (0x2), region = 68 }

</bundles_post_ra>
